<compile_context>
chip_gen: v6e
topology: v6e:2x2x1
jax: 0.10.0
libtpu: 0.0.40
codegen_flags: <defaults>
</compile_context>

<pallas_src>
import functools

import jax
import jax.numpy as jnp
from jax.experimental import pallas as pl
from jax.experimental.pallas import tpu as pltpu

EPS = 1e-5


def _conv_bn_stats_kernel(x_ref, scale_ref, shift_ref, w_ref,
                          y_ref, stats_ref,
                          pad_ref, col_ref,
                          *, H, W, C, normalize_input):
    # x_ref    : (1, M, C)      activation rows for this batch element, f32
    # scale/shift: (1, C)       BN scale/shift for the *input* activation, f32
    # w_ref    : (9*C, C)       conv weights, bf16, index [(dy*3+dx)*C + ci, co]
    # y_ref    : (1, M, C)      pre-BN conv output, f32
    # stats_ref: (1, 2, C)      per-tile partial [sum, sum-of-squares], f32
    # pad_ref  : (H+2, W+2, C)  bf16 scratch: zero-padded activation
    # col_ref  : (H, W, 9*C)    bf16 scratch: full 3x3 im2col patches
    M = H * W

    x = x_ref[0]                                        # (M, C) f32
    if normalize_input:
        x = jnp.maximum(x * scale_ref[...] + shift_ref[...], 0.0)

    # ---- zero ONLY the 1-pixel halo, then write the interior in bf16 ----
    pad_ref[0:1, :, :] = jnp.zeros((1, W + 2, C), jnp.bfloat16)
    pad_ref[H + 1:H + 2, :, :] = jnp.zeros((1, W + 2, C), jnp.bfloat16)
    pad_ref[:, 0:1, :] = jnp.zeros((H + 2, 1, C), jnp.bfloat16)
    pad_ref[:, W + 1:W + 2, :] = jnp.zeros((H + 2, 1, C), jnp.bfloat16)
    pad_ref[1:H + 1, 1:W + 1, :] = x.astype(jnp.bfloat16).reshape(H, W, C)

    # ---- full 3x3 im2col: dy and dx folded into the contraction (K = 9C) ----
    for dy in range(3):
        for dx in range(3):
            k = dy * 3 + dx
            col_ref[:, :, k * C:(k + 1) * C] = pad_ref[dy:dy + H, dx:dx + W, :]

    # single MXU matmul per conv, bf16 inputs, f32 accumulation
    acc = jnp.dot(col_ref[...].reshape(M, 9 * C), w_ref[...],
                  preferred_element_type=jnp.float32)   # (M, C) f32
    y_ref[0] = acc

    # per-tile partial BN stats, computed in M-chunks (bounded temporaries)
    chunk = min(M, 512)
    s1 = jnp.zeros((1, C), jnp.float32)
    s2 = jnp.zeros((1, C), jnp.float32)
    for i in range(0, M, chunk):
        a = acc[i:i + chunk]
        s1 = s1 + jnp.sum(a, axis=0, keepdims=True)
        s2 = s2 + jnp.sum(a * a, axis=0, keepdims=True)
    stats_ref[0, 0:1, :] = s1
    stats_ref[0, 1:2, :] = s2


def _bn_residual_relu_kernel(y_ref, res_ref, scale_ref, shift_ref, o_ref):
    # Lane-dense slab epilogue: all refs have minor dim W*C (>= 128-aligned
    # for the shipped sizes) -> dense loads/stores, full VPU lanes.
    # y_ref/res_ref/o_ref: (1, H, W*C) f32; scale/shift: (1, W*C) f32.
    o_ref[0] = jnp.maximum(
        y_ref[0] * scale_ref[...] + shift_ref[...] + res_ref[0], 0.0)


def _conv_stage(act, scale, shift, w_k, *, H, W, C, normalize_input):
    """conv3x3 (+ optional input scale/shift/ReLU) + partial BN stats, per n."""
    N = act.shape[0]
    M = H * W

    # static VMEM budget check (double-buffered blocks + resident + scratch)
    blk_bytes = (2 * (M * C * 4)                 # act blocks (in)
                 + 2 * (M * C * 4)               # y blocks (out)
                 + 2 * (2 * C * 4)               # stats blocks (out)
                 + 2 * (9 * C * C * 2 + 2 * C * 4)   # weights + scale/shift
                 + (H + 2) * (W + 2) * C * 2     # pad scratch (bf16)
                 + H * W * 9 * C * 2)            # im2col scratch (bf16)
    assert blk_bytes <= 32 * 1024 * 1024, "tile exceeds the 32 MiB VMEM budget"

    kernel = functools.partial(_conv_bn_stats_kernel, H=H, W=W, C=C,
                               normalize_input=normalize_input)
    cost = pl.CostEstimate(
        flops=2 * N * M * 9 * C * C,
        transcendentals=0,
        bytes_accessed=2 * N * M * C * 4 + 9 * C * C * 2 + N * 2 * C * 4)

    y, stats = pl.pallas_call(
        kernel,
        out_shape=(jax.ShapeDtypeStruct((N, M, C), jnp.float32),
                   jax.ShapeDtypeStruct((N, 2, C), jnp.float32)),
        grid=(N,),
        in_specs=[
            pl.BlockSpec((1, M, C), lambda n: (n, 0, 0)),
            pl.BlockSpec((1, C), lambda n: (0, 0)),        # resident
            pl.BlockSpec((1, C), lambda n: (0, 0)),        # resident
            pl.BlockSpec((9 * C, C), lambda n: (0, 0)),    # resident
        ],
        out_specs=(
            pl.BlockSpec((1, M, C), lambda n: (n, 0, 0)),
            pl.BlockSpec((1, 2, C), lambda n: (n, 0, 0)),
        ),
        scratch_shapes=[
            pltpu.VMEM((H + 2, W + 2, C), jnp.bfloat16),   # padded activation
            pltpu.VMEM((H, W, 9 * C), jnp.bfloat16),       # im2col patches
        ],
        compiler_params=pltpu.CompilerParams(
            dimension_semantics=("parallel",),
            vmem_limit_bytes=32 * 1024 * 1024),
        cost_estimate=cost,
    )(act, scale, shift, w_k)
    return y, stats


def _bn_scale_shift(stats, gamma, beta, m):
    """Reduce per-tile partials -> folded BN scale/shift (tiny, pure JAX)."""
    s1 = jnp.sum(stats[:, 0, :], axis=0)
    s2 = jnp.sum(stats[:, 1, :], axis=0)
    mu = s1 / m
    var = jnp.maximum(s2 / m - mu * mu, 0.0)     # clamp: E[x^2]-mu^2 can dip <0
    scale = gamma * jax.lax.rsqrt(var + EPS)
    shift = beta - mu * scale
    return scale, shift


def _bn_residual_relu(y2, x_res, scale, shift, *, H, W, C):
    N = y2.shape[0]
    WC = W * C
    y2s = y2.reshape(N, H, WC)          # free contiguous re-views in HBM
    xs = x_res.reshape(N, H, WC)
    scale_s = jnp.tile(scale.reshape(1, C), (1, W))    # (1, W*C)
    shift_s = jnp.tile(shift.reshape(1, C), (1, W))
    return pl.pallas_call(
        _bn_residual_relu_kernel,
        out_shape=jax.ShapeDtypeStruct((N, H, WC), jnp.float32),
        grid=(N,),
        in_specs=[
            pl.BlockSpec((1, H, WC), lambda n: (n, 0, 0)),
            pl.BlockSpec((1, H, WC), lambda n: (n, 0, 0)),
            pl.BlockSpec((1, WC), lambda n: (0, 0)),
            pl.BlockSpec((1, WC), lambda n: (0, 0)),
        ],
        out_specs=pl.BlockSpec((1, H, WC), lambda n: (n, 0, 0)),
        compiler_params=pltpu.CompilerParams(
            dimension_semantics=("parallel",),
            vmem_limit_bytes=32 * 1024 * 1024),
    )(y2s, xs, scale_s, shift_s)


def basic_block(x_nchw, w1, g1, b1, w2, g2, b2):
    """PyTorch-layout wrapper. x: (N,Cin,H,W); conv weights: (Cout,Cin,3,3)."""
    N, Cin, H, W = x_nchw.shape
    Cout = w1.shape[0]
    assert Cin == Cout, "downsample is None -> inplanes must equal planes"
    C, M = Cout, H * W

    x = jnp.transpose(x_nchw, (0, 2, 3, 1)).reshape(N, M, C)    # NHWC rows
    # (Cout, Cin, 3, 3) -> (dy, dx, Cin, Cout) -> (9*Cin, Cout), bf16 for MXU
    w1k = jnp.transpose(w1, (2, 3, 1, 0)).reshape(9 * C, C).astype(jnp.bfloat16)
    w2k = jnp.transpose(w2, (2, 3, 1, 0)).reshape(9 * C, C).astype(jnp.bfloat16)

    ones = jnp.ones((1, C), jnp.float32)
    zeros = jnp.zeros((1, C), jnp.float32)

    # ---- conv1 -> partial BN1 stats ----
    y1, stats1 = _conv_stage(x, ones, zeros, w1k, H=H, W=W, C=C,
                             normalize_input=False)
    scale1, shift1 = _bn_scale_shift(stats1, g1, b1, N * M)

    # ---- bn1 -> relu -> conv2 -> partial BN2 stats ----
    y2, stats2 = _conv_stage(y1, scale1.reshape(1, C), shift1.reshape(1, C),
                             w2k, H=H, W=W, C=C, normalize_input=True)
    scale2, shift2 = _bn_scale_shift(stats2, g2, b2, N * M)

    # ---- bn2 + residual + relu (lane-dense slab epilogue) ----
    out = _bn_residual_relu(y2, x, scale2, shift2, H=H, W=W, C=C)
    return jnp.transpose(out.reshape(N, H, W, C), (0, 3, 1, 2))   # -> NCHW


def basic_block_reference(x, w1, g1, b1, w2, g2, b2):
    """Pure-JAX f32 reference of the PyTorch forward (training-mode BN)."""
    def conv(x, w):
        return jax.lax.conv_general_dilated(
            x, w, window_strides=(1, 1), padding=((1, 1), (1, 1)),
            dimension_numbers=("NCHW", "OIHW", "NCHW"))

    def bn(x, g, b):
        mu = jnp.mean(x, axis=(0, 2, 3), keepdims=True)
        var = jnp.mean((x - mu) ** 2, axis=(0, 2, 3), keepdims=True)
        return ((x - mu) * jax.lax.rsqrt(var + EPS)
                * g.reshape(1, -1, 1, 1) + b.reshape(1, -1, 1, 1))

    out = jnp.maximum(bn(conv(x, w1), g1, b1), 0.0)
    out = bn(conv(out, w2), g2, b2) + x
    return jnp.maximum(out, 0.0)


if __name__ == "__main__":
    N, C, H, W = 2, 32, 16, 16          # inplanes == planes == 32, stride=1
    key = jax.random.PRNGKey(0)
    kx, k1, k2 = jax.random.split(key, 3)

    x = jax.random.normal(kx, (N, C, H, W), jnp.float32)
    fan_in = C * 9
    w1 = jax.random.normal(k1, (C, C, 3, 3), jnp.float32) * (2.0 / fan_in) ** 0.5
    w2 = jax.random.normal(k2, (C, C, 3, 3), jnp.float32) * (2.0 / fan_in) ** 0.5
    g1 = jnp.ones((C,), jnp.float32)
    b1 = jnp.zeros((C,), jnp.float32)
    g2 = jnp.ones((C,), jnp.float32)
    b2 = jnp.zeros((C,), jnp.float32)

    out = basic_block(x, w1, g1, b1, w2, g2, b2)
    out = jax.block_until_ready(out)

    ref = basic_block_reference(x, w1, g1, b1, w2, g2, b2)
    assert out.shape == (N, C, H, W)
    # Tolerance loosened vs. pure-f32: conv patches/weights feed the MXU in
    # bf16 (f32 accumulation); expected worst-case deviation is ~1e-2.
    assert jnp.allclose(out, ref, atol=3e-2, rtol=3e-2), \
        f"max abs diff {jnp.max(jnp.abs(out - ref))}"

    print("KERNEL_OK")
</pallas_src>

<mosaic_0001>
module attributes {stable_mosaic.version = 11 : i64} {
  func.func @_conv_bn_stats_kernel(%arg0: i32, %arg1: memref<1x256x32xf32, #tpu.memory_space<vmem>>, %arg2: memref<1x32xf32, #tpu.memory_space<vmem>>, %arg3: memref<1x32xf32, #tpu.memory_space<vmem>>, %arg4: memref<288x32xbf16, #tpu.memory_space<vmem>>, %arg5: memref<1x256x32xf32, #tpu.memory_space<vmem>>, %arg6: memref<1x2x32xf32, #tpu.memory_space<vmem>>, %arg7: memref<18x18x32xbf16, #tpu.memory_space<vmem>>, %arg8: memref<16x16x288xbf16, #tpu.memory_space<vmem>>) attributes {dimension_semantics = [#tpu.dimension_semantics<parallel>], iteration_bounds = array<i64: 2>, scalar_prefetch = 0 : i64, scratch_operands = 2 : i64, tpu.core_type = #tpu.core_type<tc>, window_params = [{transform_indices = @transform_0, window_bounds = array<i64: 1, 256, 32>}, {pipeline_mode = #tpu.pipeline_mode<synchronous>, transform_indices = @transform_1, window_bounds = array<i64: 1, 32>}, {pipeline_mode = #tpu.pipeline_mode<synchronous>, transform_indices = @transform_2, window_bounds = array<i64: 1, 32>}, {pipeline_mode = #tpu.pipeline_mode<synchronous>, transform_indices = @transform_3, window_bounds = array<i64: 288, 32>}, {transform_indices = @transform_4, window_bounds = array<i64: 1, 256, 32>}, {transform_indices = @transform_5, window_bounds = array<i64: 1, 2, 32>}]} {
    %c0 = arith.constant 0 : index
    %c0_0 = arith.constant 0 : index
    %c0_1 = arith.constant 0 : index
    %0 = vector.load %arg1[%c0, %c0_0, %c0_1] : memref<1x256x32xf32, #tpu.memory_space<vmem>>, vector<1x256x32xf32>
    %1 = vector.shape_cast %0 : vector<1x256x32xf32> to vector<256x32xf32>
    %cst = arith.constant 0.000000e+00 : bf16
    %2 = vector.broadcast %cst : bf16 to vector<1x18x32xbf16>
    %c0_2 = arith.constant 0 : index
    %c0_3 = arith.constant 0 : index
    %c0_4 = arith.constant 0 : index
    %3 = vector.load %arg7[%c0_2, %c0_3, %c0_4] : memref<18x18x32xbf16, #tpu.memory_space<vmem>>, vector<1x18x32xbf16>
    tpu.vector_store %arg7[%c0_2, %c0_3, %c0_4], %2 {strides = array<i32>} : memref<18x18x32xbf16, #tpu.memory_space<vmem>>, vector<1x18x32xbf16>,
    %cst_5 = arith.constant 0.000000e+00 : bf16
    %4 = vector.broadcast %cst_5 : bf16 to vector<1x18x32xbf16>
    %c17 = arith.constant 17 : index
    %c0_6 = arith.constant 0 : index
    %c0_7 = arith.constant 0 : index
    %5 = vector.load %arg7[%c17, %c0_6, %c0_7] : memref<18x18x32xbf16, #tpu.memory_space<vmem>>, vector<1x18x32xbf16>
    tpu.vector_store %arg7[%c17, %c0_6, %c0_7], %4 {strides = array<i32>} : memref<18x18x32xbf16, #tpu.memory_space<vmem>>, vector<1x18x32xbf16>,
    %cst_8 = arith.constant 0.000000e+00 : bf16
    %6 = vector.broadcast %cst_8 : bf16 to vector<18x1x32xbf16>
    %c0_9 = arith.constant 0 : index
    %c0_10 = arith.constant 0 : index
    %c0_11 = arith.constant 0 : index
    %7 = vector.load %arg7[%c0_9, %c0_10, %c0_11] : memref<18x18x32xbf16, #tpu.memory_space<vmem>>, vector<18x1x32xbf16>
    tpu.vector_store %arg7[%c0_9, %c0_10, %c0_11], %6 {strides = array<i32>} : memref<18x18x32xbf16, #tpu.memory_space<vmem>>, vector<18x1x32xbf16>,
    %cst_12 = arith.constant 0.000000e+00 : bf16
    %8 = vector.broadcast %cst_12 : bf16 to vector<18x1x32xbf16>
    %c0_13 = arith.constant 0 : index
    %c17_14 = arith.constant 17 : index
    %c0_15 = arith.constant 0 : index
    %9 = vector.load %arg7[%c0_13, %c17_14, %c0_15] : memref<18x18x32xbf16, #tpu.memory_space<vmem>>, vector<18x1x32xbf16>
    tpu.vector_store %arg7[%c0_13, %c17_14, %c0_15], %8 {strides = array<i32>} : memref<18x18x32xbf16, #tpu.memory_space<vmem>>, vector<18x1x32xbf16>,
    %10 = arith.truncf %1 : vector<256x32xf32> to vector<256x32xbf16>
    %11 = vector.shape_cast %10 : vector<256x32xbf16> to vector<16x16x32xbf16>
    %c1 = arith.constant 1 : index
    %c1_16 = arith.constant 1 : index
    %c0_17 = arith.constant 0 : index
    %12 = vector.load %arg7[%c1, %c1_16, %c0_17] : memref<18x18x32xbf16, #tpu.memory_space<vmem>>, vector<16x16x32xbf16>
    tpu.vector_store %arg7[%c1, %c1_16, %c0_17], %11 {strides = array<i32>} : memref<18x18x32xbf16, #tpu.memory_space<vmem>>, vector<16x16x32xbf16>,
    %c0_18 = arith.constant 0 : index
    %c0_19 = arith.constant 0 : index
    %c0_20 = arith.constant 0 : index
    %13 = vector.load %arg7[%c0_18, %c0_19, %c0_20] : memref<18x18x32xbf16, #tpu.memory_space<vmem>>, vector<16x16x32xbf16>
    %c0_21 = arith.constant 0 : index
    %c0_22 = arith.constant 0 : index
    %c0_23 = arith.constant 0 : index
    %14 = vector.load %arg8[%c0_21, %c0_22, %c0_23] : memref<16x16x288xbf16, #tpu.memory_space<vmem>>, vector<16x16x32xbf16>
    tpu.vector_store %arg8[%c0_21, %c0_22, %c0_23], %13 {strides = array<i32>} : memref<16x16x288xbf16, #tpu.memory_space<vmem>>, vector<16x16x32xbf16>,
    %c0_24 = arith.constant 0 : index
    %c1_25 = arith.constant 1 : index
    %c0_26 = arith.constant 0 : index
    %15 = vector.load %arg7[%c0_24, %c1_25, %c0_26] : memref<18x18x32xbf16, #tpu.memory_space<vmem>>, vector<16x16x32xbf16>
    %c0_27 = arith.constant 0 : index
    %c0_28 = arith.constant 0 : index
    %c32 = arith.constant 32 : index
    %16 = vector.load %arg8[%c0_27, %c0_28, %c32] : memref<16x16x288xbf16, #tpu.memory_space<vmem>>, vector<16x16x32xbf16>
    tpu.vector_store %arg8[%c0_27, %c0_28, %c32], %15 {strides = array<i32>} : memref<16x16x288xbf16, #tpu.memory_space<vmem>>, vector<16x16x32xbf16>,
    %c0_29 = arith.constant 0 : index
    %c2 = arith.constant 2 : index
    %c0_30 = arith.constant 0 : index
    %17 = vector.load %arg7[%c0_29, %c2, %c0_30] : memref<18x18x32xbf16, #tpu.memory_space<vmem>>, vector<16x16x32xbf16>
    %c0_31 = arith.constant 0 : index
    %c0_32 = arith.constant 0 : index
    %c64 = arith.constant 64 : index
    %18 = vector.load %arg8[%c0_31, %c0_32, %c64] : memref<16x16x288xbf16, #tpu.memory_space<vmem>>, vector<16x16x32xbf16>
    tpu.vector_store %arg8[%c0_31, %c0_32, %c64], %17 {strides = array<i32>} : memref<16x16x288xbf16, #tpu.memory_space<vmem>>, vector<16x16x32xbf16>,
    %c1_33 = arith.constant 1 : index
    %c0_34 = arith.constant 0 : index
    %c0_35 = arith.constant 0 : index
    %19 = vector.load %arg7[%c1_33, %c0_34, %c0_35] : memref<18x18x32xbf16, #tpu.memory_space<vmem>>, vector<16x16x32xbf16>
    %c0_36 = arith.constant 0 : index
    %c0_37 = arith.constant 0 : index
    %c96 = arith.constant 96 : index
    %20 = vector.load %arg8[%c0_36, %c0_37, %c96] : memref<16x16x288xbf16, #tpu.memory_space<vmem>>, vector<16x16x32xbf16>
    tpu.vector_store %arg8[%c0_36, %c0_37, %c96], %19 {strides = array<i32>} : memref<16x16x288xbf16, #tpu.memory_space<vmem>>, vector<16x16x32xbf16>,
    %c1_38 = arith.constant 1 : index
    %c1_39 = arith.constant 1 : index
    %c0_40 = arith.constant 0 : index
    %21 = vector.load %arg7[%c1_38, %c1_39, %c0_40] : memref<18x18x32xbf16, #tpu.memory_space<vmem>>, vector<16x16x32xbf16>
    %c0_41 = arith.constant 0 : index
    %c0_42 = arith.constant 0 : index
    %c128 = arith.constant 128 : index
    %22 = vector.load %arg8[%c0_41, %c0_42, %c128] : memref<16x16x288xbf16, #tpu.memory_space<vmem>>, vector<16x16x32xbf16>
    tpu.vector_store %arg8[%c0_41, %c0_42, %c128], %21 {strides = array<i32>} : memref<16x16x288xbf16, #tpu.memory_space<vmem>>, vector<16x16x32xbf16>,
    %c1_43 = arith.constant 1 : index
    %c2_44 = arith.constant 2 : index
    %c0_45 = arith.constant 0 : index
    %23 = vector.load %arg7[%c1_43, %c2_44, %c0_45] : memref<18x18x32xbf16, #tpu.memory_space<vmem>>, vector<16x16x32xbf16>
    %c0_46 = arith.constant 0 : index
    %c0_47 = arith.constant 0 : index
    %c160 = arith.constant 160 : index
    %24 = vector.load %arg8[%c0_46, %c0_47, %c160] : memref<16x16x288xbf16, #tpu.memory_space<vmem>>, vector<16x16x32xbf16>
    tpu.vector_store %arg8[%c0_46, %c0_47, %c160], %23 {strides = array<i32>} : memref<16x16x288xbf16, #tpu.memory_space<vmem>>, vector<16x16x32xbf16>,
    %c2_48 = arith.constant 2 : index
    %c0_49 = arith.constant 0 : index
    %c0_50 = arith.constant 0 : index
    %25 = vector.load %arg7[%c2_48, %c0_49, %c0_50] : memref<18x18x32xbf16, #tpu.memory_space<vmem>>, vector<16x16x32xbf16>
    %c0_51 = arith.constant 0 : index
    %c0_52 = arith.constant 0 : index
    %c192 = arith.constant 192 : index
    %26 = vector.load %arg8[%c0_51, %c0_52, %c192] : memref<16x16x288xbf16, #tpu.memory_space<vmem>>, vector<16x16x32xbf16>
    tpu.vector_store %arg8[%c0_51, %c0_52, %c192], %25 {strides = array<i32>} : memref<16x16x288xbf16, #tpu.memory_space<vmem>>, vector<16x16x32xbf16>,
    %c2_53 = arith.constant 2 : index
    %c1_54 = arith.constant 1 : index
    %c0_55 = arith.constant 0 : index
    %27 = vector.load %arg7[%c2_53, %c1_54, %c0_55] : memref<18x18x32xbf16, #tpu.memory_space<vmem>>, vector<16x16x32xbf16>
    %c0_56 = arith.constant 0 : index
    %c0_57 = arith.constant 0 : index
    %c224 = arith.constant 224 : index
    %28 = vector.load %arg8[%c0_56, %c0_57, %c224] : memref<16x16x288xbf16, #tpu.memory_space<vmem>>, vector<16x16x32xbf16>
    tpu.vector_store %arg8[%c0_56, %c0_57, %c224], %27 {strides = array<i32>} : memref<16x16x288xbf16, #tpu.memory_space<vmem>>, vector<16x16x32xbf16>,
    %c2_58 = arith.constant 2 : index
    %c2_59 = arith.constant 2 : index
    %c0_60 = arith.constant 0 : index
    %29 = vector.load %arg7[%c2_58, %c2_59, %c0_60] : memref<18x18x32xbf16, #tpu.memory_space<vmem>>, vector<16x16x32xbf16>
    %c0_61 = arith.constant 0 : index
    %c0_62 = arith.constant 0 : index
    %c256 = arith.constant 256 : index
    %30 = vector.load %arg8[%c0_61, %c0_62, %c256] : memref<16x16x288xbf16, #tpu.memory_space<vmem>>, vector<16x16x32xbf16>
    tpu.vector_store %arg8[%c0_61, %c0_62, %c256], %29 {strides = array<i32>} : memref<16x16x288xbf16, #tpu.memory_space<vmem>>, vector<16x16x32xbf16>,
    %c0_63 = arith.constant 0 : index
    %c0_64 = arith.constant 0 : index
    %c0_65 = arith.constant 0 : index
    %31 = vector.load %arg8[%c0_63, %c0_64, %c0_65] : memref<16x16x288xbf16, #tpu.memory_space<vmem>>, vector<16x16x288xbf16>
    %32 = vector.shape_cast %31 : vector<16x16x288xbf16> to vector<256x288xbf16>
    %c0_66 = arith.constant 0 : index
    %c0_67 = arith.constant 0 : index
    %33 = vector.load %arg4[%c0_66, %c0_67] : memref<288x32xbf16, #tpu.memory_space<vmem>>, vector<288x32xbf16>
    %cst_68 = arith.constant dense<0.000000e+00> : vector<256x32xf32>
    %34 = tpu.matmul %32, %33, %cst_68 {dimension_numbers = #tpu.dot_dimension_numbers<[1], [0], [0], [1], [0, 0, 1, 1], [], []>} : vector<256x288xbf16>, vector<288x32xbf16>, vector<256x32xf32> -> vector<256x32xf32>
    %c0_69 = arith.constant 0 : index
    %c0_70 = arith.constant 0 : index
    %c0_71 = arith.constant 0 : index
    %35 = vector.load %arg5[%c0_69, %c0_70, %c0_71] : memref<1x256x32xf32, #tpu.memory_space<vmem>>, vector<1x256x32xf32>
    %36 = vector.shape_cast %35 : vector<1x256x32xf32> to vector<256x32xf32>
    %37 = vector.shape_cast %34 : vector<256x32xf32> to vector<1x256x32xf32>
    tpu.vector_store %arg5[%c0_69, %c0_70, %c0_71], %37 {strides = array<i32>} : memref<1x256x32xf32, #tpu.memory_space<vmem>>, vector<1x256x32xf32>,
    %cst_72 = arith.constant 0.000000e+00 : f32
    %38 = vector.broadcast %cst_72 : f32 to vector<1x32xf32>
    %cst_73 = arith.constant 0.000000e+00 : f32
    %39 = vector.broadcast %cst_73 : f32 to vector<1x32xf32>
    %cst_74 = arith.constant dense<0.000000e+00> : vector<32xf32>
    %40 = vector.multi_reduction <add>, %34, %cst_74 [0] : vector<256x32xf32> to vector<32xf32>
    %41 = vector.shape_cast %40 : vector<32xf32> to vector<1x32xf32>
    %42 = arith.addf %38, %41 : vector<1x32xf32>
    %43 = arith.mulf %34, %34 : vector<256x32xf32>
    %cst_75 = arith.constant dense<0.000000e+00> : vector<32xf32>
    %44 = vector.multi_reduction <add>, %43, %cst_75 [0] : vector<256x32xf32> to vector<32xf32>
    %45 = vector.shape_cast %44 : vector<32xf32> to vector<1x32xf32>
    %46 = arith.addf %39, %45 : vector<1x32xf32>
    %c0_76 = arith.constant 0 : index
    %c0_77 = arith.constant 0 : index
    %c0_78 = arith.constant 0 : index
    %47 = vector.load %arg6[%c0_76, %c0_77, %c0_78] : memref<1x2x32xf32, #tpu.memory_space<vmem>>, vector<1x1x32xf32>
    %48 = vector.shape_cast %47 : vector<1x1x32xf32> to vector<1x32xf32>
    %49 = vector.shape_cast %42 : vector<1x32xf32> to vector<1x1x32xf32>
    tpu.vector_store %arg6[%c0_76, %c0_77, %c0_78], %49 {strides = array<i32>} : memref<1x2x32xf32, #tpu.memory_space<vmem>>, vector<1x1x32xf32>,
    %c0_79 = arith.constant 0 : index
    %c1_80 = arith.constant 1 : index
    %c0_81 = arith.constant 0 : index
    %50 = vector.load %arg6[%c0_79, %c1_80, %c0_81] : memref<1x2x32xf32, #tpu.memory_space<vmem>>, vector<1x1x32xf32>
    %51 = vector.shape_cast %50 : vector<1x1x32xf32> to vector<1x32xf32>
    %52 = vector.shape_cast %46 : vector<1x32xf32> to vector<1x1x32xf32>
    tpu.vector_store %arg6[%c0_79, %c1_80, %c0_81], %52 {strides = array<i32>} : memref<1x2x32xf32, #tpu.memory_space<vmem>>, vector<1x1x32xf32>,
    return
  }
  func.func @transform_0(%arg0: i32) -> (i32, i32, i32) {
    %c0_i32 = arith.constant 0 : i32
    %c0_i32_0 = arith.constant 0 : i32
    %c0_i32_1 = arith.constant 0 : i32
    return %arg0, %c0_i32, %c0_i32_0 : i32, i32, i32
  }
  func.func @transform_1(%arg0: i32) -> (i32, i32) {
    %c0_i32 = arith.constant 0 : i32
    %c0_i32_0 = arith.constant 0 : i32
    %c0_i32_1 = arith.constant 0 : i32
    return %c0_i32, %c0_i32_0 : i32, i32
  }
  func.func @transform_2(%arg0: i32) -> (i32, i32) {
    %c0_i32 = arith.constant 0 : i32
    %c0_i32_0 = arith.constant 0 : i32
    %c0_i32_1 = arith.constant 0 : i32
    return %c0_i32, %c0_i32_0 : i32, i32
  }
  func.func @transform_3(%arg0: i32) -> (i32, i32) {
    %c0_i32 = arith.constant 0 : i32
    %c0_i32_0 = arith.constant 0 : i32
    %c0_i32_1 = arith.constant 0 : i32
    return %c0_i32, %c0_i32_0 : i32, i32
  }
  func.func @transform_4(%arg0: i32) -> (i32, i32, i32) {
    %c0_i32 = arith.constant 0 : i32
    %c0_i32_0 = arith.constant 0 : i32
    %c0_i32_1 = arith.constant 0 : i32
    return %arg0, %c0_i32, %c0_i32_0 : i32, i32, i32
  }
  func.func @transform_5(%arg0: i32) -> (i32, i32, i32) {
    %c0_i32 = arith.constant 0 : i32
    %c0_i32_0 = arith.constant 0 : i32
    %c0_i32_1 = arith.constant 0 : i32
    return %arg0, %c0_i32, %c0_i32_0 : i32, i32, i32
  }
}

</mosaic_0001>

<bundles_post_ra>
// kernel: tpu_custom_call.1
= control target key start
LH: loop header
LB: loop body
LE: loop exit
PB: predicated region body
PF: predicated region fallthrough
CT: control target
= control target key end

     0   :  { %11 = vsyncpa [#allocation5], 0  ;;  %s8130_s0 = inlined_call_operand.vmem [shape: f32[2,256,32], index: 0, kind: input, shape index: {}]   ;;  %s8131_s1 = inlined_call_operand.vmem [shape: f32[1,32], index: 1, kind: input, shape index: {}]   ;;  %s8132_s2 = inlined_call_operand.vmem [shape: f32[1,32], index: 2, kind: input, shape index: {}]   ;;  %s8133_s3 = inlined_call_operand.vmem [shape: bf16[288,32], index: 3, kind: input, shape index: {}]   ;;  %s8134_s4 = inlined_call_operand.vmem [shape: f32[2,256,32], index: 4, kind: output, shape index: {0}]   ;;  %s8135_s5 = inlined_call_operand.hbm [shape: f32[2,2,32], index: 5, kind: output, shape index: {1}]  }
   0x1   :  { %13 = vsyncpa [#allocation5 + $0x1], 0  ;;  %s5673_s18 = smov 0   ;;  %s5675_s19 = smov 0  }
   0x2   :  { %s5677_s20 = smov 0   ;;  %s5679_s1 = smov 0  }
   0x3 LB: > { %s5694_s2 = sadd.s32 4294967295, %s5636_s1   ;;  %s5073_s21 = sadd.s32 4294967294, %s5636_s1   ;;  %s5636_s1 = sphi %s5679_s1, %s8153_s1   ;;  %s5632_s20 = sphi %s5677_s20, %s8152_s20   ;;  %s5628_s19 = sphi %s5675_s19, %s8151_s19   ;;  %s5624_s18 = sphi %s5673_s18, %s8150_s18  }
   0x4   : > { %s5698_s22 = sadd.s32 1, %s5636_s1   ;;  %s141_s23 = sadd.s32 1, %s5632_s20 }
   0x5   : > { %s138_s24 = ssub.s32 %s5636_s1, %s5698_s22  ;;  %p151_p0 = scmp.ne.s32.totalorder %s5632_s20, %s5628_s19 }
   0x6   : > { %p139_p1 = scmp.eq.s32.totalorder %s138_s24, 0  ;;  %p152_p2 = scmp.eq.s32.totalorder %s5694_s2, 1 }
   0x7   : > { %p157_p3 = scmp.ne.s32.totalorder %s5628_s19, %s5624_s18  ;;  %p158_p4 = scmp.eq.s32.totalorder %s5073_s21, 1 }
   0x8   : > { %s5709_s25 = scalar_select %p139_p1, %s5632_s20, %s141_s23  }
   0x9   : > { %p5711_p5 = por %p152_p2, %p151_p0  ;;  %p5715_p6 = por %p158_p4, %p157_p3 }
   0xa   : > { %p5076_p7 = scmp.ge.s32.totalorder %s5636_s1, 1  ;;  %p193_p8 = scmp.lt.s32.totalorder %s5636_s1, 3 }
   0xc   : > { %p194_p9 = pnand %p5076_p7, %p193_p8 }
   0xd   : > { %p226_p10 = scmp.lt.s32.totalorder (!%p194_p9), %s5694_s2, 1  ;;  %s5639_s8 = smov (!%p194_p9), 64  }
   0xe   : > { %197 = sbr.rel (%p194_p9) target bundleno = 843 (0x34b), region = 36  ;;  %s5640_s9 = smov (!%p194_p9), 32  }
   0xf   : > { %s5641_s10 = smov (!%p194_p9), 96  }
  0x13   : > { %vm269_vm0 = vcmask 257024   ;;  %v5638_v0 = vmov 0   ;;  %vm272_vm1 = vcmask 253952   ;;  %vm279_vm2 = vsmask.f32 256  ;;  %s5735_s28 = scalar_select %p226_p10, %s5694_s2, 1 }
  0x14   : > { %270 = vst.msk [vmem:[#allocation2] sm:$0xf] %vm269_vm0, %v5638_v0  ;;  %271 = vst.msk [vmem:[#allocation2 + $0x4] sm:$0xf] %vm269_vm0, %v5638_v0  ;;  %vm335_vm3 = vsmask.f32 7938 }
  0x15   : > { %275 = vst.msk [vmem:[#allocation2 + $0xcc] sm:$0xf] %vm269_vm0, %v5638_v0  ;;  %276 = vst.msk [vmem:[#allocation2 + $0xd0] sm:$0xf] %vm269_vm0, %v5638_v0  ;;  %vm1648_vm4 = vcmask 1042432   ;;  %vm1649_vm6 = vcmask 1046532  }
  0x16   : > { %273 = vst.msk [vmem:[#allocation2 + $0x8] sm:$0x1] %vm272_vm1, %v5638_v0  ;;  %vm5729_vm5 = vmand %vm272_vm1, %vm279_vm2  ;;  %v287_v2 = vld [vmem:[#allocation2 + $0x18] sm:$0x1]  ;;  %v284_v3 = vld [vmem:[#allocation2 + $0xc] sm:$0x1] }
  0x17   : > { %277 = vst.msk [vmem:[#allocation2 + $0xd4] sm:$0x1] %vm272_vm1, %v5638_v0  ;;  %vm5739_vm7 = vmand %vm272_vm1, %vm335_vm3  ;;  %vm487_vm8 = vsmask.f32 4368  ;;  %v288_v5 = vsel %vm5729_vm5, 0, %v287_v2  ;;  %v285_v6 = vsel %vm5729_vm5, 0, %v284_v3 }
  0x18   : > { %v340_v7 = vld [vmem:[#allocation2 + $0x14] sm:$0x1]  ;;  %s5248_s29 = sshll.u32 %s5735_s28, 8  ;;  %289 = vst [vmem:[#allocation2 + $0x18] sm:$0x1] %v288_v5  ;;  %vm5752_vm9 = vmor %vm1648_vm4, %vm1649_vm6  ;;  %vm1519_vm15 = vcmask 519424  }
  0x19   : > { %286 = vst [vmem:[#allocation2 + $0xc] sm:$0x1] %v285_v6  ;;  %v341_v8 = vsel %vm5739_vm7, 0, %v340_v7  ;;  %v343_v9 = vld [vmem:[#allocation2 + $0x20] sm:$0x1]  ;;  %s5761_s7 = scalar_lea.vmem %s8130_s0, %s5248_s29  ;;  %vm5784_vm12 = vmand %vm269_vm0, %vm335_vm3  ;;  %vm2052_vm3 = vcmask 1044224  }
  0x1a   : > { %v290_v10 = vld [vmem:[#allocation2 + $0x24] sm:$0x1]  ;;  %342 = vst [vmem:[#allocation2 + $0x14] sm:$0x1] %v341_v8  ;;  %v344_v12 = vsel %vm5739_vm7, 0, %v343_v9  ;;  %v239_v16 = vld [vmem:[%s5761_s7 + $0x10] sm:$0xff]  ;;  %vm5791_vm13 = vmor %vm279_vm2, %vm487_vm8 }
  0x1b   : > { %v291_v13 = vsel %vm5729_vm5, 0, %v290_v10  ;;  %v346_v14 = vld [vmem:[#allocation2 + $0x2c] sm:$0x1]  ;;  %v317_v15 = vld [vmem:[#allocation2 + $0x90] sm:$0x1]  ;;  %v240_v17 = vld [vmem:[%s5761_s7 + $0x18] sm:$0xff]  ;;  %v5252_v24 = vpack.c.bf16 %v239_v16, %v239_v16 }
  0x1c   : > { %v237_v18 = vld [vmem:[%s5761_s7] sm:$0xff]  ;;  %345 = vst [vmem:[#allocation2 + $0x20] sm:$0x1] %v344_v12  ;;  %292 = vst [vmem:[#allocation2 + $0x24] sm:$0x1] %v291_v13  ;;  %v347_v19 = vsel %vm5739_vm7, 0, %v346_v14  ;;  %v5253_v25 = vpack.c.bf16 %v240_v17, %v240_v17 }
  0x1d   : > { %v318_v20 = vsel %vm5729_vm5, 0, %v317_v15  ;;  %v1552_v21 = vld [vmem:[#allocation2] sm:$0xe]  ;;  %v1553_v22 = vld [vmem:[#allocation2 + $0x4] sm:$0xf]  ;;  %v5250_v26 = vpack.c.bf16 %v237_v18, %v237_v18  ;;  %v507_v33 = vshrl.u32 %v5252_v24, 16 }
  0x1e   : > { %v989_v23 = vld [vmem:[#allocation2 + $0x4] sm:$0xf]  ;;  %348 = vst [vmem:[#allocation2 + $0x2c] sm:$0x1] %v347_v19  ;;  %319 = vst [vmem:[#allocation2 + $0x90] sm:$0x1] %v318_v20 }
  0x1f   : > { %v5114_v27 = vrot.slane %v1552_v21, 9  ;;  %v1653_v28 = vrot.slane %v1553_v22, 5  ;;  %v337_v29 = vld [vmem:[#allocation2 + $0x8] sm:$0x1]  ;;  %vm1036_vm10 = vsmask.f32 3328 }
  0x20   : > { %vm1037_vm11 = vsmask.f32 7440  ;;  %v1049_v30 = vshll.u32 %v989_v23, 16  ;;  %v1053_v31 = vshrl.u32 %v989_v23, 16  ;;  %v338_v32 = vsel %vm5739_vm7, 0, %v337_v29  ;;  %v238_v36 = vld [vmem:[%s5761_s7 + $0x8] sm:$0xff] }
  0x21   : > { %v515_v34 = vshrl.u32 %v5253_v25, 16  ;;  %v518_v35 = vshll.u32 %v5253_v25, 16  ;;  %v1654_v37 = vsel %vm5752_vm9, %v5114_v27, %v1653_v28  ;;  %339 = vst [vmem:[#allocation2 + $0x8] sm:$0x1] %v338_v32  ;;  %v1655_v38 = vrot.slane %v1653_v28, 4  ;;  %v241_v53 = vld [vmem:[%s5761_s7 + $0x20] sm:$0xff]  ;;  %vm5809_vm14 = vmor %vm1036_vm10, %vm1037_vm11 }
  0x22   : > { %v5779_v39 = vrot.slane %v1049_v30, 5  ;;  %v1055_v40 = vrot.slane %v1053_v31, 4  ;;  %v281_v41 = vld [vmem:[#allocation2] sm:$0x1]  ;;  %1763 = vrot.lane.b32.xlu0 %v1654_v37, %s5639_s8  ;;  %v509_v43 = vrot.slane %v507_v33, 7  ;;  %v510_v45 = vshll.u32 %v5252_v24, 16 }
  0x23   : > { %v517_v44 = vrot.slane %v515_v34, 7  ;;  %v5251_v46 = vpack.c.bf16 %v238_v36, %v238_v36  ;;  %v819_v49 = vld [vmem:[#allocation2 + $0x18] sm:$0xf]  ;;  %v490_v50 = vshrl.u32 %v5250_v26, 16  ;;  %v493_v51 = vshll.u32 %v5250_v26, 16  ;;  %v242_v59 = vld [vmem:[%s5761_s7 + $0x28] sm:$0xff] }
  0x24   : > { %v1056_v47 = vor.u32 %v1055_v40, %v5779_v39  ;;  %v282_v52 = vsel %vm5729_vm5, 0, %v281_v41  ;;  %v513_v54 = vrot.slane %v509_v43, 4  ;;  %v512_v57 = vor.u32 %v510_v45, %v509_v43  ;;  %v823_v58 = vld [vmem:[#allocation2 + $0x20] sm:$0x1]  ;;  %v812_v9 = vld [vmem:[#allocation2 + $0xc] sm:$0xf] }
  0x25   : > { %v520_v55 = vor.u32 %v518_v35, %v517_v44  ;;  %v522_v56 = vrot.slane %v517_v44, 4  ;;  %283 = vst [vmem:[#allocation2] sm:$0x1] %v282_v52  ;;  %v492_v61 = vrot.slane %v490_v50, 7  ;;  %v498_v62 = vshrl.u32 %v5251_v46, 16  ;;  %v259_v21 = vld [vmem:[%s5761_s7 + $0xb0] sm:$0xff] }
  0x26   : > { %v1057_v60 = vrot.slane %v1056_v47, 4  ;;  %v501_v63 = vshll.u32 %v5251_v46, 16  ;;  %v820_v2 = vsel %vm5784_vm12, %v512_v57, %v819_v49  ;;  %v5254_v5 = vpack.c.bf16 %v241_v53, %v241_v53  ;;  %v816_v10 = vld [vmem:[#allocation2 + $0x14] sm:$0x1]  ;;  %v826_v32 = vld [vmem:[#allocation2 + $0x24] sm:$0xf] }
  0x27   : > { %v521_v0 = vsel %vm5791_vm13, %v513_v54, %v520_v55  ;;  %v824_v3 = vsel %vm5729_vm5, %v522_v56, %v823_v58  ;;  %821 = vst [vmem:[#allocation2 + $0x18] sm:$0xf] %v820_v2  ;;  %v496_v6 = vrot.slane %v492_v61, 4  ;;  %v500_v7 = vrot.slane %v498_v62, 7  ;;  %v260_v53 = vld [vmem:[%s5761_s7 + $0xb8] sm:$0xff]  ;;  %v261_v55 = vld [vmem:[%s5761_s7 + $0xc0] sm:$0xff] }
  0x28   : > { %822 = vst.msk [vmem:[#allocation2 + $0x1c] sm:$0xf] %vm269_vm0, %v521_v0  ;;  %v495_v8 = vor.u32 %v493_v51, %v492_v61  ;;  %825 = vst [vmem:[#allocation2 + $0x20] sm:$0x1] %v824_v3  ;;  %v5255_v12 = vpack.c.bf16 %v242_v59, %v242_v59  ;;  %v1554_v13 = vld [vmem:[#allocation2 + $0x8] sm:$0x1]  ;;  %v5823_v36 = vpack.c.bf16 %v259_v21, %v259_v21 }
  0x29   : > { %v990_v14 = vld [vmem:[#allocation2 + $0x8] sm:$0x1]  ;;  %v524_v15 = vshrl.u32 %v5254_v5, 16  ;;  %v527_v16 = vshll.u32 %v5254_v5, 16  ;;  %v1656_v17 = vrot.slane %v1554_v13, 5  ;;  %v503_v19 = vor.u32 %v501_v63, %v500_v7  ;;  %s223_s28 = sand.u32 1, %s5628_s19  }
  0x2a   : > { %v1059_v18 = vshll.u32 %v990_v14, 16  ;;  %v505_v20 = vrot.slane %v500_v7, 4  ;;  %v813_v23 = vsel %vm5784_vm12, %v495_v8, %v812_v9  ;;  %v532_v25 = vshrl.u32 %v5255_v12, 16  ;;  %v262_v61 = vld [vmem:[%s5761_s7 + $0xc8] sm:$0xff]  ;;  %s4973_s16 = scalar_lea.sflag [#allocation5], %s223_s28 }
  0x2b   : > { %v526_v24 = vrot.slane %v524_v15, 7  ;;  %v535_v26 = vshll.u32 %v5255_v12, 16  ;;  %v1657_v27 = vsel %vm5752_vm9, %v1655_v38, %v1656_v17  ;;  %v504_v29 = vsel %vm5791_vm13, %v496_v6, %v503_v19  ;;  %814 = vst [vmem:[#allocation2 + $0xc] sm:$0xf] %v813_v23 }
  0x2c   : > { %v1061_v28 = vrot.slane %v1059_v18, 5  ;;  %v988_v30 = vld [vmem:[#allocation2] sm:$0xf]  ;;  %v817_v31 = vsel %vm5729_vm5, %v505_v20, %v816_v10  ;;  %1765 = vrot.lane.b32.xlu1 %v1657_v27, %s5639_s8  ;;  %815 = vst.msk [vmem:[#allocation2 + $0x10] sm:$0xf] %vm269_vm0, %v504_v29  ;;  %v5827_v40 = vrot.slane %v532_v25, 7  ;;  %v5847_v15 = vpack.c.bf16 %v260_v53, %v260_v53 }
  0x2d   : > { %v1040_v33 = vshrl.u32 %v988_v30, 16  ;;  %v1043_v34 = vshll.u32 %v988_v30, 16  ;;  %818 = vst [vmem:[#allocation2 + $0x14] sm:$0x1] %v817_v31  ;;  %v529_v35 = vor.u32 %v527_v16, %v526_v24  ;;  %v530_v38 = vrot.slane %v526_v24, 4  ;;  %v5509_v53 = vld [vmem:[%s8133_s3 + $0x70] sm:$0xff]  }
  0x2e   : > { %v1062_v37 = vsel %vm5809_vm14, %v1057_v60, %v1061_v28  ;;  %v2918_v46 = vld [vmem:[#allocation2 + $0x18] sm:$0xf]  ;;  %v537_v50 = vor.u32 %v535_v26, %v5827_v40  ;;  %v677_v54 = vshrl.u32 %v5823_v36, 16  ;;  %v680_v19 = vshll.u32 %v5823_v36, 16 }
  0x2f   : > { %1425 = vrot.lane.b32.xlu0 %v1062_v37, %s5640_s9  ;;  %v2919_v41 = vld [vmem:[#allocation2 + $0x1c] sm:$0xf]  ;;  %v1042_v43 = vrot.slane %v1040_v33, 4  ;;  %v1045_v44 = vrot.slane %v1043_v34, 5  ;;  %v827_v45 = vsel %vm5784_vm12, %v529_v35, %v826_v32  ;;  %v2584_v47 = vld [vmem:[#allocation2 + $0x18] sm:$0xe]  ;;  %v5854_v20 = vpack.c.bf16 %v261_v55, %v261_v55 }
  0x30   : > { %v2585_v49 = vld [vmem:[#allocation2 + $0x1c] sm:$0xf]  ;;  %828 = vst [vmem:[#allocation2 + $0x24] sm:$0xf] %v827_v45  ;;  %2984 = vrot.lane.b32.xlu1 %v2919_v41, %s5639_s8  ;;  %v3110_v52 = vld [vmem:[#allocation2 + $0x18] sm:$0xf]  ;;  %v538_v60 = vsel %vm5791_vm13, %v530_v38, %v537_v50  ;;  %v5856_v21 = vpack.c.bf16 %v262_v61, %v262_v61 }
  0x31   : > { %v1046_v51 = vor.u32 %v1045_v44, %v1042_v43  ;;  %v5131_v56 = vrot.slane %v2584_v47, 9  ;;  %v5837_v57 = vld [vmem:[#allocation2 + $0x20] sm:$0x1]  ;;  %v3159_v58 = vshrl.u32 %v3110_v52, 16  ;;  %v3162_v59 = vshll.u32 %v3110_v52, 16  ;;  %v5507_v28 = vld [vmem:[%s8133_s3 + $0x78] sm:$0xff]  }
  0x32   : > { %v1892_v62 = vld [vmem:[#allocation2 + $0xc] sm:$0xf]  ;;  %v2686_v2 = vrot.slane %v2585_v49, 5  ;;  %v3111_v3 = vld [vmem:[#allocation2 + $0x1c] sm:$0xf]  ;;  %v2689_v25 = vrot.slane %v5837_v57, 5  ;;  %5282 = vmatprep.subr.bf16.mxu0 %v5507_v28  ;;  %5448 = vmatprep.subr.bf16.mxu1 %v5507_v28 }
  0x33   : > { %2982 = vrot.lane.b32.xlu0 %v2918_v46, %s5639_s8  ;;  %v2581_v63 = vld [vmem:[#allocation2 + $0xc] sm:$0xe]  ;;  %v1047_v0 = vrot.slane %v1046_v51, 4  ;;  %829 = vst.msk [vmem:[#allocation2 + $0x28] sm:$0xf] %vm269_vm0, %v538_v60  ;;  %v3161_v8 = vrot.slane %v3159_v58, 4 }
  0x34   : > { %v1893_v5 = vld [vmem:[#allocation2 + $0x10] sm:$0xf]  ;;  %v5130_v7 = vrot.slane %v2581_v63, 9  ;;  %v2583_v10 = vld [vmem:[#allocation2 + $0x14] sm:$0x1]  ;;  %v3164_v13 = vrot.slane %v3162_v59, 5  ;;  %v2687_v35 = vsel %vm5752_vm9, %v5131_v56, %v2686_v2 }
  0x35   : > { %v2582_v6 = vld [vmem:[#allocation2 + $0x10] sm:$0xf]  ;;  %1958 = vrot.lane.b32.xlu1 %v1893_v5, %s5641_s10  ;;  %v5845_v12 = vld [vmem:[#allocation2 + $0xc] sm:$0xe]  ;;  %v3112_v14 = vld [vmem:[#allocation2 + $0x20] sm:$0x1]  ;;  %v1052_v29 = vsel %vm5809_vm14, %v1047_v0, %v5779_v39 }
  0x36   : > { %v2679_v9 = vrot.slane %v2582_v6, 5  ;;  %v2682_v16 = vrot.slane %v2583_v10, 5  ;;  %v5849_v17 = vld [vmem:[#allocation2 + $0x10] sm:$0xf]  ;;  %v5851_v18 = vld [vmem:[#allocation2 + $0x14] sm:$0x1]  ;;  %v3165_v30 = vor.u32 %v3164_v13, %v3161_v8 }
  0x37   : > { %1956 = vrot.lane.b32.xlu0 %v1892_v62, %s5641_s10  ;;  %v1660_v26 = vrot.slane %v5849_v17, 5  ;;  %v991_v27 = vld [vmem:[#allocation2 + $0xc] sm:$0xf]  ;;  %v3168_v31 = vshll.u32 %v3111_v3, 16  ;;  %v3172_v32 = vshrl.u32 %v3111_v3, 16  ;;  %v5508_v34 = vld [vmem:[%s8133_s3 + $0x38] sm:$0xff]  }
  0x38   : > { %v2680_v23 = vsel %vm5752_vm9, %v5130_v7, %v2679_v9  ;;  %v2681_v24 = vrot.slane %v2679_v9, 4  ;;  %v992_v33 = vld [vmem:[#allocation2 + $0x10] sm:$0xf]  ;;  %v2688_v37 = vrot.slane %v2686_v2, 4  ;;  %v5115_v38 = vrot.slane %v5845_v12, 9  ;;  %5283 = vmatpush3.bf16.msra.mxu0 %v5508_v34  ;;  %5456 = vmatpush3.bf16.msra.mxu1 %v5508_v34  ;;  %v264_v60 = vld [vmem:[%s5761_s7 + $0xd8] sm:$0xff] }
  0x39   : > { %2789 = vrot.lane.b32.xlu1 %v2680_v23, %s5640_s9  ;;  %v1064_v41 = vshrl.u32 %v991_v27, 16  ;;  %v5878_v43 = vrot.slane %v3168_v31, 5  ;;  %v3174_v44 = vrot.slane %v3172_v32, 4  ;;  %v3178_v45 = vshll.u32 %v3112_v14, 16  ;;  %v993_v46 = vld [vmem:[#allocation2 + $0x14] sm:$0x1]  ;;  %5284 = vmatprep.subr.bf16.mxu0 %v5509_v53 }
  0x3a   : > { %v2683_v39 = vsel %vm5752_vm9, %v2681_v24, %v2682_v16  ;;  %v1662_v47 = vrot.slane %v1660_v26, 4  ;;  %v1663_v49 = vrot.slane %v5851_v18, 5  ;;  %v1067_v50 = vshll.u32 %v991_v27, 16  ;;  %v263_v52 = vld [vmem:[%s5761_s7 + $0xd0] sm:$0xff]  ;;  %v3113_v59 = vld [vmem:[#allocation2 + $0x24] sm:$0xf]  ;;  %5449 = vmatprep.subr.bf16.mxu1 %v5509_v53 }
  0x3b   : > { %1423 = vrot.lane.b32.xlu0 %v1052_v29, %s5640_s9  ;;  %v1073_v51 = vshll.u32 %v992_v33, 16  ;;  %v5886_v55 = vrot.slane %v3165_v30, 4  ;;  %v3175_v56 = vor.u32 %v3174_v44, %v5878_v43  ;;  %v1066_v57 = vrot.slane %v1064_v41, 4  ;;  %v830_v2 = vld [vmem:[#allocation2 + $0x2c] sm:$0x1] }
  0x3c   : > { %v1077_v58 = vshrl.u32 %v992_v33, 16  ;;  %v1069_v61 = vrot.slane %v1067_v50, 5  ;;  %v1083_v63 = vshll.u32 %v993_v46, 16  ;;  %v539_v0 = vrot.slane %v5827_v40, 4  ;;  %v3114_v9 = vld [vmem:[#allocation2 + $0x28] sm:$0xf] }
  0x3d   : > { %2791 = vrot.lane.b32.xlu1 %v2683_v39, %s5640_s9  ;;  %v5891_v62 = vrot.slane %v1073_v51, 5  ;;  %v2690_v3 = vsel %vm5752_vm9, %v2688_v37, %v2689_v25  ;;  %v5896_v5 = vrot.slane %v3178_v45, 5  ;;  %v5898_v7 = vpack.c.bf16 %v263_v52, %v263_v52  ;;  %v5510_v40 = vld [vmem:[%s8133_s3 + $0x30] sm:$0xff]   ;;  %v5511_v23 = vld [vmem:[%s8133_s3 + $0x68] sm:$0xff]   ;;  %v373_v29 = vld [vmem:[#allocation2 + $0x98] sm:$0x1] }
  0x3e   : > { %v1079_v6 = vrot.slane %v1077_v58, 4  ;;  %v5901_v8 = vrot.slane %v3175_v56, 4  ;;  %v3183_v10 = vshrl.u32 %v3113_v59, 16  ;;  %v3186_v12 = vshll.u32 %v3113_v59, 16  ;;  %v889_v28 = vld [vmem:[#allocation2 + $0x90] sm:$0xf]  ;;  %5285 = vmatpush3.bf16.msra.mxu0 %v5510_v40  ;;  %5457 = vmatpush3.bf16.msra.mxu1 %v5510_v40 }
  0x3f   : > { %2793 = vrot.lane.b32.xlu0 %v2687_v35, %s5640_s9  ;;  %v5903_v13 = vpack.c.bf16 %v264_v60, %v264_v60  ;;  %v1661_v14 = vsel %vm5752_vm9, %v5115_v38, %v1660_v26  ;;  %v1664_v16 = vsel %vm5752_vm9, %v1662_v47, %v1663_v49  ;;  %v1070_v17 = vor.u32 %v1069_v61, %v1066_v57  ;;  %v320_v34 = vld [vmem:[#allocation2 + $0x9c] sm:$0x1]  ;;  %v376_v45 = vld [vmem:[#allocation2 + $0xa4] sm:$0x1]  ;;  %v323_v49 = vld [vmem:[#allocation2 + $0xa8] sm:$0x1] }
  0x40   : > { %v831_v18 = vsel %vm5729_vm5, %v539_v0, %v830_v2  ;;  %v3171_v24 = vsel %vm5809_vm14, %v5886_v55, %v5878_v43  ;;  %v1080_v25 = vor.u32 %v1079_v6, %v5891_v62  ;;  %v5923_v26 = vrot.slane %v1083_v63, 5  ;;  %5286 = vmatprep.subr.bf16.mxu0 %v5511_v23  ;;  %5450 = vmatprep.subr.bf16.mxu1 %v5511_v23  ;;  %v5513_v50 = vld [vmem:[%s8133_s3 + $0x60] sm:$0xff]   ;;  %v2921_v23 = vld [vmem:[#allocation2 + $0x28] sm:$0xf] }
  0x41   : > { %2795 = vrot.lane.b32.xlu1 %v2690_v3, %s5640_s9  ;;  %832 = vst [vmem:[#allocation2 + $0x2c] sm:$0x1] %v831_v18  ;;  %v679_v27 = vrot.slane %v677_v54, 7  ;;  %v3192_v30 = vshll.u32 %v3114_v9, 16  ;;  %v3196_v31 = vshrl.u32 %v3114_v9, 16  ;;  %v685_v32 = vshrl.u32 %v5847_v15, 16 }
  0x42   : > { %v688_v33 = vshll.u32 %v5847_v15, 16  ;;  %v3181_v35 = vsel %vm5809_vm14, %v5901_v8, %v5896_v5  ;;  %v5934_v54 = vrot.slane %v3183_v10, 4  ;;  %v5936_v37 = vrot.slane %v3186_v12, 5  ;;  %v5512_v15 = vld [vmem:[%s8133_s3 + $0x28] sm:$0xff]   ;;  %v5515_v5 = vld [vmem:[%s8133_s3 + $0x58] sm:$0xff]  }
  0x43   : > { %1767 = vrot.lane.b32.xlu0 %v1661_v14, %s5639_s8  ;;  %v682_v38 = vor.u32 %v680_v19, %v679_v27  ;;  %v1071_v41 = vrot.slane %v1070_v17, 4  ;;  %v683_v39 = vrot.slane %v679_v27, 4  ;;  %v5943_v43 = vrot.slane %v685_v32, 7  ;;  %5287 = vmatpush3.bf16.msra.mxu0 %v5512_v15  ;;  %v2920_v40 = vld [vmem:[#allocation2 + $0x24] sm:$0xf]  ;;  %v5516_v18 = vld [vmem:[%s8133_s3 + $0x18] sm:$0xff]  }
  0x44   : > { %v374_v44 = vsel %vm5739_vm7, 0, %v373_v29  ;;  %v1081_v46 = vrot.slane %v1080_v25, 4  ;;  %v321_v19 = vsel %vm5729_vm5, 0, %v320_v34  ;;  %v694_v47 = vshrl.u32 %v5854_v20, 16  ;;  %5458 = vmatpush3.bf16.msra.mxu1 %v5512_v15  ;;  %5288 = vmatprep.subr.bf16.mxu0 %v5513_v50  ;;  %v925_v17 = vld [vmem:[#allocation2 + $0x4] sm:$0xf] }
  0x45   : > { %1769 = vrot.lane.b32.xlu1 %v1664_v16, %s5639_s8  ;;  %v890_v36 = vsel %vm5784_vm12, %v682_v38, %v889_v28  ;;  %375 = vst [vmem:[#allocation2 + $0x98] sm:$0x1] %v374_v44  ;;  %v5956_v51 = vrot.slane %v3192_v30, 5  ;;  %v5958_v52 = vrot.slane %v3196_v31, 4  ;;  %v690_v53 = vor.u32 %v688_v33, %v5943_v43  ;;  %322 = vst [vmem:[#allocation2 + $0x9c] sm:$0x1] %v321_v19 }
  0x46   : > { %891 = vst [vmem:[#allocation2 + $0x90] sm:$0xf] %v890_v36  ;;  %v697_v55 = vshll.u32 %v5854_v20, 16  ;;  %v696_v56 = vrot.slane %v694_v47, 7  ;;  %v702_v57 = vshrl.u32 %v5856_v21, 16  ;;  %v705_v58 = vshll.u32 %v5856_v21, 16  ;;  %5451 = vmatprep.subr.bf16.mxu1 %v5513_v50 }
  0x47   : > { %3542 = vrot.lane.b32.xlu0 %v3171_v24, %s5641_s10  ;;  %v377_v59 = vsel %vm5739_vm7, 0, %v376_v45  ;;  %v1076_v60 = vsel %vm5809_vm14, %v1071_v41, %v5891_v62  ;;  %v691_v61 = vsel %vm5791_vm13, %v683_v39, %v690_v53  ;;  %v324_v20 = vsel %vm5729_vm5, 0, %v323_v49  ;;  %v5514_v21 = vld [vmem:[%s8133_s3 + $0x20] sm:$0xff]   ;;  %957 = vst.msk [vmem:[#allocation3 + $0xc] sm:$0xf] %vm269_vm0, %v925_v17  ;;  %v5518_v38 = vld [vmem:[%s8133_s3 + $0x10] sm:$0xff]  }
  0x48   : > { %378 = vst [vmem:[#allocation2 + $0xa4] sm:$0x1] %v377_v59  ;;  %v711_v63 = vshrl.u32 %v5898_v7, 16  ;;  %v1086_v62 = vsel %vm5809_vm14, %v1081_v46, %v5923_v26  ;;  %892 = vst.msk [vmem:[#allocation2 + $0x94] sm:$0xf] %vm269_vm0, %v691_v61  ;;  %v692_v0 = vrot.slane %v5943_v43, 4  ;;  %v699_v8 = vor.u32 %v697_v55, %v696_v56  ;;  %5289 = vmatpush3.bf16.msra.mxu0 %v5514_v21 }
  0x49   : > { %3544 = vrot.lane.b32.xlu1 %v3181_v35, %s5641_s10  ;;  %v700_v2 = vrot.slane %v696_v56, 4  ;;  %v704_v3 = vrot.slane %v702_v57, 7  ;;  %325 = vst [vmem:[#allocation2 + $0xa8] sm:$0x1] %v324_v20  ;;  %v3115_v6 = vld [vmem:[#allocation2 + $0x2c] sm:$0x1]  ;;  %5459 = vmatpush3.bf16.msra.mxu1 %v5514_v21  ;;  %v3199_v24 = vor.u32 %v5958_v52, %v5956_v51 }
  0x4a   : > { %v713_v9 = vrot.slane %v711_v63, 7  ;;  %v714_v10 = vshll.u32 %v5898_v7, 16  ;;  %v719_v12 = vshrl.u32 %v5903_v13, 16  ;;  %v722_v16 = vshll.u32 %v5903_v13, 16  ;;  %5290 = vmatprep.subr.bf16.mxu0 %v5515_v5  ;;  %v5517_v13 = vld [vmem:[%s8133_s3 + $0x50] sm:$0xff]   ;;  %5452 = vmatprep.subr.bf16.mxu1 %v5515_v5  ;;  %v5519_v43 = vld [vmem:[%s8133_s3 + $0x48] sm:$0xff]  }
  0x4b   : > { %1427 = vrot.lane.b32.xlu0 %v1076_v60, %s5640_s9  ;;  %v707_v14 = vor.u32 %v705_v58, %v704_v3  ;;  %v3189_v7 = vor.u32 %v5936_v37, %v5934_v54  ;;  %v709_v26 = vrot.slane %v704_v3, 4  ;;  %v3202_v28 = vshll.u32 %v3115_v6, 16  ;;  %v1894_v15 = vld [vmem:[#allocation2 + $0x18] sm:$0xf]  ;;  %v1895_v44 = vld [vmem:[#allocation2 + $0x1c] sm:$0xf] }
  0x4c   : > { %v893_v25 = vld [vmem:[#allocation2 + $0x98] sm:$0x1]  ;;  %v5998_v27 = vrot.slane %v719_v12, 7  ;;  %v896_v32 = vld [vmem:[#allocation2 + $0x9c] sm:$0xf]  ;;  %v717_v33 = vrot.slane %v713_v9, 4  ;;  %v716_v37 = vor.u32 %v714_v10, %v713_v9  ;;  %5291 = vmatpush3.bf16.msra.mxu0 %v5516_v18 }
  0x4d   : > { %1429 = vrot.lane.b32.xlu1 %v1086_v62, %s5640_s9  ;;  %v1024_v29 = vld [vmem:[#allocation2 + $0x90] sm:$0xf]  ;;  %v894_v30 = vsel %vm5729_vm5, %v692_v0, %v893_v25  ;;  %v708_v31 = vsel %vm5791_vm13, %v700_v2, %v707_v14  ;;  %v897_v54 = vsel %vm5784_vm12, %v699_v8, %v896_v32  ;;  %5460 = vmatpush3.bf16.msra.mxu1 %v5516_v18  ;;  %v3190_v45 = vrot.slane %v3189_v7, 4  ;;  %v5520_v59 = vld [vmem:[%s8133_s3 + $0x8] sm:$0xff]   ;;  %v5521_v20 = vld [vmem:[%s8133_s3 + $0x40] sm:$0xff]  }
  0x4e   : > { %v1328_v34 = vshrl.u32 %v1024_v29, 16  ;;  %v1331_v35 = vshll.u32 %v1024_v29, 16  ;;  %895 = vst [vmem:[#allocation2 + $0x98] sm:$0x1] %v894_v30  ;;  %899 = vst.msk [vmem:[#allocation2 + $0xa0] sm:$0xf] %vm269_vm0, %v708_v31  ;;  %v724_v39 = vor.u32 %v722_v16, %v5998_v27  ;;  %5292 = vmatprep.subr.bf16.mxu0 %v5517_v13  ;;  %5453 = vmatprep.subr.bf16.mxu1 %v5517_v13 }
  0x4f   : > { %2986 = vrot.lane.b32.xlu0 %v2920_v40, %s5639_s8  ;;  %898 = vst [vmem:[#allocation2 + $0x9c] sm:$0xf] %v897_v54  ;;  %v900_v41 = vld [vmem:[#allocation2 + $0xa4] sm:$0x1]  ;;  %v1025_v46 = vld [vmem:[#allocation2 + $0x94] sm:$0xf]  ;;  %v3195_v63 = vsel %vm5809_vm14, %v3190_v45, %v5956_v51 }
  0x50   : > { %v1330_v36 = vrot.slane %v1328_v34, 4  ;;  %v1333_v19 = vrot.slane %v1331_v35, 5  ;;  %v901_v47 = vsel %vm5729_vm5, %v709_v26, %v900_v41  ;;  %v3200_v49 = vrot.slane %v3199_v24, 4  ;;  %v903_v53 = vld [vmem:[#allocation2 + $0xa8] sm:$0xf]  ;;  %5293 = vmatpush3.bf16.msra.mxu0 %v5518_v38  ;;  %v5522_v51 = vld [vmem:[%s8133_s3] sm:$0xff]  }
  0x51   : > { %2988 = vrot.lane.b32.xlu1 %v2921_v23, %s5639_s8  ;;  %v1337_v50 = vshll.u32 %v1025_v46, 16  ;;  %v1341_v52 = vshrl.u32 %v1025_v46, 16  ;;  %902 = vst [vmem:[#allocation2 + $0xa4] sm:$0x1] %v901_v47  ;;  %v725_v55 = vsel %vm5791_vm13, %v717_v33, %v724_v39  ;;  %v3204_v56 = vrot.slane %v3202_v28, 5  ;;  %5461 = vmatpush3.bf16.msra.mxu1 %v5518_v38  ;;  %v243_v28 = vld [vmem:[%s5761_s7 + $0x30] sm:$0xff] }
  0x52   : > { %v1334_v57 = vor.u32 %v1333_v19, %v1330_v36  ;;  %v904_v58 = vsel %vm5784_vm12, %v716_v37, %v903_v53  ;;  %906 = vst.msk [vmem:[#allocation2 + $0xac] sm:$0xf] %vm269_vm0, %v725_v55  ;;  %5294 = vmatprep.subr.bf16.mxu0 %v5519_v43  ;;  %v994_v62 = vld [vmem:[#allocation2 + $0x18] sm:$0xf]  ;;  %v995_v0 = vld [vmem:[#allocation2 + $0x1c] sm:$0xf]  ;;  %5454 = vmatprep.subr.bf16.mxu1 %v5519_v43 }
  0x53   : > { %1960 = vrot.lane.b32.xlu0 %v1894_v15, %s5641_s10  ;;  %v1339_v60 = vrot.slane %v1337_v50, 5  ;;  %v1343_v61 = vrot.slane %v1341_v52, 4  ;;  %905 = vst [vmem:[#allocation2 + $0xa8] sm:$0xf] %v904_v58  ;;  %v1589_v6 = vld [vmem:[#allocation2 + $0x94] sm:$0xf]  ;;  %v3205_v8 = vsel %vm5809_vm14, %v3200_v49, %v3204_v56  ;;  %v5256_v41 = vpack.c.bf16 %v243_v28, %v243_v28 }
  0x54   : > { %v1335_v21 = vrot.slane %v1334_v57, 4  ;;  %5295 = vmatpush3.bf16.msra.mxu0 %v5520_v59  ;;  %v1088_v14 = vshrl.u32 %v994_v62, 16  ;;  %v1091_v16 = vshll.u32 %v994_v62, 16  ;;  %v379_v24 = vld [vmem:[#allocation2 + $0xb0] sm:$0x1]  ;;  %v1737_v26 = vrot.slane %v1589_v6, 5 }
  0x55   : > { %1962 = vrot.lane.b32.xlu1 %v1895_v44, %s5641_s10  ;;  %v1026_v2 = vld [vmem:[#allocation2 + $0x98] sm:$0x1]  ;;  %v1344_v3 = vor.u32 %v1343_v61, %v1339_v60  ;;  %v2618_v5 = vld [vmem:[#allocation2 + $0xa0] sm:$0xf]  ;;  %5462 = vmatpush3.bf16.msra.mxu1 %v5520_v59  ;;  %v1588_v25 = vld [vmem:[#allocation2 + $0x90] sm:$0xe] }
  0x56   : > { %v1347_v9 = vshll.u32 %v1026_v2, 16  ;;  %v2617_v10 = vld [vmem:[#allocation2 + $0x9c] sm:$0xe]  ;;  %v2763_v12 = vrot.slane %v2618_v5, 5  ;;  %5296 = vmatprep.subr.bf16.mxu0 %v5521_v20  ;;  %v1340_v17 = vsel %vm5809_vm14, %v1335_v21, %v1339_v60  ;;  %5455 = vmatprep.subr.bf16.mxu1 %v5521_v20  ;;  %v1097_v13 = vshll.u32 %v995_v0, 16  ;;  %v265_v6 = vld [vmem:[%s5761_s7 + $0xe0] sm:$0xff] }
  0x57   : > { %3546 = vrot.lane.b32.xlu0 %v3195_v63, %s5641_s10  ;;  %v1345_v40 = vrot.slane %v1344_v3, 4  ;;  %v5142_v23 = vrot.slane %v2617_v10, 9  ;;  %v244_v29 = vld [vmem:[%s5761_s7 + $0x38] sm:$0xff]  ;;  %v1101_v34 = vshrl.u32 %v995_v0, 16  ;;  %v1090_v35 = vrot.slane %v1088_v14, 4 }
  0x58   : > { %v1349_v18 = vrot.slane %v1347_v9, 5  ;;  %v2619_v7 = vld [vmem:[#allocation2 + $0xa4] sm:$0x1]  ;;  %v2765_v31 = vrot.slane %v2763_v12, 4  ;;  %v1590_v33 = vld [vmem:[#allocation2 + $0x98] sm:$0x1]  ;;  %5297 = vmatpush3.bf16.msra.mxu0 %v5522_v51  ;;  %v5257_v39 = vpack.c.bf16 %v244_v29, %v244_v29  ;;  %v5278_v29 = vpack.c.bf16 %v265_v6, %v265_v6 }
  0x59   : > { %3548 = vrot.lane.b32.xlu1 %v3205_v8, %s5641_s10  ;;  %v2766_v32 = vrot.slane %v2619_v7, 5  ;;  %5463 = vmatpush3.bf16.msra.mxu1 %v5522_v51  ;;  %v1093_v54 = vrot.slane %v1091_v16, 5  ;;  %v2764_v37 = vsel %vm5752_vm9, %v5142_v23, %v2763_v12  ;;  %v5126_v38 = vrot.slane %v1588_v25, 9  ;;  %v293_v15 = vld [vmem:[#allocation2 + $0x30] sm:$0x1] }
  0x5a   : > { %v1350_v30 = vsel %vm5809_vm14, %v1345_v40, %v1349_v18  ;;  %v1739_v43 = vrot.slane %v1737_v26, 4  ;;  %v1740_v44 = vrot.slane %v1590_v33, 5  ;;  %v380_v45 = vsel %vm5739_vm7, 0, %v379_v24  ;;  %v996_v19 = vld [vmem:[#allocation2 + $0x20] sm:$0x1] }
  0x5b   : > { %1471 = vrot.lane.b32.xlu0 %v1340_v17, %s5640_s9  ;;  %v2767_v46 = vsel %vm5752_vm9, %v2765_v31, %v2766_v32  ;;  %v6060_v36 = vrot.slane %v1097_v13, 5  ;;  %v1103_v47 = vrot.slane %v1101_v34, 4  ;;  %381 = vst [vmem:[#allocation2 + $0xb0] sm:$0x1] %v380_v45  ;;  %v1094_v49 = vor.u32 %v1093_v54, %v1090_v35  ;;  %v349_v52 = vld [vmem:[#allocation2 + $0x38] sm:$0x1] }
  0x5c   : > { %v294_v50 = vsel %vm5729_vm5, 0, %v293_v15  ;;  %v1738_v53 = vsel %vm5752_vm9, %v5126_v38, %v1737_v26  ;;  %v3146_v55 = vld [vmem:[#allocation2 + $0xa8] sm:$0xf]  ;;  %v541_v56 = vshrl.u32 %v5256_v41, 16  ;;  %v544_v57 = vshll.u32 %v5256_v41, 16 }
  0x5d   : > { %1473 = vrot.lane.b32.xlu1 %v1350_v30, %s5640_s9  ;;  %295 = vst [vmem:[#allocation2 + $0x30] sm:$0x1] %v294_v50  ;;  %v549_v58 = vshrl.u32 %v5257_v39, 16  ;;  %v1741_v59 = vsel %vm5752_vm9, %v1739_v43, %v1740_v44  ;;  %v726_v60 = vrot.slane %v5998_v27, 4  ;;  %v1107_v61 = vshll.u32 %v996_v19, 16  ;;  %v266_v30 = vld [vmem:[%s5761_s7 + $0xe8] sm:$0xff] }
  0x5e   : > { %v552_v20 = vshll.u32 %v5257_v39, 16  ;;  %v1104_v63 = vor.u32 %v1103_v47, %v6060_v36  ;;  %v3147_v21 = vld [vmem:[#allocation2 + $0xac] sm:$0xf]  ;;  %v543_v62 = vrot.slane %v541_v56, 7  ;;  %v350_v2 = vsel %vm5739_vm7, 0, %v349_v52 }
  0x5f   : > { %2837 = vrot.lane.b32.xlu0 %v2764_v37, %s5640_s9  ;;  %v551_v0 = vrot.slane %v549_v58, 7  ;;  %v1095_v3 = vrot.slane %v1094_v49, 4  ;;  %v3447_v5 = vshrl.u32 %v3146_v55, 16  ;;  %351 = vst [vmem:[#allocation2 + $0x38] sm:$0x1] %v350_v2  ;;  %v3450_v9 = vshll.u32 %v3146_v55, 16 }
  0x60   : > { %v2942_v8 = vld [vmem:[#allocation2 + $0xa8] sm:$0xf]  ;;  %v546_v10 = vor.u32 %v544_v57, %v543_v62  ;;  %v547_v27 = vrot.slane %v543_v62, 4  ;;  %v3456_v40 = vshll.u32 %v3147_v21, 16  ;;  %v3460_v14 = vshrl.u32 %v3147_v21, 16 }
  0x61   : > { %2839 = vrot.lane.b32.xlu1 %v2767_v46, %s5640_s9  ;;  %v554_v12 = vor.u32 %v552_v20, %v551_v0  ;;  %v2588_v51 = vld [vmem:[#allocation2 + $0x28] sm:$0xf]  ;;  %v2943_v17 = vld [vmem:[#allocation2 + $0xac] sm:$0xf]  ;;  %v1105_v18 = vrot.slane %v1104_v63, 4  ;;  %v1109_v23 = vrot.slane %v1107_v61, 5  ;;  %v1100_v25 = vsel %vm5809_vm14, %v1095_v3, %v6060_v36 }
  0x62   : > { %v907_v16 = vld [vmem:[#allocation2 + $0xb0] sm:$0x1]  ;;  %v556_v13 = vrot.slane %v551_v0, 4  ;;  %v326_v28 = vld [vmem:[#allocation2 + $0xb4] sm:$0x1]  ;;  %v2693_v32 = vrot.slane %v2588_v51, 5  ;;  %v5279_v44 = vpack.c.bf16 %v266_v30, %v266_v30 }
  0x63   : > { %1811 = vrot.lane.b32.xlu0 %v1738_v53, %s5639_s8  ;;  %v908_v7 = vsel %vm5729_vm5, %v726_v60, %v907_v16  ;;  %v555_v24 = vsel %vm5791_vm13, %v547_v27, %v554_v12  ;;  %v2587_v31 = vld [vmem:[#allocation2 + $0x24] sm:$0xe]  ;;  %v3449_v33 = vrot.slane %v3447_v5, 4  ;;  %v3452_v34 = vrot.slane %v3450_v9, 5  ;;  %v2589_v54 = vld [vmem:[#allocation2 + $0x2c] sm:$0x1] }
  0x64   : > { %909 = vst [vmem:[#allocation2 + $0xb0] sm:$0x1] %v908_v7  ;;  %v833_v26 = vld [vmem:[#allocation2 + $0x30] sm:$0xf]  ;;  %836 = vst.msk [vmem:[#allocation2 + $0x34] sm:$0xf] %vm269_vm0, %v555_v24  ;;  %v1110_v15 = vsel %vm5809_vm14, %v1105_v18, %v1109_v23 }
  0x65   : > { %1813 = vrot.lane.b32.xlu1 %v1741_v59, %s5639_s8  ;;  %v834_v35 = vsel %vm5784_vm12, %v546_v10, %v833_v26  ;;  %v6090_v37 = vrot.slane %v3456_v40, 5  ;;  %v3462_v38 = vrot.slane %v3460_v14, 4  ;;  %v1916_v41 = vld [vmem:[#allocation2 + $0x9c] sm:$0xf]  ;;  %v327_v43 = vsel %vm5729_vm5, 0, %v326_v28 }
  0x66   : > { %835 = vst [vmem:[#allocation2 + $0x30] sm:$0xf] %v834_v35  ;;  %v837_v39 = vld [vmem:[#allocation2 + $0x38] sm:$0x1]  ;;  %v5132_v45 = vrot.slane %v2587_v31, 9  ;;  %v728_v19 = vshrl.u32 %v5278_v29, 16  ;;  %v3453_v52 = vor.u32 %v3452_v34, %v3449_v33 }
  0x67   : > { %3030 = vrot.lane.b32.xlu0 %v2942_v8, %s5639_s8  ;;  %v6097_v46 = vld [vmem:[#allocation2 + $0x1c] sm:$0xf]  ;;  %v838_v36 = vsel %vm5729_vm5, %v556_v13, %v837_v39  ;;  %328 = vst [vmem:[#allocation2 + $0xb4] sm:$0x1] %v327_v43  ;;  %v1917_v47 = vld [vmem:[#allocation2 + $0xa0] sm:$0xf]  ;;  %v3463_v55 = vor.u32 %v3462_v38, %v6090_v37 }
  0x68   : > { %v2695_v49 = vrot.slane %v2693_v32, 4  ;;  %v2696_v50 = vrot.slane %v2589_v54, 5  ;;  %839 = vst [vmem:[#allocation2 + $0x38] sm:$0x1] %v838_v36  ;;  %v731_v53 = vshll.u32 %v5278_v29, 16  ;;  %v730_v57 = vrot.slane %v728_v19, 7 }
  0x69   : > { %3032 = vrot.lane.b32.xlu1 %v2943_v17, %s5639_s8  ;;  %v1027_v56 = vld [vmem:[#allocation2 + $0x9c] sm:$0xf]  ;;  %v924_v58 = vld [vmem:[#allocation2] sm:$0xf]  ;;  %v736_v61 = vshrl.u32 %v5279_v44, 16  ;;  %v2694_v20 = vsel %vm5752_vm9, %v5132_v45, %v2693_v32  ;;  %v3454_v2 = vrot.slane %v3453_v52, 4 }
  0x6a   : > { %v1028_v60 = vld [vmem:[#allocation2 + $0xa0] sm:$0xf]  ;;  %956 = vst.msk [vmem:[#allocation3] sm:$0xf] %vm269_vm0, %v924_v58  ;;  %v1558_v21 = vld [vmem:[#allocation2 + $0x18] sm:$0xe]  ;;  %v733_v62 = vor.u32 %v731_v53, %v730_v57  ;;  %v2697_v0 = vsel %vm5752_vm9, %v2695_v49, %v2696_v50 }
  0x6b   : > { %1431 = vrot.lane.b32.xlu0 %v1100_v25, %s5640_s9  ;;  %v3148_v59 = vld [vmem:[#allocation2 + $0xb0] sm:$0x1]  ;;  %v1667_v3 = vrot.slane %v6097_v46, 5  ;;  %v1560_v5 = vld [vmem:[#allocation2 + $0x20] sm:$0x1]  ;;  %v739_v8 = vshll.u32 %v5279_v44, 16  ;;  %v3459_v26 = vsel %vm5809_vm14, %v3454_v2, %v6090_v37 }
  0x6c   : > { %v3466_v63 = vshll.u32 %v3148_v59, 16  ;;  %v3117_v6 = vld [vmem:[#allocation2 + $0x34] sm:$0xf]  ;;  %v3464_v9 = vrot.slane %v3463_v55, 4  ;;  %v1352_v27 = vshrl.u32 %v1027_v56, 16  ;;  %v1355_v12 = vshll.u32 %v1027_v56, 16 }
  0x6d   : > { %1433 = vrot.lane.b32.xlu1 %v1110_v15, %s5640_s9  ;;  %v3116_v10 = vld [vmem:[#allocation2 + $0x30] sm:$0xf]  ;;  %v1361_v51 = vshll.u32 %v1028_v60, 16  ;;  %v1365_v14 = vshrl.u32 %v1028_v60, 16  ;;  %v734_v17 = vrot.slane %v730_v57, 4  ;;  %v6111_v18 = vrot.slane %v736_v61, 7 }
  0x6e   : > { %v3468_v40 = vrot.slane %v3466_v63, 5  ;;  %v910_v16 = vld [vmem:[#allocation2 + $0xb4] sm:$0xf]  ;;  %v5116_v23 = vrot.slane %v1558_v21, 9  ;;  %v3216_v7 = vshll.u32 %v3117_v6, 16  ;;  %v3220_v24 = vshrl.u32 %v3117_v6, 16 }
  0x6f   : > { %2004 = vrot.lane.b32.xlu0 %v1916_v41, %s5641_s10  ;;  %v911_v25 = vsel %vm5784_vm12, %v733_v62, %v910_v16  ;;  %v3207_v13 = vshrl.u32 %v3116_v10, 16  ;;  %v3210_v28 = vshll.u32 %v3116_v10, 16  ;;  %v1029_v29 = vld [vmem:[#allocation2 + $0xa4] sm:$0x1]  ;;  %v741_v30 = vor.u32 %v739_v8, %v6111_v18  ;;  %v6125_v15 = vld [vmem:[#allocation2 + $0xa8] sm:$0xe] }
  0x70   : > { %912 = vst [vmem:[#allocation2 + $0xb4] sm:$0xf] %v911_v25  ;;  %v1669_v31 = vrot.slane %v1667_v3, 4  ;;  %v1670_v32 = vrot.slane %v1560_v5, 5  ;;  %v1354_v33 = vrot.slane %v1352_v27, 4  ;;  %v1357_v34 = vrot.slane %v1355_v12, 5 }
  0x71   : > { %2006 = vrot.lane.b32.xlu1 %v1917_v47, %s5641_s10  ;;  %v3469_v35 = vsel %vm5809_vm14, %v3464_v9, %v3468_v40  ;;  %v6123_v54 = vrot.slane %v1361_v51, 5  ;;  %v1367_v38 = vrot.slane %v1365_v14, 4  ;;  %v742_v37 = vsel %vm5791_vm13, %v734_v17, %v741_v30  ;;  %v382_v41 = vld [vmem:[#allocation2 + $0xbc] sm:$0x1]  ;;  %v6132_v45 = vld [vmem:[#allocation2 + $0xac] sm:$0xf] }
  0x72   : > { %v6130_v39 = vrot.slane %v3216_v7, 5  ;;  %v3222_v43 = vrot.slane %v3220_v24, 4  ;;  %v1371_v44 = vshll.u32 %v1029_v29, 16  ;;  %913 = vst.msk [vmem:[#allocation2 + $0xb8] sm:$0xf] %vm269_vm0, %v742_v37  ;;  %v1668_v46 = vsel %vm5752_vm9, %v5116_v23, %v1667_v3  ;;  %v245_v5 = vld [vmem:[%s5761_s7 + $0x40] sm:$0xff] }
  0x73   : > { %2797 = vrot.lane.b32.xlu0 %v2694_v20, %s5640_s9  ;;  %v3209_v36 = vrot.slane %v3207_v13, 4  ;;  %v3212_v19 = vrot.slane %v3210_v28, 5  ;;  %v6137_v47 = vld [vmem:[#allocation2 + $0x9c] sm:$0xe]  ;;  %v1671_v49 = vsel %vm5752_vm9, %v1669_v31, %v1670_v32  ;;  %v6142_v50 = vld [vmem:[#allocation2 + $0xa0] sm:$0xf]  ;;  %v1358_v55 = vor.u32 %v1357_v34, %v1354_v33 }
  0x74   : > { %v2086_v52 = vld [vmem:[#allocation2 + $0x10] sm:$0xf]  ;;  %v3118_v53 = vld [vmem:[#allocation2 + $0x38] sm:$0x1]  ;;  %v1368_v56 = vor.u32 %v1367_v38, %v6123_v54  ;;  %v2770_v57 = vrot.slane %v6132_v45, 5  ;;  %v383_v58 = vsel %vm5739_vm7, 0, %v382_v41  ;;  %v3223_v60 = vor.u32 %v3222_v43, %v6130_v39 }
  0x75   : > { %2799 = vrot.lane.b32.xlu1 %v2697_v0, %s5640_s9  ;;  %v2085_v59 = vld [vmem:[#allocation2 + $0xc] sm:$0xf]  ;;  %v6150_v61 = vrot.slane %v1371_v44, 5  ;;  %v5143_v20 = vrot.slane %v6125_v15, 9  ;;  %v5127_v63 = vrot.slane %v6137_v47, 9  ;;  %v3213_v0 = vor.u32 %v3212_v19, %v3209_v36 }
  0x76   : > { %v6154_v21 = vld [vmem:[#allocation2 + $0x24] sm:$0xf]  ;;  %384 = vst [vmem:[#allocation2 + $0xbc] sm:$0x1] %v383_v58  ;;  %v2922_v62 = vld [vmem:[#allocation2 + $0x30] sm:$0xf]  ;;  %v5258_v34 = vpack.c.bf16 %v245_v5, %v245_v5 }
  0x77   : > { %3590 = vrot.lane.b32.xlu0 %v3459_v26, %s5641_s10  ;;  %v1744_v2 = vrot.slane %v6142_v50, 5  ;;  %v2143_v3 = vshll.u32 %v2086_v52, 16  ;;  %v246_v6 = vld [vmem:[%s5761_s7 + $0x48] sm:$0xff]  ;;  %v3226_v8 = vshll.u32 %v3118_v53, 16  ;;  %v2147_v9 = vshrl.u32 %v2086_v52, 16 }
  0x78   : > { %v2134_v10 = vshrl.u32 %v2085_v59, 16  ;;  %v2137_v27 = vshll.u32 %v2085_v59, 16  ;;  %v2923_v12 = vld [vmem:[#allocation2 + $0x34] sm:$0xf]  ;;  %v1896_v51 = vld [vmem:[#allocation2 + $0x24] sm:$0xf] }
  0x79   : > { %3592 = vrot.lane.b32.xlu1 %v3469_v35, %s5641_s10  ;;  %v6160_v40 = vrot.slane %v1358_v55, 4  ;;  %v6162_v14 = vrot.slane %v1368_v56, 4  ;;  %v6166_v16 = vrot.slane %v2770_v57, 4  ;;  %v1112_v17 = vshrl.u32 %v6154_v21, 16  ;;  %v6171_v24 = vld [vmem:[#allocation2 + $0x28] sm:$0xf] }
  0x7a   : > { %v3224_v23 = vrot.slane %v3223_v60, 4  ;;  %v743_v7 = vrot.slane %v6111_v18, 4  ;;  %v2145_v25 = vrot.slane %v2143_v3, 5  ;;  %v2136_v26 = vrot.slane %v2134_v10, 4  ;;  %v1897_v13 = vld [vmem:[#allocation2 + $0x28] sm:$0xf] }
  0x7b   : > { %1771 = vrot.lane.b32.xlu0 %v1668_v46, %s5639_s8  ;;  %v3214_v28 = vrot.slane %v3213_v0, 4  ;;  %v2139_v29 = vrot.slane %v2137_v27, 5  ;;  %v2087_v30 = vld [vmem:[#allocation2 + $0x14] sm:$0x1]  ;;  %v3228_v31 = vrot.slane %v3226_v8, 5  ;;  %v2149_v32 = vrot.slane %v2147_v9, 4 }
  0x7c   : > { %v296_v33 = vld [vmem:[#allocation2 + $0x3c] sm:$0x1]  ;;  %v5259_v35 = vpack.c.bf16 %v246_v6, %v246_v6  ;;  %v1364_v18 = vsel %vm5809_vm14, %v6160_v40, %v6123_v54  ;;  %v1115_v38 = vshll.u32 %v6154_v21, 16  ;;  %v1121_v37 = vshll.u32 %v6171_v24, 16  ;;  %v2088_v44 = vld [vmem:[#allocation2 + $0x18] sm:$0xf] }
  0x7d   : > { %1773 = vrot.lane.b32.xlu1 %v1671_v49, %s5639_s8  ;;  %v914_v41 = vld [vmem:[#allocation2 + $0xbc] sm:$0x1]  ;;  %v2140_v43 = vor.u32 %v2139_v29, %v2136_v26  ;;  %v1125_v46 = vshrl.u32 %v6171_v24, 16  ;;  %v2150_v19 = vor.u32 %v2149_v32, %v2145_v25  ;;  %v2153_v49 = vshll.u32 %v2087_v30, 16  ;;  %v2622_v59 = vld [vmem:[#allocation2 + $0xb0] sm:$0x1] }
  0x7e   : > { %v915_v36 = vsel %vm5729_vm5, %v743_v7, %v914_v41  ;;  %v2089_v52 = vld [vmem:[#allocation2 + $0x1c] sm:$0xf]  ;;  %v3219_v54 = vsel %vm5809_vm14, %v3214_v28, %v6130_v39  ;;  %v1374_v53 = vsel %vm5809_vm14, %v6162_v14, %v6150_v61  ;;  %v297_v56 = vsel %vm5729_vm5, 0, %v296_v33  ;;  %v2090_v0 = vld [vmem:[#allocation2 + $0x20] sm:$0x1] }
  0x7f   : > { %2990 = vrot.lane.b32.xlu0 %v2922_v62, %s5639_s8  ;;  %916 = vst [vmem:[#allocation2 + $0xbc] sm:$0x1] %v915_v36  ;;  %v2141_v55 = vrot.slane %v2140_v43, 4  ;;  %v3229_v58 = vsel %vm5809_vm14, %v3224_v23, %v3228_v31  ;;  %v2151_v60 = vrot.slane %v2150_v19, 4  ;;  %v2155_v62 = vrot.slane %v2153_v49, 5 }
  0x80   : > { %298 = vst [vmem:[#allocation2 + $0x3c] sm:$0x1] %v297_v56  ;;  %v558_v39 = vshrl.u32 %v5258_v34, 16  ;;  %v561_v61 = vshll.u32 %v5258_v34, 16  ;;  %v566_v5 = vshrl.u32 %v5259_v35, 16  ;;  %v569_v6 = vshll.u32 %v5259_v35, 16 }
  0x81   : > { %2992 = vrot.lane.b32.xlu1 %v2923_v12, %s5639_s8  ;;  %v2146_v3 = vsel %vm5809_vm14, %v2141_v55, %v2145_v25  ;;  %v2156_v8 = vsel %vm5809_vm14, %v2151_v60, %v2155_v62  ;;  %v2158_v10 = vshrl.u32 %v2088_v44, 16  ;;  %v2161_v27 = vshll.u32 %v2088_v44, 16  ;;  %v352_v23 = vld [vmem:[#allocation2 + $0x44] sm:$0x1]  ;;  %v926_v49 = vld [vmem:[#allocation2 + $0xc] sm:$0xf] }
  0x82   : > { %2549 = vst.msk [vmem:[#allocation3 + $0x4] sm:$0xf] %vm269_vm0, %v2146_v3  ;;  %v560_v9 = vrot.slane %v558_v39, 7  ;;  %2550 = vst.msk [vmem:[#allocation3 + $0x10] sm:$0xf] %vm269_vm0, %v2156_v8  ;;  %v6203_v12 = vrot.slane %v566_v5, 7  ;;  %v2771_v31 = vsel %vm5752_vm9, %v5143_v20, %v2770_v57 }
  0x83   : > { %1964 = vrot.lane.b32.xlu0 %v1896_v51, %s5641_s10  ;;  %v2167_v51 = vshll.u32 %v2089_v52, 16  ;;  %v2171_v40 = vshrl.u32 %v2089_v52, 16  ;;  %v2177_v14 = vshll.u32 %v2090_v0, 16  ;;  %v2160_v25 = vrot.slane %v2158_v10, 4  ;;  %v1593_v32 = vld [vmem:[#allocation2 + $0xa4] sm:$0x1] }
  0x84   : > { %v563_v7 = vor.u32 %v561_v61, %v560_v9  ;;  %v564_v24 = vrot.slane %v560_v9, 4  ;;  %v2163_v26 = vrot.slane %v2161_v27, 5  ;;  %v571_v28 = vor.u32 %v569_v6, %v6203_v12  ;;  %v999_v57 = vld [vmem:[#allocation2 + $0x2c] sm:$0x1]  ;;  %958 = vst.msk [vmem:[#allocation3 + $0x18] sm:$0xf] %vm269_vm0, %v926_v49 }
  0x85   : > { %1966 = vrot.lane.b32.xlu1 %v1897_v13, %s5641_s10  ;;  %v2773_v13 = vrot.slane %v2622_v59, 5  ;;  %v2169_v29 = vrot.slane %v2167_v51, 5  ;;  %v2173_v30 = vrot.slane %v2171_v40, 4  ;;  %v1114_v33 = vrot.slane %v1112_v17, 4  ;;  %v927_v56 = vld [vmem:[#allocation2 + $0x10] sm:$0xf] }
  0x86   : > { %v2164_v34 = vor.u32 %v2163_v26, %v2160_v25  ;;  %v353_v35 = vsel %vm5739_vm7, 0, %v352_v23  ;;  %v1117_v41 = vrot.slane %v1115_v38, 5  ;;  %v2179_v45 = vrot.slane %v2177_v14, 5  ;;  %v3150_v47 = vld [vmem:[#allocation2 + $0xb8] sm:$0xf] }
  0x87   : > { %3550 = vrot.lane.b32.xlu0 %v3219_v54, %s5641_s10  ;;  %v840_v43 = vld [vmem:[#allocation2 + $0x3c] sm:$0xf]  ;;  %v2174_v44 = vor.u32 %v2173_v30, %v2169_v29  ;;  %354 = vst [vmem:[#allocation2 + $0x44] sm:$0x1] %v353_v35  ;;  %v6221_v15 = vrot.slane %v1121_v37, 5  ;;  %v1127_v20 = vrot.slane %v1125_v46, 4  ;;  %v2774_v38 = vsel %vm5752_vm9, %v6166_v16, %v2773_v13 }
  0x88   : > { %v841_v21 = vsel %vm5784_vm12, %v563_v7, %v840_v43  ;;  %v2165_v17 = vrot.slane %v2164_v34, 4  ;;  %v1746_v36 = vrot.slane %v1744_v2, 4  ;;  %v1747_v19 = vrot.slane %v1593_v32, 5  ;;  %v3149_v46 = vld [vmem:[#allocation2 + $0xb4] sm:$0xf]  ;;  %v268_v62 = vld [vmem:[%s5761_s7 + $0xf8] sm:$0xff] }
  0x89   : > { %3552 = vrot.lane.b32.xlu1 %v3229_v58, %s5641_s10  ;;  %842 = vst [vmem:[#allocation2 + $0x3c] sm:$0xf] %v841_v21  ;;  %v2175_v37 = vrot.slane %v2174_v44, 4  ;;  %v1745_v16 = vsel %vm5752_vm9, %v5127_v63, %v1744_v2  ;;  %v1118_v54 = vor.u32 %v1117_v41, %v1114_v33  ;;  %v267_v58 = vld [vmem:[%s5761_s7 + $0xf0] sm:$0xff]  ;;  %v1128_v50 = vor.u32 %v1127_v20, %v6221_v15  ;;  %v2945_v51 = vld [vmem:[#allocation2 + $0xb8] sm:$0xf] }
  0x8a   : > { %v2170_v52 = vsel %vm5809_vm14, %v2165_v17, %v2169_v29  ;;  %v1131_v59 = vshll.u32 %v999_v57, 16  ;;  %959 = vst.msk [vmem:[#allocation3 + $0x24] sm:$0xf] %vm269_vm0, %v927_v56  ;;  %v1748_v63 = vsel %vm5752_vm9, %v1746_v36, %v1747_v19  ;;  %v3471_v2 = vshrl.u32 %v3149_v46, 16  ;;  %v6254_v39 = vld [vmem:[#allocation2 + $0x34] sm:$0xf] }
  0x8b   : > { %1475 = vrot.lane.b32.xlu0 %v1364_v18, %s5640_s9  ;;  %v572_v18 = vsel %vm5791_vm13, %v564_v24, %v571_v28  ;;  %2551 = vst.msk [vmem:[#allocation3 + $0x1c] sm:$0xf] %vm269_vm0, %v2170_v52  ;;  %v2180_v55 = vsel %vm5809_vm14, %v2175_v37, %v2179_v45  ;;  %v3474_v60 = vshll.u32 %v3149_v46, 16  ;;  %v6256_v3 = vpack.c.bf16 %v267_v58, %v267_v58  ;;  %v2944_v61 = vld [vmem:[#allocation2 + $0xb4] sm:$0xf] }
  0x8c   : > { %843 = vst.msk [vmem:[#allocation2 + $0x40] sm:$0xf] %vm269_vm0, %v572_v18  ;;  %2552 = vst.msk [vmem:[#allocation3 + $0x28] sm:$0xf] %vm269_vm0, %v2180_v55  ;;  %v1119_v5 = vrot.slane %v1118_v54, 4  ;;  %v3480_v6 = vshll.u32 %v3150_v47, 16  ;;  %v5281_v23 = vpack.c.bf16 %v268_v62, %v268_v62 }
  0x8d   : > { %1477 = vrot.lane.b32.xlu1 %v1374_v53, %s5640_s9  ;;  %v573_v53 = vrot.slane %v6203_v12, 4  ;;  %v3484_v8 = vshrl.u32 %v3150_v47, 16  ;;  %v1129_v10 = vrot.slane %v1128_v50, 4  ;;  %v1133_v27 = vrot.slane %v1131_v59, 5  ;;  %v247_v12 = vld [vmem:[%s5761_s7 + $0x50] sm:$0xff] }
  0x8e   : > { %v844_v0 = vld [vmem:[#allocation2 + $0x44] sm:$0x1]  ;;  %v3473_v40 = vrot.slane %v3471_v2, 4  ;;  %v3476_v14 = vrot.slane %v3474_v60, 5  ;;  %v2590_v7 = vld [vmem:[#allocation2 + $0x30] sm:$0xe]  ;;  %v1124_v26 = vsel %vm5809_vm14, %v1119_v5, %v6221_v15  ;;  %v6273_v32 = vpack.c.bf16 %v247_v12, %v247_v12 }
  0x8f   : > { %2841 = vrot.lane.b32.xlu0 %v2771_v31, %s5640_s9  ;;  %v845_v9 = vsel %vm5729_vm5, %v573_v53, %v844_v0  ;;  %v2700_v24 = vrot.slane %v6254_v39, 5  ;;  %v745_v25 = vshrl.u32 %v6256_v3, 16  ;;  %v2592_v13 = vld [vmem:[#allocation2 + $0x38] sm:$0x1]  ;;  %v6268_v28 = vrot.slane %v3480_v6, 5 }
  0x90   : > { %846 = vst [vmem:[#allocation2 + $0x44] sm:$0x1] %v845_v9  ;;  %v3486_v29 = vrot.slane %v3484_v8, 4  ;;  %v1562_v30 = vld [vmem:[#allocation2 + $0x28] sm:$0xf]  ;;  %v1134_v33 = vsel %vm5809_vm14, %v1129_v10, %v1133_v27  ;;  %v5133_v35 = vrot.slane %v2590_v7, 9  ;;  %v3477_v41 = vor.u32 %v3476_v14, %v3473_v40 }
  0x91   : > { %2843 = vrot.lane.b32.xlu1 %v2774_v38, %s5640_s9  ;;  %v6271_v31 = vld [vmem:[#allocation2 + $0xa8] sm:$0xf]  ;;  %v3151_v43 = vld [vmem:[#allocation2 + $0xbc] sm:$0x1]  ;;  %v329_v18 = vld [vmem:[#allocation2 + $0xc0] sm:$0x1] }
  0x92   : > { %v1918_v34 = vld [vmem:[#allocation2 + $0xa8] sm:$0xf]  ;;  %v753_v44 = vshrl.u32 %v5281_v23, 16  ;;  %v2702_v15 = vrot.slane %v2700_v24, 4  ;;  %v2703_v57 = vrot.slane %v2592_v13, 5  ;;  %v330_v21 = vsel %vm5729_vm5, 0, %v329_v18 }
  0x93   : > { %1815 = vrot.lane.b32.xlu0 %v1745_v16, %s5639_s8  ;;  %v1561_v20 = vld [vmem:[#allocation2 + $0x24] sm:$0xe]  ;;  %v747_v17 = vrot.slane %v745_v25, 7  ;;  %v3487_v38 = vor.u32 %v3486_v29, %v6268_v28  ;;  %v1674_v36 = vrot.slane %v1562_v30, 5  ;;  %v6283_v19 = vld [vmem:[#allocation2 + $0x2c] sm:$0x1]  ;;  %v2701_v50 = vsel %vm5752_vm9, %v5133_v35, %v2700_v24 }
  0x94   : > { %v6278_v45 = vpop.permute.xlu0 %1763  ;;  %331 = vst [vmem:[#allocation2 + $0xc0] sm:$0x1] %v330_v21  ;;  %v748_v37 = vshll.u32 %v6256_v3, 16  ;;  %v6286_v49 = vrot.slane %v753_v44, 7  ;;  %v3490_v46 = vshll.u32 %v3151_v43, 16  ;;  %v1376_v52 = vshrl.u32 %v6271_v31, 16 }
  0x95   : > { %1817 = vrot.lane.b32.xlu1 %v1748_v63, %s5639_s8  ;;  %v751_v16 = vrot.slane %v747_v17, 4  ;;  %v756_v54 = vshll.u32 %v5281_v23, 16  ;;  %v1919_v53 = vld [vmem:[#allocation2 + $0xac] sm:$0xf]  ;;  %vm1859_vm2 = vcmask 781824   ;;  %v3478_v55 = vrot.slane %v3477_v41, 4 }
  0x96   : > { %v5117_v56 = vrot.slane %v1561_v20, 9  ;;  %v1677_v59 = vrot.slane %v6283_v19, 5  ;;  %v3120_v47 = vld [vmem:[#allocation2 + $0x40] sm:$0xf]  ;;  %v948_v2 = vld [vmem:[#allocation2 + $0x90] sm:$0xf]  ;;  %v2704_v60 = vsel %vm5752_vm9, %v2702_v15, %v2703_v57  ;;  %v750_v3 = vor.u32 %v748_v37, %v747_v17 }
  0x97   : > { %3034 = vrot.lane.b32.xlu0 %v2944_v61, %s5639_s8  ;;  %v758_v63 = vor.u32 %v756_v54, %v6286_v49  ;;  %v3488_v62 = vrot.slane %v3487_v38, 4  ;;  %v6297_v39 = vrot.slane %v1674_v36, 4  ;;  %v3119_v0 = vld [vmem:[#allocation2 + $0x3c] sm:$0xf]  ;;  %980 = vst.msk [vmem:[#allocation3 + $0x120] sm:$0xf] %vm269_vm0, %v948_v2  ;;  %v3483_v12 = vsel %vm5809_vm14, %v3478_v55, %v6268_v28 }
  0x98   : > { %v949_v61 = vld [vmem:[#allocation2 + $0x94] sm:$0xf]  ;;  %v3492_v6 = vrot.slane %v3490_v46, 5  ;;  %v6301_v8 = vld [vmem:[#allocation2 + $0xac] sm:$0xf]  ;;  %v6303_v9 = vrot.slane %v1376_v52, 4 }
  0x99   : > { %3036 = vrot.lane.b32.xlu1 %v2945_v51, %s5639_s8  ;;  %v1379_v10 = vshll.u32 %v6271_v31, 16  ;;  %v759_v27 = vsel %vm5791_vm13, %v751_v16, %v758_v63  ;;  %981 = vst.msk [vmem:[#allocation3 + $0x12c] sm:$0xf] %vm269_vm0, %v949_v61  ;;  %v1675_v51 = vsel %vm5752_vm9, %v5117_v56, %v1674_v36  ;;  %v3240_v40 = vshll.u32 %v3120_v47, 16  ;;  %v2121_v23 = vld [vmem:[#allocation2 + $0x9c] sm:$0xf] }
  0x9a   : > { %v3244_v14 = vshrl.u32 %v3120_v47, 16  ;;  %920 = vst.msk [vmem:[#allocation2 + $0xc4] sm:$0xf] %vm269_vm0, %v759_v27  ;;  %v2122_v7 = vld [vmem:[#allocation2 + $0xa0] sm:$0xf]  ;;  %v3231_v25 = vshrl.u32 %v3119_v0, 16  ;;  %v3493_v57 = vsel %vm5809_vm14, %v3488_v62, %v3492_v6  ;;  %v1678_v62 = vsel %vm5752_vm9, %v6297_v39, %v1677_v59 }
  0x9b   : > { %1435 = vrot.lane.b32.xlu0 %v1124_v26, %s5640_s9  ;;  %v917_v26 = vld [vmem:[#allocation2 + $0xc0] sm:$0xf]  ;;  %v2422_v13 = vshrl.u32 %v2121_v23, 16  ;;  %v2425_v29 = vshll.u32 %v2121_v23, 16  ;;  %v2431_v28 = vshll.u32 %v2122_v7, 16  ;;  %v3234_v30 = vshll.u32 %v3119_v0, 16 }
  0x9c   : > { %v1385_v31 = vshll.u32 %v6301_v8, 16  ;;  %v2123_v35 = vld [vmem:[#allocation2 + $0xa4] sm:$0x1]  ;;  %v6324_v43 = vrot.slane %v1379_v10, 5  ;;  %v1389_v20 = vshrl.u32 %v6301_v8, 16  ;;  %v248_v36 = vld [vmem:[%s5761_s7 + $0x58] sm:$0xff] }
  0x9d   : > { %1437 = vrot.lane.b32.xlu1 %v1134_v33, %s5640_s9  ;;  %v918_v33 = vsel %vm5784_vm12, %v750_v3, %v917_v26  ;;  %v2424_v18 = vrot.slane %v2422_v13, 4  ;;  %v2427_v44 = vrot.slane %v2425_v29, 5  ;;  %v2433_v15 = vrot.slane %v2431_v28, 5  ;;  %v1032_v21 = vld [vmem:[#allocation2 + $0xb0] sm:$0x1] }
  0x9e   : > { %v1766_v58 = vpop.permute.xlu1 %1765  ;;  %919 = vst [vmem:[#allocation2 + $0xc0] sm:$0xf] %v918_v33  ;;  %v2441_v38 = vshll.u32 %v2123_v35, 16  ;;  %v6331_v46 = vrot.slane %v3231_v25, 4  ;;  %v6333_v52 = vrot.slane %v3240_v40, 5  ;;  %v6335_v16 = vrot.slane %v3244_v14, 4 }
  0x9f   : > { %2008 = vrot.lane.b32.xlu0 %v1918_v34, %s5641_s10  ;;  %v2435_v34 = vshrl.u32 %v2122_v7, 16  ;;  %v2428_v54 = vor.u32 %v2427_v44, %v2424_v18  ;;  %v3236_v55 = vrot.slane %v3234_v30, 5  ;;  %v575_v2 = vshrl.u32 %v6273_v32, 16  ;;  %v3121_v0 = vld [vmem:[#allocation2 + $0x44] sm:$0x1] }
  0xa0   : > { %v1395_v3 = vshll.u32 %v1032_v21, 16  ;;  %v1382_v6 = vor.u32 %v6324_v43, %v6303_v9  ;;  %v6350_v8 = vrot.slane %v1385_v31, 5  ;;  %v928_v27 = vld [vmem:[#allocation2 + $0x18] sm:$0xf]  ;;  %v929_v19 = vld [vmem:[#allocation2 + $0x1c] sm:$0xf]  ;;  %v3247_v39 = vor.u32 %v6335_v16, %v6333_v52 }
  0xa1   : > { %v1426_v5 = vpop.permute.xlu0 %1425  ;;  %2010 = vrot.lane.b32.xlu1 %v1919_v53, %s5641_s10  ;;  %v2437_v17 = vrot.slane %v2435_v34, 4  ;;  %v385_v53 = vld [vmem:[#allocation2 + $0xc8] sm:$0x1]  ;;  %v2429_v63 = vrot.slane %v2428_v54, 4  ;;  %v3237_v59 = vor.u32 %v3236_v55, %v6331_v46  ;;  %v6358_v40 = vrot.slane %v1389_v20, 4 }
  0xa2   : > { %1521 = vst.msk [vmem:[#allocation3 + $0xc] sm:$0xf] %vm1519_vm15, %v1426_v5  ;;  %v6316_v24 = vpop.permute.xlu1 %2984  ;;  %v3250_v14 = vshll.u32 %v3121_v0, 16  ;;  %v760_v23 = vrot.slane %v6286_v49, 4  ;;  %v299_v7 = vld [vmem:[#allocation2 + $0x48] sm:$0x1] }
  0xa3   : > { %2801 = vrot.lane.b32.xlu0 %v2701_v50, %s5640_s9  ;;  %1861 = vst.msk [vmem:[#allocation3 + $0xc] sm:$0xf] %vm1859_vm2, %v1766_v58  ;;  %v2438_v56 = vor.u32 %v2437_v17, %v2433_v15  ;;  %v2443_v58 = vrot.slane %v2441_v38, 5  ;;  %v386_v50 = vsel %vm5739_vm7, 0, %v385_v53  ;;  %v2434_v10 = vsel %vm5809_vm14, %v2429_v63, %v2433_v15  ;;  %v2925_v13 = vld [vmem:[#allocation2 + $0x40] sm:$0xf] }
  0xa4   : > { %387 = vst [vmem:[#allocation2 + $0xc8] sm:$0x1] %v386_v50  ;;  %2573 = vst.msk [vmem:[#allocation3 + $0x124] sm:$0xf] %vm269_vm0, %v2434_v10  ;;  %v577_v25 = vrot.slane %v575_v2, 7  ;;  %v6370_v28 = vrot.slane %v1395_v3, 5 }
  0xa5   : > { %v2983_v41 = vpop.permute.xlu0 %2982  ;;  %2803 = vrot.lane.b32.xlu1 %v2704_v60, %s5640_s9  ;;  %v5261_v60 = vpack.c.bf16 %v248_v36, %v248_v36  ;;  %v2439_v61 = vrot.slane %v2438_v56, 4  ;;  %960 = vst.msk [vmem:[#allocation3 + $0x30] sm:$0xf] %vm269_vm0, %v928_v27  ;;  %961 = vst.msk [vmem:[#allocation3 + $0x3c] sm:$0xf] %vm269_vm0, %v929_v19  ;;  %v300_v30 = vsel %vm5729_vm5, 0, %v299_v7 }
  0xa6   : > { %v1898_v29 = vld [vmem:[#allocation2 + $0x30] sm:$0xf]  ;;  %v6377_v49 = vrot.slane %v1382_v6, 4  ;;  %301 = vst [vmem:[#allocation2 + $0x48] sm:$0x1] %v300_v30  ;;  %v578_v34 = vshll.u32 %v6273_v32, 16 }
  0xa7   : > { %v1959_v37 = vpop.permute.xlu1 %1958  ;;  %3594 = vrot.lane.b32.xlu0 %v3483_v12, %s5641_s10  ;;  %v2924_v12 = vld [vmem:[#allocation2 + $0x3c] sm:$0xf]  ;;  %v2444_v9 = vsel %vm5809_vm14, %v2439_v61, %v2443_v58  ;;  %v583_v26 = vshrl.u32 %v5261_v60, 16  ;;  %v586_v31 = vshll.u32 %v5261_v60, 16  ;;  %v581_v35 = vrot.slane %v577_v25, 4 }
  0xa8   : > { %2054 = vst.msk [vmem:[#allocation3 + $0xc] sm:$0xf] %vm2052_vm3, %v1959_v37  ;;  %v2091_v43 = vld [vmem:[#allocation2 + $0x24] sm:$0xf]  ;;  %v1899_v18 = vld [vmem:[#allocation2 + $0x34] sm:$0xf]  ;;  %v1388_v7 = vsel %vm5809_vm14, %v6377_v49, %v6350_v8 }
  0xa9   : > { %3596 = vrot.lane.b32.xlu1 %v3493_v57, %s5641_s10  ;;  %v1957_v47 = vpop.permute.xlu0 %1956  ;;  %2574 = vst.msk [vmem:[#allocation3 + $0x130] sm:$0xf] %vm269_vm0, %v2444_v9  ;;  %v3238_v44 = vrot.slane %v3237_v59, 4  ;;  %v6386_v15 = vld [vmem:[#allocation2 + $0xb8] sm:$0xf]  ;;  %v2182_v21 = vshrl.u32 %v2091_v43, 16 }
  0xaa   : > { %v2092_v20 = vld [vmem:[#allocation2 + $0x28] sm:$0xf]  ;;  %v3248_v17 = vrot.slane %v3247_v39, 4  ;;  %v3252_v38 = vrot.slane %v3250_v14, 5  ;;  %v2093_v46 = vld [vmem:[#allocation2 + $0x2c] sm:$0x1] }
  0xab   : > { %v2790_v5 = vpop.permute.xlu1 %2789  ;;  %1775 = vrot.lane.b32.xlu0 %v1675_v51, %s5639_s8  ;;  %v921_v57 = vld [vmem:[#allocation2 + $0xc8] sm:$0x1]  ;;  %v355_v16 = vld [vmem:[#allocation2 + $0x50] sm:$0x1]  ;;  %v2184_v53 = vrot.slane %v2182_v21, 4  ;;  %v2185_v55 = vshll.u32 %v2091_v43, 16 }
  0xac   : > { %2885 = vst.msk [vmem:[#allocation3 + $0x4] sm:$0xf] %vm1519_vm15, %v2790_v5  ;;  %v922_v36 = vsel %vm5729_vm5, %v760_v23, %v921_v57  ;;  %v1000_v54 = vld [vmem:[#allocation2 + $0x30] sm:$0xf]  ;;  %v2191_v56 = vshll.u32 %v2092_v20, 16  ;;  %v2201_v2 = vshll.u32 %v2093_v46, 16  ;;  %v3253_v39 = vsel %vm5809_vm14, %v3248_v17, %v3252_v38 }
  0xad   : > { %3078 = vst.msk [vmem:[#allocation3 + $0x4] sm:$0xf] %vm1859_vm2, %v2983_v41  ;;  %1777 = vrot.lane.b32.xlu1 %v1678_v62, %s5639_s8  ;;  %v1424_v51 = vpop.permute.xlu0 %1423  ;;  %v6380_v41 = vrot.slane %v583_v26, 7  ;;  %923 = vst [vmem:[#allocation2 + $0xc8] sm:$0x1] %v922_v36  ;;  %v356_v60 = vsel %vm5739_vm7, 0, %v355_v16  ;;  %v3243_v62 = vsel %vm5809_vm14, %v3238_v44, %v6333_v52 }
  0xae   : > { %1520 = vst.msk [vmem:[#allocation3] sm:$0xf] %vm1519_vm15, %v1424_v51  ;;  %v2623_v50 = vld [vmem:[#allocation2 + $0xb4] sm:$0xe]  ;;  %v2187_v3 = vrot.slane %v2185_v55, 5  ;;  %v2193_v61 = vrot.slane %v2191_v56, 5 }
  0xaf   : > { %1860 = vst.msk [vmem:[#allocation3] sm:$0xf] %vm1859_vm2, %v6278_v45  ;;  %v2792_v33 = vpop.permute.xlu1 %2791  ;;  %2994 = vrot.lane.b32.xlu0 %v2924_v12, %s5639_s8  ;;  %v1392_v45 = vor.u32 %v6358_v40, %v6350_v8  ;;  %v588_v37 = vor.u32 %v586_v31, %v6380_v41  ;;  %v1001_v0 = vld [vmem:[#allocation2 + $0x34] sm:$0xf]  ;;  %357 = vst [vmem:[#allocation2 + $0x50] sm:$0x1] %v356_v60 }
  0xb0   : > { %2053 = vst.msk [vmem:[#allocation3] sm:$0xf] %vm2052_vm3, %v1957_v47  ;;  %v580_v47 = vor.u32 %v578_v34, %v577_v25  ;;  %v2777_v27 = vrot.slane %v6386_v15, 5  ;;  %v2625_v19 = vld [vmem:[#allocation2 + $0xbc] sm:$0x1]  ;;  %v1136_v12 = vshrl.u32 %v1000_v54, 16  ;;  %v2188_v9 = vor.u32 %v2187_v3, %v2184_v53 }
  0xb1   : > { %2886 = vst.msk [vmem:[#allocation3 + $0x10] sm:$0xf] %vm1519_vm15, %v2792_v33  ;;  %2996 = vrot.lane.b32.xlu1 %v2925_v13, %s5639_s8  ;;  %v2794_v32 = vpop.permute.xlu0 %2793  ;;  %v589_v63 = vsel %vm5791_vm13, %v581_v35, %v588_v37  ;;  %v1393_v10 = vrot.slane %v1392_v45, 4  ;;  %v1139_v59 = vshll.u32 %v1000_v54, 16  ;;  %v1595_v52 = vld [vmem:[#allocation2 + $0xac] sm:$0xf] }
  0xb2   : > { %3079 = vst.msk [vmem:[#allocation3 + $0x10] sm:$0xf] %vm1859_vm2, %v6316_v24  ;;  %v2195_v24 = vshrl.u32 %v2092_v20, 16  ;;  %v847_v40 = vld [vmem:[#allocation2 + $0x48] sm:$0xf]  ;;  %v2203_v14 = vrot.slane %v2201_v2, 5 }
  0xb3   : > { %2887 = vst.msk [vmem:[#allocation3 + $0x1c] sm:$0xf] %vm1519_vm15, %v2794_v32  ;;  %v2796_v58 = vpop.permute.xlu1 %2795  ;;  %1968 = vrot.lane.b32.xlu0 %v1898_v29, %s5641_s10  ;;  %v5144_v25 = vrot.slane %v2623_v50, 9  ;;  %v1145_v26 = vshll.u32 %v1001_v0, 16  ;;  %v848_v13 = vsel %vm5784_vm12, %v580_v47, %v847_v40  ;;  %v1149_v29 = vshrl.u32 %v1001_v0, 16 }
  0xb4   : > { %2888 = vst.msk [vmem:[#allocation3 + $0x28] sm:$0xf] %vm1519_vm15, %v2796_v58  ;;  %v2197_v5 = vrot.slane %v2195_v24, 4  ;;  %849 = vst [vmem:[#allocation2 + $0x48] sm:$0xf] %v848_v13  ;;  %v590_v30 = vrot.slane %v6380_v41, 4  ;;  %v1398_v35 = vsel %vm5809_vm14, %v1393_v10, %v6370_v28 }
  0xb5   : > { %850 = vst.msk [vmem:[#allocation2 + $0x4c] sm:$0xf] %vm269_vm0, %v589_v63  ;;  %1970 = vrot.lane.b32.xlu1 %v1899_v18, %s5641_s10  ;;  %v1768_v6 = vpop.permute.xlu0 %1767  ;;  %v2189_v31 = vrot.slane %v2188_v9, 4  ;;  %v2779_v43 = vrot.slane %v2777_v27, 4  ;;  %v2780_v8 = vrot.slane %v2625_v19, 5  ;;  %v1751_v18 = vrot.slane %v1595_v52, 5 }
  0xb6   : > { %v2198_v51 = vor.u32 %v2197_v5, %v2193_v61  ;;  %v1594_v49 = vld [vmem:[#allocation2 + $0xa8] sm:$0xe]  ;;  %v1138_v44 = vrot.slane %v1136_v12, 4  ;;  %v1141_v45 = vrot.slane %v1139_v59, 5  ;;  %v2778_v28 = vsel %vm5752_vm9, %v5144_v25, %v2777_v27  ;;  %v1596_v20 = vld [vmem:[#allocation2 + $0xb0] sm:$0x1] }
  0xb7   : > { %v1770_v23 = vpop.permute.xlu1 %1769  ;;  %3554 = vrot.lane.b32.xlu0 %v3243_v62, %s5641_s10  ;;  %v2194_v41 = vsel %vm5809_vm14, %v2189_v31, %v2193_v61  ;;  %v851_v21 = vld [vmem:[#allocation2 + $0x50] sm:$0x1]  ;;  %v5128_v32 = vrot.slane %v1594_v49, 9  ;;  %v6432_v17 = vrot.slane %v1145_v26, 5  ;;  %v1151_v38 = vrot.slane %v1149_v29, 4  ;;  %v249_v61 = vld [vmem:[%s5761_s7 + $0x60] sm:$0xff] }
  0xb8   : > { %v2199_v33 = vrot.slane %v2198_v51, 4  ;;  %2553 = vst.msk [vmem:[#allocation3 + $0x34] sm:$0xf] %vm269_vm0, %v2194_v41  ;;  %v852_v36 = vsel %vm5729_vm5, %v590_v30, %v851_v21  ;;  %v1002_v46 = vld [vmem:[#allocation2 + $0x38] sm:$0x1]  ;;  %v2781_v16 = vsel %vm5752_vm9, %v2779_v43, %v2780_v8  ;;  %v1753_v54 = vrot.slane %v1751_v18, 4 }
  0xb9   : > { %3556 = vrot.lane.b32.xlu1 %v3253_v39, %s5641_s10  ;;  %v3543_v34 = vpop.permute.xlu0 %3542  ;;  %853 = vst [vmem:[#allocation2 + $0x50] sm:$0x1] %v852_v36  ;;  %v1754_v53 = vrot.slane %v1596_v20, 5  ;;  %v1142_v55 = vor.u32 %v1141_v45, %v1138_v44  ;;  %v332_v56 = vld [vmem:[#allocation2 + $0xcc] sm:$0x1]  ;;  %v1752_v50 = vsel %vm5752_vm9, %v5128_v32, %v1751_v18  ;;  %v1152_v47 = vor.u32 %v1151_v38, %v6432_v17 }
  0xba   : > { %3638 = vst.msk [vmem:[#allocation3 + $0x4] sm:$0xf] %vm2052_vm3, %v3543_v34  ;;  %v2204_v15 = vsel %vm5809_vm14, %v2199_v33, %v2203_v14  ;;  %v3152_v58 = vld [vmem:[#allocation2 + $0xc0] sm:$0xf]  ;;  %v1155_v63 = vshll.u32 %v1002_v46, 16  ;;  %v333_v0 = vsel %vm5729_vm5, 0, %v332_v56  ;;  %v6471_v34 = vpack.c.bf16 %v249_v61, %v249_v61 }
  0xbb   : > { %v3545_v57 = vpop.permute.xlu1 %3544  ;;  %1479 = vrot.lane.b32.xlu0 %v1388_v7, %s5640_s9  ;;  %2554 = vst.msk [vmem:[#allocation3 + $0x40] sm:$0xf] %vm269_vm0, %v2204_v15  ;;  %v6446_v2 = vld [vmem:[#allocation2 + $0x3c] sm:$0xe]  ;;  %v3153_v62 = vld [vmem:[#allocation2 + $0xc4] sm:$0xf]  ;;  %v1755_v5 = vsel %vm5752_vm9, %v1753_v54, %v1754_v53 }
  0xbc   : > { %3639 = vst.msk [vmem:[#allocation3 + $0x10] sm:$0xf] %vm2052_vm3, %v3545_v57  ;;  %v950_v3 = vld [vmem:[#allocation2 + $0x9c] sm:$0xf]  ;;  %v6456_v10 = vld [vmem:[#allocation2 + $0x40] sm:$0xf] }
  0xbd   : > { %1481 = vrot.lane.b32.xlu1 %v1398_v35, %s5640_s9  ;;  %v1428_v37 = vpop.permute.xlu0 %1427  ;;  %v3495_v27 = vshrl.u32 %v3152_v58, 16  ;;  %334 = vst [vmem:[#allocation2 + $0xcc] sm:$0x1] %v333_v0  ;;  %982 = vst.msk [vmem:[#allocation3 + $0x138] sm:$0xf] %vm269_vm0, %v950_v3  ;;  %v3498_v52 = vshll.u32 %v3152_v58, 16 }
  0xbe   : > { %1522 = vst.msk [vmem:[#allocation3 + $0x18] sm:$0xf] %vm1519_vm15, %v1428_v37  ;;  %v951_v19 = vld [vmem:[#allocation2 + $0xa0] sm:$0xf]  ;;  %v5523_v59 = vld [vmem:[#allocation3] ss:$12 sps:$4 sm:$0xff]  }
  0xbf   : > { %1862 = vst.msk [vmem:[#allocation3 + $0x18] sm:$0xf] %vm1859_vm2, %v1768_v6  ;;  %v1430_v24 = vpop.permute.xlu1 %1429  ;;  %2845 = vrot.lane.b32.xlu0 %v2778_v28, %s5640_s9  ;;  %v1143_v6 = vrot.slane %v1142_v55, 4  ;;  %v2946_v40 = vld [vmem:[#allocation2 + $0xc0] sm:$0xf]  ;;  %v1153_v9 = vrot.slane %v1152_v47, 4 }
  0xc0   : > { %1523 = vst.msk [vmem:[#allocation3 + $0x24] sm:$0xf] %vm1519_vm15, %v1430_v24  ;;  %v1157_v51 = vrot.slane %v1155_v63, 5  ;;  %v3504_v14 = vshll.u32 %v3153_v62, 16  ;;  %v5134_v25 = vrot.slane %v6446_v2, 9  ;;  %v2707_v26 = vrot.slane %v6456_v10, 5 }
  0xc1   : > { %1863 = vst.msk [vmem:[#allocation3 + $0x24] sm:$0xf] %vm1859_vm2, %v1770_v23  ;;  %2847 = vrot.lane.b32.xlu1 %v2781_v16, %s5640_s9  ;;  %v2987_v60 = vpop.permute.xlu0 %2986  ;;  %v3508_v23 = vshrl.u32 %v3153_v62, 16  ;;  %v2595_v13 = vld [vmem:[#allocation2 + $0x44] sm:$0x1]  ;;  %v1148_v30 = vsel %vm5809_vm14, %v1143_v6, %v6432_v17  ;;  %v3497_v43 = vrot.slane %v3495_v27, 4 }
  0xc2   : > { %3080 = vst.msk [vmem:[#allocation3 + $0x1c] sm:$0xf] %vm1859_vm2, %v2987_v60  ;;  %v2947_v29 = vld [vmem:[#allocation2 + $0xc4] sm:$0xf]  ;;  %v6469_v31 = vld [vmem:[#allocation2 + $0x34] sm:$0xf]  ;;  %v1158_v41 = vsel %vm5809_vm14, %v1153_v9, %v1157_v51  ;;  %v2708_v27 = vsel %vm5752_vm9, %v5134_v25, %v2707_v26 }
  0xc3   : > { %v2989_v12 = vpop.permute.xlu1 %2988  ;;  %1819 = vrot.lane.b32.xlu0 %v1752_v50, %s5639_s8  ;;  %v5525_v39 = vld [vmem:[#allocation3 + $0x4] ss:$12 sps:$4 sm:$0xff]   ;;  %983 = vst.msk [vmem:[#allocation3 + $0x144] sm:$0xf] %vm269_vm0, %v951_v19  ;;  %v3500_v8 = vrot.slane %v3498_v52, 5  ;;  %v6479_v15 = vrot.slane %v3504_v14, 5 }
  0xc4   : > { %3081 = vst.msk [vmem:[#allocation3 + $0x28] sm:$0xf] %vm1859_vm2, %v2989_v12  ;;  %4471 = vmatprep.mubr.bf16.mxu0 %v5525_v39  ;;  %v2124_v33 = vld [vmem:[#allocation2 + $0xa8] sm:$0xf]  ;;  %v6474_v49 = vld [vmem:[#allocation2 + $0x30] sm:$0xe] }
  0xc5   : > { %1821 = vrot.lane.b32.xlu1 %v1755_v5, %s5639_s8  ;;  %v1961_v7 = vpop.permute.xlu0 %1960  ;;  %4472 = vmatmul.mubr.bf16.vlgmr.msra.gmra.mxu0 %v5523_v59  ;;  %v2125_v18 = vld [vmem:[#allocation2 + $0xac] sm:$0xf]  ;;  %v2446_v44 = vshrl.u32 %v2124_v33, 16  ;;  %v2449_v45 = vshll.u32 %v2124_v33, 16  ;;  %v3510_v57 = vrot.slane %v3508_v23, 4  ;;  %v2710_v17 = vrot.slane %v2595_v13, 5 }
  0xc6   : > { %2055 = vst.msk [vmem:[#allocation3 + $0x18] sm:$0xf] %vm2052_vm3, %v1961_v7  ;;  %v2455_v28 = vshll.u32 %v2125_v18, 16  ;;  %v2126_v20 = vld [vmem:[#allocation2 + $0xb0] sm:$0x1]  ;;  %v250_v21 = vld [vmem:[%s5761_s7 + $0x68] sm:$0xff]  ;;  %v3501_v58 = vor.u32 %v3500_v8, %v3497_v43 }
  0xc7   : > { %v1963_v35 = vpop.permute.xlu1 %1962  ;;  %3038 = vrot.lane.b32.xlu0 %v2946_v40, %s5639_s8  ;;  %v1033_v38 = vld [vmem:[#allocation2 + $0xb4] sm:$0xf]  ;;  %v2448_v36 = vrot.slane %v2446_v44, 4  ;;  %v2451_v37 = vrot.slane %v2449_v45, 5  ;;  %v2459_v46 = vshrl.u32 %v2125_v18, 16  ;;  %v2709_v54 = vrot.slane %v2707_v26, 4 }
  0xc8   : > { %2056 = vst.msk [vmem:[#allocation3 + $0x24] sm:$0xf] %vm2052_vm3, %v1963_v35  ;;  %v1920_v16 = vld [vmem:[#allocation2 + $0xb4] sm:$0xf]  ;;  %v1681_v53 = vrot.slane %v6469_v31, 5  ;;  %v2457_v55 = vrot.slane %v2455_v28, 5  ;;  %v6488_v60 = vpack.c.bf16 %v250_v21, %v250_v21  ;;  %v3511_v0 = vor.u32 %v3510_v57, %v6479_v15 }
  0xc9   : > { %3040 = vrot.lane.b32.xlu1 %v2947_v29, %s5639_s8  ;;  %v3547_v32 = vpop.permute.xlu0 %3546  ;;  %v2465_v56 = vshll.u32 %v2126_v20, 16  ;;  %v3154_v50 = vld [vmem:[#allocation2 + $0xc8] sm:$0x1]  ;;  %v6486_v47 = vld [vmem:[#allocation2 + $0x38] sm:$0x1]  ;;  %v2452_v63 = vor.u32 %v2451_v37, %v2448_v36  ;;  %v2461_v2 = vrot.slane %v2459_v46, 4  ;;  %v2711_v40 = vsel %vm5752_vm9, %v2709_v54, %v2710_v17 }
  0xca   : > { %3640 = vst.msk [vmem:[#allocation3 + $0x1c] sm:$0xf] %vm2052_vm3, %v3547_v32  ;;  %v1921_v62 = vld [vmem:[#allocation2 + $0xb8] sm:$0xf]  ;;  %v5118_v3 = vrot.slane %v6474_v49, 9  ;;  %v1400_v5 = vshrl.u32 %v1033_v38, 16 }
  0xcb   : > { %v3549_v24 = vpop.permute.xlu1 %3548  ;;  %1439 = vrot.lane.b32.xlu0 %v1148_v30, %s5640_s9  ;;  %v6493_v61 = vld [vmem:[#allocation2 + $0xb8] sm:$0xf]  ;;  %v1403_v6 = vshll.u32 %v1033_v38, 16  ;;  %v6498_v19 = vld [vmem:[#allocation2 + $0x4c] sm:$0xf]  ;;  %v2453_v12 = vrot.slane %v2452_v63, 4  ;;  %v2462_v59 = vor.u32 %v2461_v2, %v2457_v55 }
  0xcc   : > { %3641 = vst.msk [vmem:[#allocation3 + $0x28] sm:$0xf] %vm2052_vm3, %v3549_v24  ;;  %v2467_v39 = vrot.slane %v2465_v56, 5  ;;  %v388_v52 = vld [vmem:[#allocation2 + $0xd4] sm:$0x1]  ;;  %v3514_v9 = vshll.u32 %v3154_v50, 16 }
  0xcd   : > { %1441 = vrot.lane.b32.xlu1 %v1158_v41, %s5640_s9  ;;  %v1472_v10 = vpop.permute.xlu0 %1471  ;;  %v6505_v51 = vrot.slane %v1681_v53, 4  ;;  %v1684_v14 = vrot.slane %v6486_v47, 5  ;;  %v6508_v23 = vld [vmem:[#allocation2 + $0x48] sm:$0xf]  ;;  %v3502_v25 = vrot.slane %v3501_v58, 4  ;;  %v2458_v26 = vsel %vm5809_vm14, %v2453_v12, %v2457_v55 }
  0xce   : > { %1544 = vst.msk [vmem:[#allocation3 + $0x120] sm:$0xf] %vm1519_vm15, %v1472_v10  ;;  %v2463_v13 = vrot.slane %v2462_v59, 4  ;;  %v389_v29 = vsel %vm5739_vm7, 0, %v388_v52  ;;  %v930_v30 = vld [vmem:[#allocation2 + $0x24] sm:$0xf] }
  0xcf   : > { %v1474_v7 = vpop.permute.xlu1 %1473  ;;  %2012 = vrot.lane.b32.xlu0 %v1920_v16, %s5641_s10  ;;  %v6516_v33 = vrot.slane %v3511_v0, 4  ;;  %v3264_v35 = vshll.u32 %v6498_v19, 16  ;;  %v6519_v43 = vrot.slane %v1400_v5, 4  ;;  %v1409_v8 = vshll.u32 %v6493_v61, 16  ;;  %2575 = vst.msk [vmem:[#allocation3 + $0x13c] sm:$0xf] %vm269_vm0, %v2458_v26 }
  0xd0   : > { %1545 = vst.msk [vmem:[#allocation3 + $0x12c] sm:$0xf] %vm1519_vm15, %v1474_v7  ;;  %390 = vst [vmem:[#allocation2 + $0xd4] sm:$0x1] %v389_v29  ;;  %v931_v18 = vld [vmem:[#allocation2 + $0x28] sm:$0xf]  ;;  %v2468_v28 = vsel %vm5809_vm14, %v2463_v13, %v2467_v39  ;;  %v3507_v54 = vsel %vm5809_vm14, %v3502_v25, %v6479_v15 }
  0xd1   : > { %962 = vst.msk [vmem:[#allocation3 + $0x48] sm:$0xf] %vm269_vm0, %v930_v30  ;;  %2014 = vrot.lane.b32.xlu1 %v1921_v62, %s5641_s10  ;;  %v2838_v44 = vpop.permute.xlu0 %2837  ;;  %v3255_v45 = vshrl.u32 %v6508_v23, 16  ;;  %v6526_v41 = vrot.slane %v1403_v6, 5  ;;  %v1413_v57 = vshrl.u32 %v6493_v61, 16  ;;  %v3516_v21 = vrot.slane %v3514_v9, 5 }
  0xd2   : > { %963 = vst.msk [vmem:[#allocation3 + $0x54] sm:$0xf] %vm269_vm0, %v931_v18  ;;  %v302_v20 = vld [vmem:[#allocation2 + $0x54] sm:$0x1]  ;;  %v3268_v32 = vshrl.u32 %v6498_v19, 16  ;;  %v592_v38 = vshrl.u32 %v6471_v34, 16  ;;  %v1685_v30 = vsel %vm5752_vm9, %v6505_v51, %v1684_v14 }
  0xd3   : > { %2909 = vst.msk [vmem:[#allocation3 + $0x124] sm:$0xf] %vm1519_vm15, %v2838_v44  ;;  %v303_v17 = vsel %vm5729_vm5, 0, %v302_v20  ;;  %v2840_v36 = vpop.permute.xlu1 %2839  ;;  %2805 = vrot.lane.b32.xlu0 %v2708_v27, %s5640_s9  ;;  %v3946_v37 = vld [vmem:[#allocation3 + $0x18] sm:$0xff]  ;;  %v3948_v46 = vld [vmem:[#allocation3 + $0x24] sm:$0xff]  ;;  %v595_v55 = vshll.u32 %v6471_v34, 16  ;;  %v3517_v10 = vsel %vm5809_vm14, %v6516_v33, %v3516_v21  ;;  %v1682_v27 = vsel %vm5752_vm9, %v5118_v3, %v1681_v53 }
  0xd4   : > { %2576 = vst.msk [vmem:[#allocation3 + $0x148] sm:$0xf] %vm269_vm0, %v2468_v28  ;;  %v5526_v16 = vld [vmem:[#allocation3 + $0x1c] ss:$12 sps:$4 sm:$0xff]   ;;  %304 = vst [vmem:[#allocation2 + $0x54] sm:$0x1] %v303_v17  ;;  %v5165_v24 = vcombine.low %v3946_v37, %v3948_v46  ;;  %v1406_v46 = vor.u32 %v6526_v41, %v6519_v43 }
  0xd5   : > { %v600_v56 = vshrl.u32 %v6488_v60, 16  ;;  %2910 = vst.msk [vmem:[#allocation3 + $0x130] sm:$0xf] %vm1519_vm15, %v2840_v36  ;;  %v3258_v58 = vshll.u32 %v6508_v23, 16  ;;  %v6546_v50 = vrot.slane %v3264_v35, 5  ;;  %v594_v63 = vrot.slane %v592_v38, 7  ;;  %2807 = vrot.lane.b32.xlu1 %v2711_v40, %s5640_s9  ;;  %v1812_v62 = vpop.permute.xlu0 %1811  ;;  %4479 = vmatprep.mubr.bf16.mxu0 %v5526_v16 }
  0xd6   : > { %v2094_v2 = vld [vmem:[#allocation2 + $0x30] sm:$0xf]  ;;  %v6549_v0 = vrot.slane %v3255_v45, 4  ;;  %v603_v34 = vshll.u32 %v6488_v60, 16  ;;  %v2095_v5 = vld [vmem:[#allocation2 + $0x34] sm:$0xf]  ;;  %4480 = vmatmul.mubr.bf16.gmra.mxu0 %v5165_v24 }
  0xd7   : > { %v6551_v15 = vrot.slane %v600_v56, 7  ;;  %v2206_v6 = vshrl.u32 %v2094_v2, 16  ;;  %1884 = vst.msk [vmem:[#allocation3 + $0x120] sm:$0xf] %vm1859_vm2, %v1812_v62  ;;  %v598_v19 = vrot.slane %v594_v63, 4  ;;  %v2209_v12 = vshll.u32 %v2094_v2, 16  ;;  %v1814_v39 = vpop.permute.xlu1 %1813  ;;  %3598 = vrot.lane.b32.xlu0 %v3507_v54, %s5641_s10 }
  0xd8   : > { %v2096_v59 = vld [vmem:[#allocation2 + $0x38] sm:$0x1]  ;;  %v358_v60 = vld [vmem:[#allocation2 + $0x5c] sm:$0x1]  ;;  %v597_v52 = vor.u32 %v595_v55, %v594_v63  ;;  %v2215_v23 = vshll.u32 %v2095_v5, 16  ;;  %v3260_v31 = vrot.slane %v3258_v58, 5 }
  0xd9   : > { %v605_v40 = vor.u32 %v603_v34, %v6551_v15  ;;  %v2208_v9 = vrot.slane %v2206_v6, 4  ;;  %1885 = vst.msk [vmem:[#allocation3 + $0x12c] sm:$0xf] %vm1859_vm2, %v1814_v39  ;;  %v2211_v7 = vrot.slane %v2209_v12, 5  ;;  %v2219_v49 = vshrl.u32 %v2095_v5, 16  ;;  %3600 = vrot.lane.b32.xlu1 %v3517_v10, %s5641_s10  ;;  %v3031_v53 = vpop.permute.xlu0 %3030  ;;  %v251_v63 = vld [vmem:[%s5761_s7 + $0x70] sm:$0xff] }
  0xda   : > { %v2225_v25 = vshll.u32 %v2096_v59, 16  ;;  %v6568_v3 = vrot.slane %v3268_v32, 4  ;;  %v2217_v13 = vrot.slane %v2215_v23, 5  ;;  %v359_v29 = vsel %vm5739_vm7, 0, %v358_v60  ;;  %3102 = vst.msk [vmem:[#allocation3 + $0x124] sm:$0xf] %vm1859_vm2, %v3031_v53 }
  0xdb   : > { %v606_v26 = vsel %vm5791_vm13, %v598_v19, %v605_v40  ;;  %v6580_v33 = vld [vmem:[#allocation2 + $0xbc] sm:$0x1]  ;;  %v854_v35 = vld [vmem:[#allocation2 + $0x54] sm:$0xf]  ;;  %v2212_v18 = vor.u32 %v2211_v7, %v2208_v9  ;;  %v2221_v44 = vrot.slane %v2219_v49, 4  ;;  %v3033_v45 = vpop.permute.xlu1 %3032  ;;  %1779 = vrot.lane.b32.xlu0 %v1682_v27, %s5639_s8  ;;  %v6586_v20 = vrot.slane %v1409_v8, 5 }
  0xdc   : > { %857 = vst.msk [vmem:[#allocation2 + $0x58] sm:$0xf] %vm269_vm0, %v606_v26  ;;  %360 = vst [vmem:[#allocation2 + $0x5c] sm:$0x1] %v359_v29  ;;  %v3124_v28 = vld [vmem:[#allocation2 + $0x50] sm:$0x1]  ;;  %v855_v14 = vsel %vm5784_vm12, %v597_v52, %v854_v35  ;;  %v3261_v32 = vor.u32 %v3260_v31, %v6549_v0  ;;  %v3271_v37 = vor.u32 %v6568_v3, %v6546_v50 }
  0xdd   : > { %v6590_v47 = vrot.slane %v1413_v57, 4  ;;  %v2626_v51 = vld [vmem:[#allocation2 + $0xc0] sm:$0xe]  ;;  %3103 = vst.msk [vmem:[#allocation3 + $0x130] sm:$0xf] %vm1859_vm2, %v3033_v45  ;;  %v2213_v38 = vrot.slane %v2212_v18, 4  ;;  %v2222_v36 = vor.u32 %v2221_v44, %v2217_v13  ;;  %1781 = vrot.lane.b32.xlu1 %v1685_v30, %s5639_s8  ;;  %v1432_v61 = vpop.permute.xlu0 %1431  ;;  %v5264_v23 = vpack.c.bf16 %v251_v63, %v251_v63 }
  0xde   : > { %v2926_v21 = vld [vmem:[#allocation2 + $0x48] sm:$0xf]  ;;  %v2627_v17 = vld [vmem:[#allocation2 + $0xc4] sm:$0xf]  ;;  %856 = vst [vmem:[#allocation2 + $0x54] sm:$0xf] %v855_v14 }
  0xdf   : > { %v2227_v8 = vrot.slane %v2225_v25, 5  ;;  %v2927_v57 = vld [vmem:[#allocation2 + $0x4c] sm:$0xf]  ;;  %v6601_v16 = vld [vmem:[#allocation2 + $0x3c] sm:$0xf]  ;;  %v3274_v55 = vshll.u32 %v3124_v28, 16  ;;  %v2218_v24 = vsel %vm5809_vm14, %v2213_v38, %v2217_v13  ;;  %v1434_v62 = vpop.permute.xlu1 %1433  ;;  %2998 = vrot.lane.b32.xlu0 %v2926_v21, %s5639_s8  ;;  %v1416_v10 = vor.u32 %v6590_v47, %v6586_v20 }
  0xe0   : > { %1524 = vst.msk [vmem:[#allocation3 + $0x30] sm:$0xf] %vm1519_vm15, %v1432_v61  ;;  %v1900_v54 = vld [vmem:[#allocation2 + $0x3c] sm:$0xf]  ;;  %v607_v56 = vrot.slane %v6551_v15, 4  ;;  %v2223_v58 = vrot.slane %v2222_v36, 4 }
  0xe1   : > { %v305_v2 = vld [vmem:[#allocation2 + $0x60] sm:$0x1]  ;;  %v1419_v43 = vshll.u32 %v6580_v33, 16  ;;  %v5145_v41 = vrot.slane %v2626_v51, 9  ;;  %v2784_v0 = vrot.slane %v2627_v17, 5  ;;  %v3262_v6 = vrot.slane %v3261_v32, 4  ;;  %3000 = vrot.lane.b32.xlu1 %v2927_v57, %s5639_s8  ;;  %v2005_v60 = vpop.permute.xlu0 %2004 }
  0xe2   : > { %2555 = vst.msk [vmem:[#allocation3 + $0x4c] sm:$0xf] %vm269_vm0, %v2218_v24  ;;  %v306_v34 = vsel %vm5729_vm5, 0, %v305_v2  ;;  %v952_v15 = vld [vmem:[#allocation2 + $0xa8] sm:$0xf]  ;;  %v2228_v19 = vsel %vm5809_vm14, %v2223_v58, %v2227_v8  ;;  %v252_v12 = vld [vmem:[%s5761_s7 + $0x78] sm:$0xff] }
  0xe3   : > { %1525 = vst.msk [vmem:[#allocation3 + $0x3c] sm:$0xf] %vm1519_vm15, %v1434_v62  ;;  %v1901_v5 = vld [vmem:[#allocation2 + $0x40] sm:$0xf]  ;;  %v6616_v27 = vld [vmem:[#allocation2 + $0xb4] sm:$0xe]  ;;  %v2007_v3 = vpop.permute.xlu1 %2006  ;;  %1972 = vrot.lane.b32.xlu0 %v1900_v54, %s5641_s10  ;;  %v6639_v13 = vsel %vm5752_vm9, %v5145_v41, %v2784_v0  ;;  %v5265_v30 = vpack.c.bf16 %v252_v12, %v252_v12  ;;  %v3267_v33 = vsel %vm5809_vm14, %v3262_v6, %v6546_v50 }
  0xe4   : > { %307 = vst [vmem:[#allocation2 + $0x60] sm:$0x1] %v306_v34  ;;  %984 = vst.msk [vmem:[#allocation3 + $0x150] sm:$0xf] %vm269_vm0, %v952_v15  ;;  %v953_v59 = vld [vmem:[#allocation2 + $0xac] sm:$0xf] }
  0xe5   : > { %v6623_v39 = vrot.slane %v1406_v46, 4  ;;  %v2628_v52 = vld [vmem:[#allocation2 + $0xc8] sm:$0x1]  ;;  %v1160_v40 = vshrl.u32 %v6601_v16, 16  ;;  %2556 = vst.msk [vmem:[#allocation3 + $0x58] sm:$0xf] %vm269_vm0, %v2228_v19  ;;  %1974 = vrot.lane.b32.xlu1 %v1901_v5, %s5641_s10  ;;  %v2798_v28 = vpop.permute.xlu0 %2797 }
  0xe6   : > { %v858_v9 = vld [vmem:[#allocation2 + $0x5c] sm:$0x1]  ;;  %985 = vst.msk [vmem:[#allocation3 + $0x15c] sm:$0xf] %vm269_vm0, %v953_v59  ;;  %v3272_v31 = vrot.slane %v3271_v37, 4  ;;  %v3276_v7 = vrot.slane %v3274_v55, 5 }
  0xe7   : > { %2077 = vst.msk [vmem:[#allocation3 + $0x120] sm:$0xf] %vm2052_vm3, %v2005_v60  ;;  %v6629_v49 = vld [vmem:[#allocation2 + $0xb8] sm:$0xf]  ;;  %v1163_v25 = vshll.u32 %v6601_v16, 16  ;;  %v859_v53 = vsel %vm5729_vm5, %v607_v56, %v858_v9  ;;  %v6635_v26 = vrot.slane %v1419_v43, 5  ;;  %v1412_v47 = vsel %vm5809_vm14, %v6623_v39, %v6586_v20  ;;  %v2800_v61 = vpop.permute.xlu1 %2799  ;;  %3558 = vrot.lane.b32.xlu0 %v3267_v33, %s5641_s10 }
  0xe8   : > { %v1004_v29 = vld [vmem:[#allocation2 + $0x40] sm:$0xf]  ;;  %860 = vst [vmem:[#allocation2 + $0x5c] sm:$0x1] %v859_v53  ;;  %2078 = vst.msk [vmem:[#allocation3 + $0x12c] sm:$0xf] %vm2052_vm3, %v2007_v3  ;;  %v3277_v32 = vsel %vm5809_vm14, %v3272_v31, %v3276_v7 }
  0xe9   : > { %v1417_v35 = vrot.slane %v1416_v10, 4  ;;  %v2786_v18 = vrot.slane %v2784_v0, 4  ;;  %v2787_v44 = vrot.slane %v2628_v52, 5  ;;  %v6645_v45 = vld [vmem:[#allocation2 + $0xbc] sm:$0x1]  ;;  %v5129_v51 = vrot.slane %v6616_v27, 9  ;;  %3560 = vrot.lane.b32.xlu1 %v3277_v32, %s5641_s10  ;;  %v3591_v63 = vpop.permute.xlu0 %3590 }
  0xea   : > { %v1758_v14 = vrot.slane %v6629_v49, 5  ;;  %v6654_v21 = vrot.slane %v1160_v40, 4  ;;  %v361_v50 = vld [vmem:[#allocation2 + $0x68] sm:$0x1]  ;;  %2889 = vst.msk [vmem:[#allocation3 + $0x34] sm:$0xf] %vm1519_vm15, %v2798_v28 }
  0xeb   : > { %v1165_v17 = vrot.slane %v1163_v25, 5  ;;  %v1169_v38 = vshll.u32 %v1004_v29, 16  ;;  %v609_v36 = vshrl.u32 %v5264_v23, 16  ;;  %v2127_v8 = vld [vmem:[#allocation2 + $0xb4] sm:$0xf]  ;;  %v1173_v20 = vshrl.u32 %v1004_v29, 16  ;;  %v3593_v19 = vpop.permute.xlu1 %3592  ;;  %1483 = vrot.lane.b32.xlu0 %v1412_v47, %s5640_s9 }
  0xec   : > { %v612_v57 = vshll.u32 %v5264_v23, 16  ;;  %v617_v37 = vshrl.u32 %v5265_v30, 16  ;;  %v620_v46 = vshll.u32 %v5265_v30, 16  ;;  %2890 = vst.msk [vmem:[#allocation3 + $0x40] sm:$0xf] %vm1519_vm15, %v2800_v61  ;;  %v1422_v16 = vsel %vm5809_vm14, %v1417_v35, %v6635_v26 }
  0xed   : > { %v2788_v54 = vsel %vm5752_vm9, %v2786_v18, %v2787_v44  ;;  %v3155_v55 = vld [vmem:[#allocation2 + $0xcc] sm:$0xf]  ;;  %v611_v56 = vrot.slane %v609_v36, 7  ;;  %v362_v24 = vsel %vm5739_vm7, 0, %v361_v50  ;;  %v2128_v58 = vld [vmem:[#allocation2 + $0xb8] sm:$0xf]  ;;  %v1166_v12 = vor.u32 %v1165_v17, %v6654_v21  ;;  %1485 = vrot.lane.b32.xlu1 %v1422_v16, %s5640_s9  ;;  %v1772_v25 = vpop.permute.xlu0 %1771 }
  0xee   : > { %v1761_v2 = vrot.slane %v6645_v45, 5  ;;  %v861_v62 = vld [vmem:[#allocation2 + $0x60] sm:$0xf]  ;;  %v619_v43 = vrot.slane %v617_v37, 7  ;;  %363 = vst [vmem:[#allocation2 + $0x68] sm:$0x1] %v362_v24  ;;  %v1759_v50 = vsel %vm5752_vm9, %v5129_v51, %v1758_v14 }
  0xef   : > { %v2470_v41 = vshrl.u32 %v2127_v8, 16  ;;  %v2473_v0 = vshll.u32 %v2127_v8, 16  ;;  %3662 = vst.msk [vmem:[#allocation3 + $0x124] sm:$0xf] %vm2052_vm3, %v3591_v63  ;;  %v1760_v34 = vrot.slane %v1758_v14, 4  ;;  %v614_v5 = vor.u32 %v612_v57, %v611_v56  ;;  %v1774_v44 = vpop.permute.xlu1 %1773  ;;  %2849 = vrot.lane.b32.xlu0 %v6639_v13, %s5640_s9 }
  0xf0   : > { %v6673_v15 = vld [vmem:[#allocation2 + $0xd0] sm:$0xf]  ;;  %v615_v6 = vrot.slane %v611_v56, 4  ;;  %v2479_v10 = vshll.u32 %v2128_v58, 16  ;;  %v6677_v59 = vrot.slane %v1169_v38, 5  ;;  %v6679_v60 = vrot.slane %v1173_v20, 4 }
  0xf1   : > { %v622_v39 = vor.u32 %v620_v46, %v619_v43  ;;  %v2129_v52 = vld [vmem:[#allocation2 + $0xbc] sm:$0x1]  ;;  %3663 = vst.msk [vmem:[#allocation3 + $0x130] sm:$0xf] %vm2052_vm3, %v3593_v19  ;;  %v6682_v40 = vld [vmem:[#allocation2 + $0x44] sm:$0x1]  ;;  %v862_v23 = vsel %vm5784_vm12, %v614_v5, %v861_v62  ;;  %v1762_v32 = vsel %vm5752_vm9, %v1760_v34, %v1761_v2  ;;  %2851 = vrot.lane.b32.xlu1 %v2788_v54, %s5640_s9  ;;  %v2991_v8 = vpop.permute.xlu0 %2990 }
  0xf2   : > { %v3519_v9 = vshrl.u32 %v3155_v55, 16  ;;  %v2472_v31 = vrot.slane %v2470_v41, 4  ;;  %v2475_v7 = vrot.slane %v2473_v0, 5  ;;  %v3522_v53 = vshll.u32 %v3155_v55, 16  ;;  %863 = vst [vmem:[#allocation2 + $0x60] sm:$0xf] %v862_v23 }
  0xf3   : > { %v3528_v3 = vshll.u32 %v6673_v15, 16  ;;  %v623_v26 = vsel %vm5791_vm13, %v615_v6, %v622_v39  ;;  %v624_v29 = vrot.slane %v619_v43, 4  ;;  %1864 = vst.msk [vmem:[#allocation3 + $0x30] sm:$0xf] %vm1859_vm2, %v1772_v25  ;;  %v2481_v33 = vrot.slane %v2479_v10, 5  ;;  %v253_v55 = vld [vmem:[%s5761_s7 + $0x80] sm:$0xff]  ;;  %v2993_v56 = vpop.permute.xlu1 %2992  ;;  %1823 = vrot.lane.b32.xlu0 %v1759_v50, %s5639_s8 }
  0xf4   : > { %864 = vst.msk [vmem:[#allocation2 + $0x64] sm:$0xf] %vm269_vm0, %v623_v26  ;;  %v2476_v30 = vor.u32 %v2475_v7, %v2472_v31  ;;  %v2483_v35 = vshrl.u32 %v2128_v58, 16  ;;  %v2489_v18 = vshll.u32 %v2129_v52, 16  ;;  %v6694_v45 = vrot.slane %v1166_v12, 4  ;;  %v254_v39 = vld [vmem:[%s5761_s7 + $0x88] sm:$0xff] }
  0xf5   : > { %v1179_v28 = vshll.u32 %v6682_v40, 16  ;;  %v3532_v47 = vshrl.u32 %v6673_v15, 16  ;;  %v932_v21 = vld [vmem:[#allocation2 + $0x30] sm:$0xf]  ;;  %1865 = vst.msk [vmem:[#allocation3 + $0x3c] sm:$0xf] %vm1859_vm2, %v1774_v44  ;;  %v1176_v27 = vor.u32 %v6679_v60, %v6677_v59  ;;  %1825 = vrot.lane.b32.xlu1 %v1762_v32, %s5639_s8  ;;  %v1965_v0 = vpop.permute.xlu0 %1964  ;;  %v5267_v44 = vpack.c.bf16 %v254_v39, %v254_v39 }
  0xf6   : > { %v6707_v13 = vld [vmem:[#allocation2 + $0x4c] sm:$0xf]  ;;  %v865_v17 = vld [vmem:[#allocation2 + $0x68] sm:$0x1]  ;;  %v2477_v38 = vrot.slane %v2476_v30, 4  ;;  %v2485_v36 = vrot.slane %v2483_v35, 4 }
  0xf7   : > { %964 = vst.msk [vmem:[#allocation3 + $0x60] sm:$0xf] %vm269_vm0, %v932_v21  ;;  %v3521_v49 = vrot.slane %v3519_v9, 4  ;;  %v3524_v61 = vrot.slane %v3522_v53, 5  ;;  %v866_v51 = vsel %vm5729_vm5, %v624_v29, %v865_v17  ;;  %v933_v14 = vld [vmem:[#allocation2 + $0x34] sm:$0xf]  ;;  %v1967_v40 = vpop.permute.xlu1 %1966  ;;  %v5266_v53 = vpack.c.bf16 %v253_v55, %v253_v55 }
  0xf8   : > { %3082 = vst.msk [vmem:[#allocation3 + $0x34] sm:$0xf] %vm1859_vm2, %v2991_v8  ;;  %v2948_v20 = vld [vmem:[#allocation2 + $0xcc] sm:$0xf]  ;;  %v6716_v57 = vrot.slane %v3528_v3, 5  ;;  %v2482_v46 = vsel %vm5809_vm14, %v2477_v38, %v2481_v33  ;;  %v2486_v16 = vor.u32 %v2485_v36, %v2481_v33  ;;  %v2491_v54 = vrot.slane %v2489_v18, 5 }
  0xf9   : > { %v6718_v37 = vld [vmem:[#allocation2 + $0x40] sm:$0xf]  ;;  %867 = vst [vmem:[#allocation2 + $0x68] sm:$0x1] %v866_v51  ;;  %965 = vst.msk [vmem:[#allocation3 + $0x6c] sm:$0xf] %vm269_vm0, %v933_v14  ;;  %v3525_v19 = vor.u32 %v3524_v61, %v3521_v49  ;;  %3042 = vrot.lane.b32.xlu0 %v2948_v20, %s5639_s8  ;;  %v1172_v3 = vsel %vm5809_vm14, %v6694_v45, %v6677_v59  ;;  %v3551_v35 = vpop.permute.xlu0 %3550 }
  0xfa   : > { %v5528_v24 = vld [vmem:[#allocation3 + $0x120] ss:$12 sps:$4 sm:$0xff]   ;;  %v5530_v58 = vld [vmem:[#allocation3 + $0x124] ss:$12 sps:$4 sm:$0xff]   ;;  %v3534_v63 = vrot.slane %v3532_v47, 4  ;;  %v2714_v2 = vrot.slane %v6707_v13, 5 }
  0xfb   : > { %2577 = vst.msk [vmem:[#allocation3 + $0x154] sm:$0xf] %vm269_vm0, %v2482_v46  ;;  %v3157_v62 = vld [vmem:[#allocation2 + $0xd4] sm:$0x1]  ;;  %v6728_v43 = vld [vmem:[#allocation2 + $0x48] sm:$0xf]  ;;  %4567 = vmatprep.mubr.bf16.mxu1 %v5530_v58  ;;  %v3553_v13 = vpop.permute.xlu1 %3552 }
  0xfc   : > { %3083 = vst.msk [vmem:[#allocation3 + $0x40] sm:$0xf] %vm1859_vm2, %v2993_v56  ;;  %v2487_v41 = vrot.slane %v2486_v16, 4  ;;  %v1177_v34 = vrot.slane %v1176_v27, 4  ;;  %v1181_v15 = vrot.slane %v1179_v28, 5  ;;  %4568 = vmatmul.mubr.bf16.vlgmr.msra.gmra.mxu1 %v5528_v24  ;;  %v1688_v12 = vrot.slane %v6718_v37, 5 }
  0xfd   : > { %v2596_v5 = vld [vmem:[#allocation2 + $0x48] sm:$0xe]  ;;  %v2598_v6 = vld [vmem:[#allocation2 + $0x50] sm:$0x1]  ;;  %2057 = vst.msk [vmem:[#allocation3 + $0x30] sm:$0xf] %vm2052_vm3, %v1965_v0  ;;  %v3535_v9 = vor.u32 %v3534_v63, %v6716_v57  ;;  %1443 = vrot.lane.b32.xlu0 %v1172_v3, %s5640_s9 }
  0xfe   : > { %v2949_v10 = vld [vmem:[#allocation2 + $0xd0] sm:$0xf]  ;;  %v2492_v60 = vsel %vm5809_vm14, %v2487_v41, %v2491_v54  ;;  %v3538_v23 = vshll.u32 %v3157_v62, 16  ;;  %v6739_v31 = vld [vmem:[#allocation2 + $0x3c] sm:$0xe]  ;;  %v1184_v25 = vshrl.u32 %v6728_v43, 16  ;;  %v1182_v18 = vsel %vm5809_vm14, %v1177_v34, %v1181_v15  ;;  %v1476_v54 = vpop.permute.xlu0 %1475 }
  0xff   : > { %v255_v52 = vld [vmem:[%s5761_s7 + $0x90] sm:$0xff]  ;;  %v6741_v7 = vld [vmem:[#allocation2 + $0x44] sm:$0x1]  ;;  %2578 = vst.msk [vmem:[#allocation3 + $0x160] sm:$0xf] %vm269_vm0, %v2492_v60  ;;  %v5135_v26 = vrot.slane %v2596_v5, 9  ;;  %3044 = vrot.lane.b32.xlu1 %v2949_v10, %s5639_s8  ;;  %v1478_v15 = vpop.permute.xlu1 %1477 }
 0x100   : > { %2058 = vst.msk [vmem:[#allocation3 + $0x3c] sm:$0xf] %vm2052_vm3, %v1967_v40  ;;  %v2716_v29 = vrot.slane %v2714_v2, 4  ;;  %v2717_v30 = vrot.slane %v2598_v6, 5  ;;  %v308_v33 = vld [vmem:[#allocation2 + $0x6c] sm:$0x1]  ;;  %v6753_v28 = vpack.c.bf16 %v255_v52, %v255_v52 }
 0x101   : > { %3642 = vst.msk [vmem:[#allocation3 + $0x34] sm:$0xf] %vm2052_vm3, %v3551_v35  ;;  %v1922_v47 = vld [vmem:[#allocation2 + $0xc0] sm:$0xf]  ;;  %v6756_v21 = vrot.slane %v3525_v19, 4  ;;  %v5119_v59 = vrot.slane %v6739_v31, 9  ;;  %v2715_v61 = vsel %vm5752_vm9, %v5135_v26, %v2714_v2 }
 0x102   : > { %v6761_v45 = vrot.slane %v1688_v12, 4  ;;  %v1691_v50 = vrot.slane %v6741_v7, 5  ;;  %v6764_v32 = vld [vmem:[#allocation2 + $0x4c] sm:$0xf]  ;;  %v6767_v17 = vrot.slane %v3535_v9, 4  ;;  %v6769_v38 = vrot.slane %v3538_v23, 5  ;;  %2016 = vrot.lane.b32.xlu0 %v1922_v47, %s5641_s10  ;;  %v2842_v9 = vpop.permute.xlu0 %2841 }
 0x103   : > { %v6771_v36 = vrot.slane %v1184_v25, 4  ;;  %v309_v8 = vsel %vm5729_vm5, 0, %v308_v33  ;;  %v2097_v27 = vld [vmem:[#allocation2 + $0x3c] sm:$0xf]  ;;  %3643 = vst.msk [vmem:[#allocation3 + $0x40] sm:$0xf] %vm2052_vm3, %v3553_v13  ;;  %v2718_v51 = vsel %vm5752_vm9, %v2716_v29, %v2717_v30  ;;  %1445 = vrot.lane.b32.xlu1 %v1182_v18, %s5640_s9  ;;  %v2844_v47 = vpop.permute.xlu1 %2843 }
 0x104   : > { %v1923_v49 = vld [vmem:[#allocation2 + $0xc4] sm:$0xf]  ;;  %310 = vst [vmem:[#allocation2 + $0x6c] sm:$0x1] %v309_v8  ;;  %v626_v14 = vshrl.u32 %v5266_v53, 16  ;;  %v629_v20 = vshll.u32 %v5266_v53, 16  ;;  %v3531_v8 = vsel %vm5809_vm14, %v6756_v21, %v6716_v57 }
 0x105   : > { %v2098_v46 = vld [vmem:[#allocation2 + $0x40] sm:$0xf]  ;;  %v2099_v16 = vld [vmem:[#allocation2 + $0x44] sm:$0x1]  ;;  %v6781_v55 = vld [vmem:[#allocation2 + $0x58] sm:$0xf] }
 0x106   : > { %v1187_v56 = vshll.u32 %v6728_v43, 16  ;;  %v1193_v24 = vshll.u32 %v6764_v32, 16  ;;  %v634_v58 = vshrl.u32 %v5267_v44, 16  ;;  %v637_v63 = vshll.u32 %v5267_v44, 16  ;;  %1546 = vst.msk [vmem:[#allocation3 + $0x138] sm:$0xf] %vm1519_vm15, %v1476_v54  ;;  %2809 = vrot.lane.b32.xlu0 %v2715_v61, %s5640_s9  ;;  %v1816_v21 = vpop.permute.xlu0 %1815 }
 0x107   : > { %v6786_v2 = vld [vmem:[#allocation2 + $0x54] sm:$0xf]  ;;  %v1197_v62 = vshrl.u32 %v6764_v32, 16  ;;  %v628_v41 = vrot.slane %v626_v14, 7  ;;  %v2230_v0 = vshrl.u32 %v2097_v27, 16  ;;  %v2233_v34 = vshll.u32 %v2097_v27, 16  ;;  %2018 = vrot.lane.b32.xlu1 %v1923_v49, %s5641_s10 }
 0x108   : > { %v6790_v5 = vrot.slane %v634_v58, 7  ;;  %v2239_v6 = vshll.u32 %v2098_v46, 16  ;;  %v2243_v43 = vshrl.u32 %v2098_v46, 16  ;;  %v2249_v10 = vshll.u32 %v2099_v16, 16  ;;  %v364_v19 = vld [vmem:[#allocation2 + $0x74] sm:$0x1] }
 0x109   : > { %1547 = vst.msk [vmem:[#allocation3 + $0x144] sm:$0xf] %vm1519_vm15, %v1478_v15  ;;  %v631_v60 = vor.u32 %v629_v20, %v628_v41  ;;  %v632_v39 = vrot.slane %v628_v41, 4  ;;  %v2232_v52 = vrot.slane %v2230_v0, 4  ;;  %v2235_v40 = vrot.slane %v2233_v34, 5  ;;  %v3950_v26 = vld [vmem:[#allocation3 + $0x30] sm:$0xff]  ;;  %v1818_v15 = vpop.permute.xlu1 %1817 }
 0x10a   : > { %v3288_v23 = vshll.u32 %v6781_v55, 16  ;;  %v639_v25 = vor.u32 %v637_v63, %v6790_v5  ;;  %v2241_v53 = vrot.slane %v2239_v6, 5  ;;  %v2245_v3 = vrot.slane %v2243_v43, 4  ;;  %2911 = vst.msk [vmem:[#allocation3 + $0x13c] sm:$0xf] %vm1519_vm15, %v2842_v9  ;;  %v256_v44 = vld [vmem:[%s5761_s7 + $0x98] sm:$0xff]  ;;  %3602 = vrot.lane.b32.xlu0 %v3531_v8, %s5641_s10  ;;  %v3035_v37 = vpop.permute.xlu0 %3034 }
 0x10b   : > { %v3279_v29 = vshrl.u32 %v6786_v2, 16  ;;  %v3282_v30 = vshll.u32 %v6786_v2, 16  ;;  %v6799_v33 = vld [vmem:[#allocation2 + $0x50] sm:$0x1]  ;;  %v2236_v35 = vor.u32 %v2235_v40, %v2232_v52  ;;  %v365_v18 = vsel %vm5739_vm7, 0, %v364_v19  ;;  %v3952_v32 = vld [vmem:[#allocation3 + $0x3c] sm:$0xff]  ;;  %2811 = vrot.lane.b32.xlu1 %v2718_v51, %s5640_s9 }
 0x10c   : > { %v5531_v13 = vld [vmem:[#allocation3 + $0x34] ss:$12 sps:$4 sm:$0xff]   ;;  %v640_v49 = vsel %vm5791_vm13, %v632_v39, %v639_v25  ;;  %v2246_v14 = vor.u32 %v2245_v3, %v2241_v53  ;;  %v2251_v20 = vrot.slane %v2249_v10, 5  ;;  %366 = vst [vmem:[#allocation2 + $0x74] sm:$0x1] %v365_v18  ;;  %v5168_v46 = vcombine.low %v3950_v26, %v3952_v32  ;;  %v5544_v25 = vld [vmem:[%s8133_s3 + $0x80] sm:$0xff]  }
 0x10d   : > { %v868_v27 = vld [vmem:[#allocation2 + $0x6c] sm:$0xf]  ;;  %2912 = vst.msk [vmem:[#allocation3 + $0x148] sm:$0xf] %vm1519_vm15, %v2844_v47  ;;  %v3292_v16 = vshrl.u32 %v6781_v55, 16  ;;  %v2237_v54 = vrot.slane %v2236_v35, 4  ;;  %4487 = vmatprep.mubr.bf16.mxu0 %v5531_v13  ;;  %v3541_v63 = vsel %vm5809_vm14, %v6767_v17, %v6769_v38  ;;  %v1689_v39 = vsel %vm5752_vm9, %v5119_v59, %v1688_v12 }
 0x10e   : > { %v869_v61 = vsel %vm5784_vm12, %v631_v60, %v868_v27  ;;  %871 = vst.msk [vmem:[#allocation2 + $0x70] sm:$0xf] %vm269_vm0, %v640_v49  ;;  %v954_v58 = vld [vmem:[#allocation2 + $0xb4] sm:$0xf]  ;;  %v955_v57 = vld [vmem:[#allocation2 + $0xb8] sm:$0xf]  ;;  %4488 = vmatmul.mubr.bf16.gmra.mxu0 %v5168_v46  ;;  %v6851_v60 = vpack.c.bf16 %v256_v44, %v256_v44  ;;  %v1692_v12 = vsel %vm5752_vm9, %v6761_v45, %v1691_v50  ;;  %v1436_v27 = vpop.permute.xlu0 %1435 }
 0x10f   : > { %v6821_v2 = vrot.slane %v1187_v56, 5  ;;  %v6823_v55 = vrot.slane %v1193_v24, 5  ;;  %v6825_v41 = vld [vmem:[#allocation2 + $0x48] sm:$0xe]  ;;  %870 = vst [vmem:[#allocation2 + $0x6c] sm:$0xf] %v869_v61  ;;  %v2242_v38 = vsel %vm5809_vm14, %v2237_v54, %v2241_v53  ;;  %3604 = vrot.lane.b32.xlu1 %v3541_v63, %s5641_s10  ;;  %1783 = vrot.lane.b32.xlu0 %v1689_v39, %s5639_s8 }
 0x110   : > { %v2247_v0 = vrot.slane %v2246_v14, 4  ;;  %986 = vst.msk [vmem:[#allocation3 + $0x168] sm:$0xf] %vm269_vm0, %v954_v58  ;;  %987 = vst.msk [vmem:[#allocation3 + $0x174] sm:$0xf] %vm269_vm0, %v955_v57  ;;  %v6830_v51 = vrot.slane %v3279_v29, 4  ;;  %v3037_v29 = vpop.permute.xlu1 %3036 }
 0x111   : > { %1886 = vst.msk [vmem:[#allocation3 + $0x138] sm:$0xf] %vm1859_vm2, %v1816_v21  ;;  %v6832_v34 = vrot.slane %v3282_v30, 5  ;;  %v6834_v17 = vrot.slane %v1197_v62, 4  ;;  %v311_v56 = vld [vmem:[#allocation2 + $0x78] sm:$0x1]  ;;  %v1190_v59 = vor.u32 %v6821_v2, %v6771_v36 }
 0x112   : > { %v5543_v24 = vld [vmem:[%s8133_s3 + $0x88] sm:$0xff]   ;;  %v1203_v6 = vshll.u32 %v6799_v33, 16  ;;  %v6845_v10 = vld [vmem:[#allocation2 + $0x50] sm:$0x1]  ;;  %v641_v62 = vrot.slane %v6790_v5, 4  ;;  %v2252_v19 = vsel %vm5809_vm14, %v2247_v0, %v2251_v20  ;;  %v6860_v52 = vrot.slane %v3288_v23, 5 }
 0x113   : > { %v6843_v43 = vld [vmem:[#allocation2 + $0x4c] sm:$0xf]  ;;  %2557 = vst.msk [vmem:[#allocation3 + $0x64] sm:$0xf] %vm269_vm0, %v2242_v38  ;;  %v3294_v40 = vrot.slane %v3292_v16, 4  ;;  %v5120_v5 = vrot.slane %v6825_v41, 9  ;;  %5412 = vmatprep.subr.bf16.mxu1 %v5543_v24  ;;  %v3285_v7 = vor.u32 %v6832_v34, %v6830_v51  ;;  %v1200_v45 = vor.u32 %v6834_v17, %v6823_v55  ;;  %1785 = vrot.lane.b32.xlu1 %v1692_v12, %s5639_s8 }
 0x114   : > { %1887 = vst.msk [vmem:[#allocation3 + $0x144] sm:$0xf] %vm1859_vm2, %v1818_v15  ;;  %v934_v9 = vld [vmem:[#allocation2 + $0x3c] sm:$0xf]  ;;  %v312_v23 = vsel %vm5729_vm5, 0, %v311_v56  ;;  %v643_v53 = vshrl.u32 %v6753_v28, 16  ;;  %5413 = vmatpush3.bf16.msra.mxu1 %v5543_v24  ;;  %v1438_v21 = vpop.permute.xlu1 %1437  ;;  %v2009_v15 = vpop.permute.xlu0 %2008 }
 0x115   : > { %2558 = vst.msk [vmem:[#allocation3 + $0x70] sm:$0xf] %vm269_vm0, %v2252_v19  ;;  %v3127_v31 = vld [vmem:[#allocation2 + $0x5c] sm:$0x1]  ;;  %966 = vst.msk [vmem:[#allocation3 + $0x78] sm:$0xf] %vm269_vm0, %v934_v9  ;;  %5414 = vmatprep.subr.bf16.mxu1 %v5544_v25  ;;  %v3295_v32 = vor.u32 %v3294_v40, %v6860_v52 }
 0x116   : > { %v935_v3 = vld [vmem:[#allocation2 + $0x40] sm:$0xf]  ;;  %3104 = vst.msk [vmem:[#allocation3 + $0x13c] sm:$0xf] %vm1859_vm2, %v3035_v37  ;;  %v1695_v50 = vrot.slane %v6843_v43, 5  ;;  %v646_v26 = vshll.u32 %v6753_v28, 16 }
 0x117   : > { %v872_v36 = vld [vmem:[#allocation2 + $0x74] sm:$0x1]  ;;  %313 = vst [vmem:[#allocation2 + $0x78] sm:$0x1] %v312_v23  ;;  %967 = vst.msk [vmem:[#allocation3 + $0x84] sm:$0xf] %vm269_vm0, %v935_v3 }
 0x118   : > { %v6888_v30 = vrot.slane %v1203_v6, 5  ;;  %v6890_v33 = vld [vmem:[#allocation2 + $0x58] sm:$0xf]  ;;  %v873_v35 = vsel %vm5729_vm5, %v641_v62, %v872_v36  ;;  %v645_v18 = vrot.slane %v643_v53, 7  ;;  %v651_v44 = vshrl.u32 %v6851_v60, 16  ;;  %5415 = vmatpush3.bf16.msra.mxu1 %v5544_v25 }
 0x119   : > { %3105 = vst.msk [vmem:[#allocation3 + $0x148] sm:$0xf] %vm1859_vm2, %v3037_v29  ;;  %v2928_v47 = vld [vmem:[#allocation2 + $0x54] sm:$0xf]  ;;  %v2929_v28 = vld [vmem:[#allocation2 + $0x58] sm:$0xf] }
 0x11a   : > { %v3298_v13 = vshll.u32 %v3127_v31, 16  ;;  %v1698_v8 = vrot.slane %v6845_v10, 5  ;;  %874 = vst [vmem:[#allocation2 + $0x74] sm:$0x1] %v873_v35  ;;  %v6899_v49 = vrot.slane %v1190_v59, 4  ;;  %v654_v20 = vshll.u32 %v6851_v60, 16  ;;  %3002 = vrot.lane.b32.xlu0 %v2928_v47, %s5639_s8  ;;  %3004 = vrot.lane.b32.xlu1 %v2929_v28, %s5639_s8  ;;  %v2011_v59 = vpop.permute.xlu1 %2010 }
 0x11b   : > { %v1009_v14 = vld [vmem:[#allocation2 + $0x54] sm:$0xf]  ;;  %v367_v46 = vld [vmem:[#allocation2 + $0x80] sm:$0x1]  ;;  %1526 = vst.msk [vmem:[#allocation3 + $0x48] sm:$0xf] %vm1519_vm15, %v1436_v27  ;;  %v648_v58 = vor.u32 %v646_v26, %v645_v18 }
 0x11c   : > { %v3286_v16 = vrot.slane %v3285_v7, 4  ;;  %v6903_v61 = vrot.slane %v1200_v45, 4  ;;  %v2721_v54 = vrot.slane %v6890_v33, 5  ;;  %v2130_v57 = vld [vmem:[#allocation2 + $0xc0] sm:$0xf]  ;;  %v649_v2 = vrot.slane %v645_v18, 4 }
 0x11d   : > { %v1010_v63 = vld [vmem:[#allocation2 + $0x58] sm:$0xf]  ;;  %v6907_v0 = vrot.slane %v651_v44, 7  ;;  %v2131_v51 = vld [vmem:[#allocation2 + $0xc4] sm:$0xf]  ;;  %v3296_v17 = vrot.slane %v3295_v32, 4  ;;  %v1196_v6 = vsel %vm5809_vm14, %v6899_v49, %v6823_v55  ;;  %v1696_v49 = vsel %vm5752_vm9, %v5120_v5, %v1695_v50 }
 0x11e   : > { %1527 = vst.msk [vmem:[#allocation3 + $0x54] sm:$0xf] %vm1519_vm15, %v1438_v21  ;;  %v1902_v34 = vld [vmem:[#allocation2 + $0x48] sm:$0xf]  ;;  %v3300_v38 = vrot.slane %v3298_v13, 5  ;;  %v1208_v56 = vshrl.u32 %v1009_v14, 16  ;;  %v3291_v23 = vsel %vm5809_vm14, %v3286_v16, %v6860_v52  ;;  %v2802_v52 = vpop.permute.xlu0 %2801 }
 0x11f   : > { %v368_v24 = vsel %vm5739_vm7, 0, %v367_v46  ;;  %v3128_v62 = vld [vmem:[#allocation2 + $0x60] sm:$0xf]  ;;  %v1211_v19 = vshll.u32 %v1009_v14, 16  ;;  %v875_v60 = vld [vmem:[#allocation2 + $0x78] sm:$0xf]  ;;  %v656_v39 = vor.u32 %v654_v20, %v6907_v0  ;;  %1976 = vrot.lane.b32.xlu0 %v1902_v34, %s5641_s10 }
 0x120   : > { %369 = vst [vmem:[#allocation2 + $0x80] sm:$0x1] %v368_v24  ;;  %v2494_v40 = vshrl.u32 %v2130_v57, 16  ;;  %2079 = vst.msk [vmem:[#allocation3 + $0x138] sm:$0xf] %vm2052_vm3, %v2009_v15  ;;  %v1217_v25 = vshll.u32 %v1010_v63, 16  ;;  %v876_v37 = vsel %vm5784_vm12, %v648_v58, %v875_v60  ;;  %v3301_v36 = vsel %vm5809_vm14, %v3296_v17, %v3300_v38  ;;  %v2804_v58 = vpop.permute.xlu1 %2803 }
 0x121   : > { %v1903_v9 = vld [vmem:[#allocation2 + $0x4c] sm:$0xf]  ;;  %v2497_v12 = vshll.u32 %v2130_v57, 16  ;;  %v2503_v31 = vshll.u32 %v2131_v51, 16  ;;  %v1221_v53 = vshrl.u32 %v1010_v63, 16  ;;  %v657_v3 = vsel %vm5791_vm13, %v649_v2, %v656_v39 }
 0x122   : > { %877 = vst [vmem:[#allocation2 + $0x78] sm:$0xf] %v876_v37  ;;  %v2496_v7 = vrot.slane %v2494_v40, 4  ;;  %v2132_v45 = vld [vmem:[#allocation2 + $0xc8] sm:$0x1]  ;;  %v3303_v29 = vshrl.u32 %v3128_v62, 16  ;;  %1978 = vrot.lane.b32.xlu1 %v1903_v9, %s5641_s10  ;;  %v3595_v24 = vpop.permute.xlu0 %3594 }
 0x123   : > { %2080 = vst.msk [vmem:[#allocation3 + $0x144] sm:$0xf] %vm2052_vm3, %v2011_v59  ;;  %v3129_v26 = vld [vmem:[#allocation2 + $0x64] sm:$0xf]  ;;  %v6930_v35 = vrot.slane %v1208_v56, 4  ;;  %v2499_v18 = vrot.slane %v2497_v12, 5  ;;  %3562 = vrot.lane.b32.xlu0 %v3291_v23, %s5641_s10 }
 0x124   : > { %878 = vst.msk [vmem:[#allocation2 + $0x7c] sm:$0xf] %vm269_vm0, %v657_v3  ;;  %v2599_v44 = vld [vmem:[#allocation2 + $0x54] sm:$0xe]  ;;  %v3306_v47 = vshll.u32 %v3128_v62, 16  ;;  %v658_v28 = vrot.slane %v6907_v0, 4  ;;  %v1206_v0 = vsel %vm5809_vm14, %v6903_v61, %v6888_v30  ;;  %v3597_v12 = vpop.permute.xlu1 %3596 }
 0x125   : > { %v2505_v32 = vrot.slane %v2503_v31, 5  ;;  %v2507_v13 = vshrl.u32 %v2131_v51, 16  ;;  %2891 = vst.msk [vmem:[#allocation3 + $0x4c] sm:$0xf] %vm1519_vm15, %v2802_v52  ;;  %v2601_v27 = vld [vmem:[#allocation2 + $0x5c] sm:$0x1]  ;;  %v2500_v46 = vor.u32 %v2499_v18, %v2496_v7 }
 0x126   : > { %v6936_v14 = vrot.slane %v1211_v19, 5  ;;  %v6938_v20 = vrot.slane %v1217_v25, 5  ;;  %v2513_v16 = vshll.u32 %v2132_v45, 16  ;;  %v3312_v57 = vshll.u32 %v3129_v26, 16  ;;  %v1011_v63 = vld [vmem:[#allocation2 + $0x5c] sm:$0x1]  ;;  %3564 = vrot.lane.b32.xlu1 %v3301_v36, %s5641_s10 }
 0x127   : > { %v3316_v21 = vshrl.u32 %v3129_v26, 16  ;;  %v1223_v2 = vrot.slane %v1221_v53, 4  ;;  %v2509_v34 = vrot.slane %v2507_v13, 4  ;;  %2892 = vst.msk [vmem:[#allocation3 + $0x58] sm:$0xf] %vm1519_vm15, %v2804_v58  ;;  %v5136_v51 = vrot.slane %v2599_v44, 9  ;;  %1447 = vrot.lane.b32.xlu0 %v1196_v6, %s5640_s9  ;;  %v1776_v26 = vpop.permute.xlu0 %1775 }
 0x128   : > { %v2723_v17 = vrot.slane %v2721_v54, 4  ;;  %v879_v38 = vld [vmem:[#allocation2 + $0x80] sm:$0x1]  ;;  %v2501_v56 = vrot.slane %v2500_v46, 4  ;;  %v3305_v15 = vrot.slane %v3303_v29, 4  ;;  %v3308_v62 = vrot.slane %v3306_v47, 5 }
 0x129   : > { %v6949_v19 = vld [vmem:[#allocation2 + $0x58] sm:$0xf]  ;;  %v880_v60 = vsel %vm5729_vm5, %v658_v28, %v879_v38  ;;  %v2510_v39 = vor.u32 %v2509_v34, %v2505_v32  ;;  %3664 = vst.msk [vmem:[#allocation3 + $0x13c] sm:$0xf] %vm2052_vm3, %v3595_v24  ;;  %v2724_v30 = vrot.slane %v2601_v27, 5  ;;  %v1227_v61 = vshll.u32 %v1011_v63, 16  ;;  %v1778_v28 = vpop.permute.xlu1 %1777 }
 0x12a   : > { %v6954_v40 = vld [vmem:[#allocation2 + $0x64] sm:$0xf]  ;;  %881 = vst [vmem:[#allocation2 + $0x80] sm:$0x1] %v880_v60  ;;  %v2506_v9 = vsel %vm5809_vm14, %v2501_v56, %v2505_v32  ;;  %v2515_v25 = vrot.slane %v2513_v16, 5  ;;  %v6965_v31 = vrot.slane %v3312_v57, 5  ;;  %v1214_v23 = vor.u32 %v6936_v14, %v6930_v35  ;;  %1449 = vrot.lane.b32.xlu1 %v1206_v0, %s5640_s9 }
 0x12b   : > { %v257_v37 = vld [vmem:[%s5761_s7 + $0xa0] sm:$0xff]  ;;  %v3318_v59 = vrot.slane %v3316_v21, 4  ;;  %v1224_v53 = vor.u32 %v1223_v2, %v6938_v20  ;;  %v6970_v3 = vld [vmem:[#allocation2 + $0x54] sm:$0xe]  ;;  %2579 = vst.msk [vmem:[#allocation3 + $0x16c] sm:$0xf] %vm269_vm0, %v2506_v9  ;;  %v2722_v55 = vsel %vm5752_vm9, %v5136_v51, %v2721_v54  ;;  %v3309_v29 = vor.u32 %v3308_v62, %v3305_v15  ;;  %v2995_v21 = vpop.permute.xlu0 %2994 }
 0x12c   : > { %v258_v7 = vld [vmem:[%s5761_s7 + $0xa8] sm:$0xff]  ;;  %3665 = vst.msk [vmem:[#allocation3 + $0x148] sm:$0xf] %vm2052_vm3, %v3597_v12  ;;  %v6985_v6 = vld [vmem:[#allocation2 + $0x60] sm:$0xe]  ;;  %v1702_v45 = vrot.slane %v6949_v19, 5  ;;  %v6992_v41 = vpack.c.bf16 %v257_v37, %v257_v37  ;;  %v2725_v5 = vsel %vm5752_vm9, %v2723_v17, %v2724_v30  ;;  %2813 = vrot.lane.b32.xlu0 %v2722_v55, %s5640_s9 }
 0x12d   : > { %v2511_v36 = vrot.slane %v2510_v39, 4  ;;  %v1697_v33 = vrot.slane %v1695_v50, 4  ;;  %v3130_v54 = vld [vmem:[#allocation2 + $0x68] sm:$0x1]  ;;  %v2728_v35 = vrot.slane %v6954_v40, 5  ;;  %v5121_v44 = vrot.slane %v6970_v3, 9  ;;  %v2997_v15 = vpop.permute.xlu1 %2996 }
 0x12e   : > { %v314_v18 = vld [vmem:[#allocation2 + $0x84] sm:$0x1]  ;;  %1866 = vst.msk [vmem:[#allocation3 + $0x48] sm:$0xf] %vm1859_vm2, %v1776_v26  ;;  %v6997_v52 = vld [vmem:[#allocation2 + $0x68] sm:$0x1]  ;;  %v7004_v50 = vpack.c.bf16 %v258_v7, %v258_v7  ;;  %v3319_v32 = vor.u32 %v3318_v59, %v6965_v31  ;;  %2815 = vrot.lane.b32.xlu1 %v2725_v5, %s5640_s9 }
 0x12f   : > { %v7000_v47 = vld [vmem:[#allocation2 + $0x5c] sm:$0x1]  ;;  %v2516_v43 = vsel %vm5809_vm14, %v2511_v36, %v2515_v25  ;;  %v7008_v13 = vrot.slane %v1214_v23, 4  ;;  %v7010_v27 = vrot.slane %v1224_v53, 4  ;;  %v7012_v14 = vrot.slane %v1227_v61, 5  ;;  %v1969_v59 = vpop.permute.xlu0 %1968 }
 0x130   : > { %2580 = vst.msk [vmem:[#allocation3 + $0x178] sm:$0xf] %vm269_vm0, %v2516_v43  ;;  %v3322_v46 = vshll.u32 %v3130_v54, 16  ;;  %v5137_v16 = vrot.slane %v6985_v6, 9  ;;  %v7019_v58 = vrot.slane %v1702_v45, 4  ;;  %v315_v57 = vsel %vm5729_vm5, 0, %v314_v18  ;;  %1787 = vrot.lane.b32.xlu0 %v1696_v49, %s5639_s8 }
 0x131   : > { %1867 = vst.msk [vmem:[#allocation3 + $0x54] sm:$0xf] %vm1859_vm2, %v1778_v28  ;;  %v7024_v63 = vrot.slane %v3309_v29, 4  ;;  %v7028_v2 = vrot.slane %v2728_v35, 4  ;;  %v2731_v34 = vrot.slane %v6997_v52, 5  ;;  %v1705_v0 = vrot.slane %v7000_v47, 5  ;;  %v1971_v18 = vpop.permute.xlu1 %1970 }
 0x132   : > { %316 = vst [vmem:[#allocation2 + $0x84] sm:$0x1] %v315_v57  ;;  %3084 = vst.msk [vmem:[#allocation3 + $0x4c] sm:$0xf] %vm1859_vm2, %v2995_v21  ;;  %v1699_v51 = vsel %vm5752_vm9, %v1697_v33, %v1698_v8  ;;  %v2930_v17 = vld [vmem:[#allocation2 + $0x60] sm:$0xf] }
 0x133   : > { %v7037_v38 = vld [vmem:[#allocation2 + $0x60] sm:$0xf]  ;;  %v2100_v56 = vld [vmem:[#allocation2 + $0x48] sm:$0xf]  ;;  %v2101_v24 = vld [vmem:[#allocation2 + $0x4c] sm:$0xf]  ;;  %1789 = vrot.lane.b32.xlu1 %v1699_v51, %s5639_s8  ;;  %v3315_v42 = vsel %vm5809_vm14, %v7024_v63, %v6965_v31 }
 0x134   : > { %v3994_v62 = vld [vmem:[#allocation3 + $0x138] sm:$0xff]  ;;  %v3996_v60 = vld [vmem:[#allocation3 + $0x144] sm:$0xff]  ;;  %v7040_v30 = vrot.slane %v3319_v32, 4  ;;  %v660_v61 = vshrl.u32 %v6992_v41, 16  ;;  %3085 = vst.msk [vmem:[#allocation3 + $0x58] sm:$0xf] %vm1859_vm2, %v2997_v15  ;;  %3006 = vrot.lane.b32.xlu0 %v2930_v17, %s5639_s8 }
 0x135   : > { %v5533_v39 = vld [vmem:[#allocation3 + $0x13c] ss:$12 sps:$4 sm:$0xff]   ;;  %v5201_v10 = vcombine.low %v3994_v62, %v3996_v60  ;;  %v2931_v9 = vld [vmem:[#allocation2 + $0x64] sm:$0xf]  ;;  %v7044_v8 = vrot.slane %v3322_v46, 5  ;;  %v663_v37 = vshll.u32 %v6992_v41, 16 }
 0x136   : > { %v7046_v25 = vld [vmem:[#allocation2 + $0x64] sm:$0xf]  ;;  %v2102_v12 = vld [vmem:[#allocation2 + $0x50] sm:$0x1]  ;;  %4575 = vmatprep.mubr.bf16.mxu1 %v5533_v39  ;;  %v1232_v23 = vshrl.u32 %v7037_v38, 16  ;;  %v662_v53 = vrot.slane %v660_v61, 7 }
 0x137   : > { %v668_v7 = vshrl.u32 %v7004_v50, 16  ;;  %v671_v55 = vshll.u32 %v7004_v50, 16  ;;  %v370_v49 = vld [vmem:[#allocation2 + $0x8c] sm:$0x1]  ;;  %2059 = vst.msk [vmem:[#allocation3 + $0x48] sm:$0xf] %vm2052_vm3, %v1969_v59  ;;  %4576 = vmatmul.mubr.bf16.gmra.mxu1 %v5201_v10  ;;  %3008 = vrot.lane.b32.xlu1 %v2931_v9, %s5639_s8  ;;  %v3325_v63 = vsel %vm5809_vm14, %v7040_v30, %v7044_v8 }
 0x138   : > { %v1904_v36 = vld [vmem:[#allocation2 + $0x54] sm:$0xf]  ;;  %v1235_v26 = vshll.u32 %v7037_v38, 16  ;;  %v2254_v33 = vshrl.u32 %v2100_v56, 16  ;;  %v2257_v29 = vshll.u32 %v2100_v56, 16  ;;  %v2263_v54 = vshll.u32 %v2101_v24, 16  ;;  %v3555_v38 = vpop.permute.xlu0 %3554 }
 0x139   : > { %v665_v41 = vor.u32 %v663_v37, %v662_v53  ;;  %v666_v5 = vrot.slane %v662_v53, 4  ;;  %v7056_v43 = vrot.slane %v668_v7, 7  ;;  %v2267_v28 = vshrl.u32 %v2101_v24, 16  ;;  %2060 = vst.msk [vmem:[#allocation3 + $0x54] sm:$0xf] %vm2052_vm3, %v1971_v18  ;;  %v3557_v37 = vpop.permute.xlu1 %3556  ;;  %1980 = vrot.lane.b32.xlu0 %v1904_v36, %s5641_s10 }
 0x13a   : > { %v1905_v50 = vld [vmem:[#allocation2 + $0x58] sm:$0xf]  ;;  %v882_v32 = vld [vmem:[#allocation2 + $0x84] sm:$0xf]  ;;  %v2256_v46 = vrot.slane %v2254_v33, 4  ;;  %v2259_v57 = vrot.slane %v2257_v29, 5 }
 0x13b   : > { %v2265_v21 = vrot.slane %v2263_v54, 5  ;;  %v2273_v51 = vshll.u32 %v2102_v12, 16  ;;  %v1241_v56 = vshll.u32 %v7046_v25, 16  ;;  %v1014_v15 = vld [vmem:[#allocation2 + $0x68] sm:$0x1]  ;;  %v883_v62 = vsel %vm5784_vm12, %v665_v41, %v882_v32  ;;  %1982 = vrot.lane.b32.xlu1 %v1905_v50, %s5641_s10 }
 0x13c   : > { %v7061_v17 = vld [vmem:[#allocation2 + $0x60] sm:$0xe]  ;;  %v673_v24 = vor.u32 %v671_v55, %v7056_v43  ;;  %v2269_v60 = vrot.slane %v2267_v28, 4  ;;  %3644 = vst.msk [vmem:[#allocation3 + $0x4c] sm:$0xf] %vm2052_vm3, %v3555_v38  ;;  %v1245_v61 = vshrl.u32 %v7046_v25, 16  ;;  %v2260_v10 = vor.u32 %v2259_v57, %v2256_v46  ;;  %v1480_v48 = vpop.permute.xlu0 %1479 }
 0x13d   : > { %v7067_v39 = vld [vmem:[#allocation2 + $0x70] sm:$0xf]  ;;  %884 = vst [vmem:[#allocation2 + $0x84] sm:$0xf] %v883_v62  ;;  %v371_v9 = vsel %vm5739_vm7, 0, %v370_v49  ;;  %v2275_v25 = vrot.slane %v2273_v51, 5  ;;  %v1482_v8 = vpop.permute.xlu1 %1481  ;;  %3566 = vrot.lane.b32.xlu0 %v3315_v42, %s5641_s10 }
 0x13e   : > { %v7077_v12 = vld [vmem:[#allocation2 + $0x64] sm:$0xf]  ;;  %v674_v59 = vsel %vm5791_vm13, %v666_v5, %v673_v24  ;;  %v2270_v53 = vor.u32 %v2269_v60, %v2265_v21  ;;  %372 = vst [vmem:[#allocation2 + $0x8c] sm:$0x1] %v371_v9  ;;  %v936_v7 = vld [vmem:[#allocation2 + $0x48] sm:$0xf] }
 0x13f   : > { %3645 = vst.msk [vmem:[#allocation3 + $0x58] sm:$0xf] %vm2052_vm3, %v3557_v37  ;;  %v7082_v4 = vrot.slane %v1232_v23, 4  ;;  %v7084_v55 = vrot.slane %v1235_v26, 5  ;;  %v1251_v49 = vshll.u32 %v1014_v15, 16  ;;  %v2261_v36 = vrot.slane %v2260_v10, 4  ;;  %3568 = vrot.lane.b32.xlu1 %v3325_v63, %s5641_s10 }
 0x140   : > { %885 = vst.msk [vmem:[#allocation2 + $0x88] sm:$0xf] %vm269_vm0, %v674_v59  ;;  %968 = vst.msk [vmem:[#allocation3 + $0x90] sm:$0xf] %vm269_vm0, %v936_v7  ;;  %v3670_v31 = vld [vmem:[#allocation2 + $0x18] sm:$0xe]  ;;  %v1220_v23 = vsel %vm5809_vm14, %v7008_v13, %v6938_v20 }
 0x141   : > { %v3131_v26 = vld [vmem:[#allocation2 + $0x6c] sm:$0xf]  ;;  %v3336_v33 = vshll.u32 %v7067_v39, 16  ;;  %v2271_v29 = vrot.slane %v2270_v53, 4  ;;  %v3671_v54 = vld [vmem:[#allocation2 + $0x1c] sm:$0xf]  ;;  %v2266_v30 = vsel %vm5809_vm14, %v2261_v36, %v2265_v21  ;;  %v2848_v6 = vpop.permute.xlu1 %2847  ;;  %1451 = vrot.lane.b32.xlu0 %v1220_v23, %s5640_s9 }
 0x142   : > { %1548 = vst.msk [vmem:[#allocation3 + $0x150] sm:$0xf] %vm1519_vm15, %v1480_v48  ;;  %v7099_v18 = vrot.slane %v1241_v56, 5  ;;  %v7101_v41 = vrot.slane %v1245_v61, 4  ;;  %v5122_v5 = vrot.slane %v7061_v17, 9  ;;  %v3340_v20 = vshrl.u32 %v7067_v39, 16 }
 0x143   : > { %v675_v13 = vrot.slane %v7056_v43, 4  ;;  %2559 = vst.msk [vmem:[#allocation3 + $0x7c] sm:$0xf] %vm269_vm0, %v2266_v30  ;;  %v2276_v28 = vsel %vm5809_vm14, %v2271_v29, %v2275_v25  ;;  %v5146_v50 = vrot.slane %v3670_v31, 9  ;;  %v937_v32 = vld [vmem:[#allocation2 + $0x4c] sm:$0xf]  ;;  %v2846_v43 = vpop.permute.xlu0 %2845  ;;  %v1230_v56 = vsel %vm5809_vm14, %v7010_v27, %v7012_v14 }
 0x144   : > { %1549 = vst.msk [vmem:[#allocation3 + $0x15c] sm:$0xf] %vm1519_vm15, %v1482_v8  ;;  %v3327_v46 = vshrl.u32 %v3131_v26, 16  ;;  %v3330_v57 = vshll.u32 %v3131_v26, 16  ;;  %v1709_v21 = vrot.slane %v7077_v12, 5  ;;  %v3768_v38 = vrot.slane %v3671_v54, 5  ;;  %1453 = vrot.lane.b32.xlu1 %v1230_v56, %s5640_s9 }
 0x145   : > { %v7114_v51 = vld [vmem:[#allocation2 + $0x68] sm:$0x1]  ;;  %2560 = vst.msk [vmem:[#allocation3 + $0x88] sm:$0xf] %vm269_vm0, %v2276_v28  ;;  %969 = vst.msk [vmem:[#allocation3 + $0x9c] sm:$0xf] %vm269_vm0, %v937_v32  ;;  %v2729_v39 = vsel %vm5752_vm9, %v5137_v16, %v2728_v35  ;;  %v2732_v27 = vsel %vm5752_vm9, %v7028_v2, %v2731_v34  ;;  %v1238_v14 = vor.u32 %v7084_v55, %v7082_v4  ;;  %v1822_v29 = vpop.permute.xlu1 %1821 }
 0x146   : > { %v7123_v15 = vrot.slane %v3336_v33, 5  ;;  %v7125_v62 = vrot.slane %v1251_v49, 5  ;;  %v7127_v24 = vld [vmem:[#allocation2 + $0x70] sm:$0xf]  ;;  %v7129_v60 = vld [vmem:[#allocation2 + $0x6c] sm:$0xf]  ;;  %v1248_v61 = vor.u32 %v7101_v41, %v7099_v18  ;;  %v3769_v34 = vsel %vm5752_vm9, %v5146_v50, %v3768_v38  ;;  %2817 = vrot.lane.b32.xlu0 %v2729_v39, %s5640_s9 }
 0x147   : > { %2913 = vst.msk [vmem:[#allocation3 + $0x154] sm:$0xf] %vm1519_vm15, %v2846_v43  ;;  %v7147_v10 = vld [vmem:[#allocation2 + $0x70] sm:$0xf]  ;;  %v886_v40 = vld [vmem:[#allocation2 + $0x8c] sm:$0x1]  ;;  %v1820_v4 = vpop.permute.xlu0 %1819  ;;  %v1703_v54 = vsel %vm5752_vm9, %v5121_v44, %v1702_v45  ;;  %v1706_v44 = vsel %vm5752_vm9, %v7019_v58, %v1705_v0 }
 0x148   : > { %v3672_v9 = vld [vmem:[#allocation2 + $0x20] sm:$0x1]  ;;  %v3956_v16 = vld [vmem:[#allocation3 + $0x54] sm:$0xff]  ;;  %v3342_v37 = vrot.slane %v3340_v20, 4  ;;  %v887_v2 = vsel %vm5729_vm5, %v675_v13, %v886_v40  ;;  %v3770_v42 = vrot.slane %v3768_v38, 4  ;;  %v3329_v53 = vrot.slane %v3327_v46, 4  ;;  %2819 = vrot.lane.b32.xlu1 %v2732_v27, %s5640_s9 }
 0x149   : > { %v3954_v35 = vld [vmem:[#allocation3 + $0x48] sm:$0xff]  ;;  %2914 = vst.msk [vmem:[#allocation3 + $0x160] sm:$0xf] %vm1519_vm15, %v2848_v6  ;;  %v3332_v25 = vrot.slane %v3330_v57, 5  ;;  %v2735_v7 = vrot.slane %v7127_v24, 5  ;;  %v7162_v55 = vrot.slane %v1709_v21, 4 }
 0x14a   : > { %v5535_v52 = vld [vmem:[#allocation3 + $0x4c] ss:$12 sps:$4 sm:$0xff]   ;;  %v5171_v59 = vcombine.low %v3954_v35, %v3956_v16  ;;  %888 = vst [vmem:[#allocation2 + $0x8c] sm:$0x1] %v887_v2  ;;  %3910 = vst.msk [vmem:[#allocation3 + $0x8] sm:$0xf] %vm269_vm0, %v3769_v34  ;;  %v3343_v41 = vor.u32 %v3342_v37, %v7123_v15  ;;  %1791 = vrot.lane.b32.xlu0 %v1703_v54, %s5639_s8 }
 0x14b   : > { %4495 = vmatprep.mubr.bf16.mxu0 %v5535_v52  ;;  %v7158_v1 = vld [vmem:[#allocation2 + $0x6c] sm:$0xe]  ;;  %v1712_v49 = vrot.slane %v7114_v51, 5  ;;  %v1256_v36 = vshrl.u32 %v7129_v60, 16  ;;  %v3771_v31 = vrot.slane %v3672_v9, 5  ;;  %v7167_v63 = vrot.slane %v1238_v14, 4  ;;  %v3039_v45 = vpop.permute.xlu0 %3038 }
 0x14c   : > { %1888 = vst.msk [vmem:[#allocation3 + $0x150] sm:$0xf] %vm1859_vm2, %v1820_v4  ;;  %4496 = vmatmul.mubr.bf16.gmra.mxu0 %v5171_v59  ;;  %v3133_v48 = vld [vmem:[#allocation2 + $0x74] sm:$0x1]  ;;  %v1259_v23 = vshll.u32 %v7129_v60, 16  ;;  %v1265_v26 = vshll.u32 %v7147_v10, 16  ;;  %v3333_v28 = vor.u32 %v3332_v25, %v3329_v53  ;;  %1793 = vrot.lane.b32.xlu1 %v1706_v44, %s5639_s8 }
 0x14d   : > { %v1269_v33 = vshrl.u32 %v7147_v10, 16  ;;  %v3134_v30 = vld [vmem:[#allocation2 + $0x78] sm:$0xf]  ;;  %v3772_v8 = vsel %vm5752_vm9, %v3770_v42, %v3771_v31  ;;  %v3673_v20 = vld [vmem:[#allocation2 + $0x24] sm:$0xe]  ;;  %v7183_v50 = vrot.slane %v1248_v61, 4  ;;  %v3041_v10 = vpop.permute.xlu1 %3040 }
 0x14e   : > { %v3674_v13 = vld [vmem:[#allocation2 + $0x28] sm:$0xf]  ;;  %1889 = vst.msk [vmem:[#allocation3 + $0x15c] sm:$0xf] %vm1859_vm2, %v1822_v29  ;;  %v5138_v19 = vrot.slane %v7158_v1, 9  ;;  %v7190_v3 = vrot.slane %v2735_v7, 4 }
 0x14f   : > { %v7186_v32 = vld [vmem:[#allocation2 + $0x74] sm:$0x1]  ;;  %3911 = vst.msk [vmem:[#allocation3 + $0x14] sm:$0xf] %vm269_vm0, %v3772_v8  ;;  %v3346_v46 = vshll.u32 %v3133_v48, 16  ;;  %v1258_v38 = vrot.slane %v1256_v36, 4  ;;  %v1440_v34 = vpop.permute.xlu0 %1439 }
 0x150   : > { %v3135_v57 = vld [vmem:[#allocation2 + $0x7c] sm:$0xf]  ;;  %v7199_v43 = vld [vmem:[#allocation2 + $0x74] sm:$0x1]  ;;  %3106 = vst.msk [vmem:[#allocation3 + $0x154] sm:$0xf] %vm1859_vm2, %v3039_v45 }
 0x151   : > { %v2932_v56 = vld [vmem:[#allocation2 + $0x6c] sm:$0xf]  ;;  %v3351_v60 = vshrl.u32 %v3134_v30, 16  ;;  %v1261_v39 = vrot.slane %v1259_v23, 5  ;;  %v5147_v61 = vrot.slane %v3673_v20, 9  ;;  %v3775_v27 = vrot.slane %v3674_v13, 5 }
 0x152   : > { %v3675_v14 = vld [vmem:[#allocation2 + $0x2c] sm:$0x1]  ;;  %v7203_v47 = vrot.slane %v3343_v41, 4  ;;  %v3354_v40 = vshll.u32 %v3134_v30, 16  ;;  %v7205_v58 = vrot.slane %v1265_v26, 5  ;;  %v7207_v0 = vrot.slane %v1269_v33, 4  ;;  %v1442_v33 = vpop.permute.xlu1 %1441  ;;  %3010 = vrot.lane.b32.xlu0 %v2932_v56, %s5639_s8 }
 0x153   : > { %v2103_v9 = vld [vmem:[#allocation2 + $0x54] sm:$0xf]  ;;  %3107 = vst.msk [vmem:[#allocation3 + $0x160] sm:$0xf] %vm1859_vm2, %v3041_v10  ;;  %v2933_v6 = vld [vmem:[#allocation2 + $0x70] sm:$0xf]  ;;  %v3776_v2 = vsel %vm5752_vm9, %v5147_v61, %v3775_v27  ;;  %v1262_v31 = vor.u32 %v1261_v39, %v1258_v38 }
 0x154   : > { %v7210_v35 = vrot.slane %v3333_v28, 4  ;;  %v3360_v16 = vshll.u32 %v3135_v57, 16  ;;  %v3364_v52 = vshrl.u32 %v3135_v57, 16  ;;  %v7212_v37 = vld [vmem:[#allocation2 + $0x6c] sm:$0xe]  ;;  %v7217_v42 = vrot.slane %v3346_v46, 5  ;;  %3012 = vrot.lane.b32.xlu1 %v2933_v6, %s5639_s8  ;;  %v2013_v46 = vpop.permute.xlu0 %2012 }
 0x155   : > { %v2738_v59 = vrot.slane %v7186_v32, 5  ;;  %v3777_v53 = vrot.slane %v3775_v27, 4  ;;  %v3778_v25 = vrot.slane %v3675_v14, 5  ;;  %3912 = vst.msk [vmem:[#allocation3 + $0x20] sm:$0xf] %vm269_vm0, %v3776_v2  ;;  %v7222_v36 = vrot.slane %v3351_v60, 4 }
 0x156   : > { %v2104_v4 = vld [vmem:[#allocation2 + $0x58] sm:$0xf]  ;;  %1528 = vst.msk [vmem:[#allocation3 + $0x60] sm:$0xf] %vm1519_vm15, %v1440_v34  ;;  %v1275_v48 = vshll.u32 %v7199_v43, 16  ;;  %v2278_v23 = vshrl.u32 %v2103_v9, 16  ;;  %v1272_v41 = vor.u32 %v7207_v0, %v7205_v58  ;;  %v3339_v14 = vsel %vm5809_vm14, %v7210_v35, %v7123_v15  ;;  %v2015_v0 = vpop.permute.xlu1 %2014 }
 0x157   : > { %v2105_v26 = vld [vmem:[#allocation2 + $0x5c] sm:$0x1]  ;;  %v1906_v29 = vld [vmem:[#allocation2 + $0x60] sm:$0xf]  ;;  %v7226_v54 = vrot.slane %v3354_v40, 5  ;;  %v3779_v30 = vsel %vm5752_vm9, %v3777_v53, %v3778_v25  ;;  %v2281_v8 = vshll.u32 %v2103_v9, 16  ;;  %v3349_v9 = vsel %vm5809_vm14, %v7203_v47, %v7217_v42 }
 0x158   : > { %1529 = vst.msk [vmem:[#allocation3 + $0x6c] sm:$0xf] %vm1519_vm15, %v1442_v33  ;;  %v1907_v20 = vld [vmem:[#allocation2 + $0x64] sm:$0xf]  ;;  %v7233_v13 = vrot.slane %v3360_v16, 5  ;;  %v7235_v28 = vrot.slane %v3364_v52, 4  ;;  %1984 = vrot.lane.b32.xlu0 %v1906_v29, %s5641_s10  ;;  %v2806_v47 = vpop.permute.xlu0 %2805  ;;  %v1710_v32 = vsel %vm5752_vm9, %v5122_v5, %v1709_v21 }
 0x159   : > { %3913 = vst.msk [vmem:[#allocation3 + $0x2c] sm:$0xf] %vm269_vm0, %v3779_v30  ;;  %v2280_v45 = vrot.slane %v2278_v23, 4  ;;  %v2287_v44 = vshll.u32 %v2104_v4, 16  ;;  %v7239_v57 = vld [vmem:[#allocation2 + $0x78] sm:$0xe]  ;;  %v3357_v35 = vor.u32 %v7226_v54, %v7222_v36  ;;  %1986 = vrot.lane.b32.xlu1 %v1907_v20, %s5641_s10  ;;  %v1244_v20 = vsel %vm5809_vm14, %v7167_v63, %v7099_v18 }
 0x15a   : > { %v7241_v38 = vld [vmem:[#allocation2 + $0x70] sm:$0xf]  ;;  %v5123_v43 = vrot.slane %v7212_v37, 9  ;;  %v2283_v56 = vrot.slane %v2281_v8, 5  ;;  %v2291_v60 = vshrl.u32 %v2104_v4, 16  ;;  %v2297_v39 = vshll.u32 %v2105_v26, 16  ;;  %v2808_v8 = vpop.permute.xlu1 %2807 }
 0x15b   : > { %2081 = vst.msk [vmem:[#allocation3 + $0x150] sm:$0xf] %vm2052_vm3, %v2013_v46  ;;  %v7249_v61 = vrot.slane %v1262_v31, 4  ;;  %v7251_v27 = vld [vmem:[#allocation2 + $0x7c] sm:$0xf]  ;;  %v2289_v10 = vrot.slane %v2287_v44, 5  ;;  %v3367_v53 = vor.u32 %v7235_v28, %v7233_v13 }
 0x15c   : > { %v3676_v40 = vld [vmem:[#allocation2 + $0x30] sm:$0xe]  ;;  %v7258_v6 = vrot.slane %v1275_v48, 5  ;;  %v2284_v16 = vor.u32 %v2283_v56, %v2280_v45  ;;  %v2293_v52 = vrot.slane %v2291_v60, 4  ;;  %v3677_v2 = vld [vmem:[#allocation2 + $0x34] sm:$0xf]  ;;  %3570 = vrot.lane.b32.xlu0 %v3339_v14, %s5641_s10  ;;  %v1254_v56 = vsel %vm5809_vm14, %v7183_v50, %v7125_v62 }
 0x15d   : > { %v3678_v15 = vld [vmem:[#allocation2 + $0x38] sm:$0x1]  ;;  %2082 = vst.msk [vmem:[#allocation3 + $0x15c] sm:$0xf] %vm2052_vm3, %v2015_v0  ;;  %v3136_v34 = vld [vmem:[#allocation2 + $0x80] sm:$0x1]  ;;  %3572 = vrot.lane.b32.xlu1 %v3349_v9, %s5641_s10 }
 0x15e   : > { %v7265_v25 = vrot.slane %v1272_v41, 4  ;;  %v5139_v4 = vrot.slane %v7239_v57, 9  ;;  %v7269_v42 = vld [vmem:[#allocation2 + $0x74] sm:$0x1]  ;;  %v2285_v31 = vrot.slane %v2284_v16, 4  ;;  %v2294_v48 = vor.u32 %v2293_v52, %v2289_v10 }
 0x15f   : > { %v2299_v23 = vrot.slane %v2297_v39, 5  ;;  %v5148_v26 = vrot.slane %v3676_v40, 9  ;;  %2893 = vst.msk [vmem:[#allocation3 + $0x64] sm:$0xf] %vm1519_vm15, %v2806_v47  ;;  %v2742_v36 = vrot.slane %v7251_v27, 5  ;;  %v1716_v33 = vrot.slane %v7241_v38, 5 }
 0x160   : > { %v7274_v29 = vld [vmem:[#allocation2 + $0x78] sm:$0xf]  ;;  %v3782_v54 = vrot.slane %v3677_v2, 5  ;;  %v3785_v41 = vrot.slane %v3678_v15, 5  ;;  %v3679_v30 = vld [vmem:[#allocation2 + $0x3c] sm:$0xe]  ;;  %v2290_v44 = vsel %vm5809_vm14, %v2285_v31, %v2289_v10  ;;  %v3599_v10 = vpop.permute.xlu0 %3598  ;;  %1455 = vrot.lane.b32.xlu0 %v1244_v20, %s5640_s9 }
 0x161   : > { %v3370_v28 = vshll.u32 %v3136_v34, 16  ;;  %v7281_v45 = vld [vmem:[#allocation2 + $0x80] sm:$0x1]  ;;  %v2295_v46 = vrot.slane %v2294_v48, 4  ;;  %2894 = vst.msk [vmem:[#allocation3 + $0x70] sm:$0xf] %vm1519_vm15, %v2808_v8  ;;  %v3601_v34 = vpop.permute.xlu1 %3600  ;;  %1457 = vrot.lane.b32.xlu1 %v1254_v56, %s5640_s9 }
 0x162   : > { %v1719_v60 = vrot.slane %v7269_v42, 5  ;;  %2561 = vst.msk [vmem:[#allocation3 + $0x94] sm:$0xf] %vm269_vm0, %v2290_v44  ;;  %v3783_v18 = vsel %vm5752_vm9, %v5148_v26, %v3782_v54  ;;  %v3784_v63 = vrot.slane %v3782_v54, 4  ;;  %v3680_v39 = vld [vmem:[#allocation2 + $0x40] sm:$0xf] }
 0x163   : > { %v3681_v14 = vld [vmem:[#allocation2 + $0x44] sm:$0x1]  ;;  %v7295_v40 = vrot.slane %v3357_v35, 4  ;;  %v7297_v0 = vrot.slane %v3367_v53, 4  ;;  %v1019_v16 = vld [vmem:[#allocation2 + $0x7c] sm:$0xf]  ;;  %v2300_v62 = vsel %vm5809_vm14, %v2295_v46, %v2299_v23  ;;  %v2736_v23 = vsel %vm5752_vm9, %v5138_v19, %v2735_v7 }
 0x164   : > { %3914 = vst.msk [vmem:[#allocation3 + $0x38] sm:$0xf] %vm269_vm0, %v3783_v18  ;;  %v5149_v50 = vrot.slane %v3679_v30, 9  ;;  %v7305_v52 = vrot.slane %v2742_v36, 4  ;;  %v2745_v9 = vrot.slane %v7281_v45, 5  ;;  %v3786_v15 = vsel %vm5752_vm9, %v3784_v63, %v3785_v41  ;;  %2821 = vrot.lane.b32.xlu0 %v2736_v23, %s5640_s9 }
 0x165   : > { %3666 = vst.msk [vmem:[#allocation3 + $0x154] sm:$0xf] %vm2052_vm3, %v3599_v10  ;;  %v1020_v2 = vld [vmem:[#allocation2 + $0x80] sm:$0x1]  ;;  %v3789_v35 = vrot.slane %v3680_v39, 5  ;;  %v7312_v53 = vrot.slane %v3370_v28, 5  ;;  %v1780_v28 = vpop.permute.xlu0 %1779  ;;  %v2739_v19 = vsel %vm5752_vm9, %v7190_v3, %v2738_v59  ;;  %v1713_v3 = vsel %vm5752_vm9, %v7162_v55, %v1712_v49 }
 0x166   : > { %2562 = vst.msk [vmem:[#allocation3 + $0xa0] sm:$0xf] %vm269_vm0, %v2300_v62  ;;  %v7316_v47 = vrot.slane %v1716_v33, 4  ;;  %v1280_v31 = vshrl.u32 %v7274_v29, 16  ;;  %3915 = vst.msk [vmem:[#allocation3 + $0x44] sm:$0xf] %vm269_vm0, %v3786_v15  ;;  %2823 = vrot.lane.b32.xlu1 %v2739_v19, %s5640_s9  ;;  %v1717_v45 = vsel %vm5752_vm9, %v5123_v43, %v1716_v33 }
 0x167   : > { %v3792_v48 = vrot.slane %v3681_v14, 5  ;;  %3667 = vst.msk [vmem:[#allocation3 + $0x160] sm:$0xf] %vm2052_vm3, %v3601_v34  ;;  %v1283_v26 = vshll.u32 %v7274_v29, 16  ;;  %v7328_v54 = vld [vmem:[#allocation2 + $0x78] sm:$0xe]  ;;  %v3790_v41 = vsel %vm5752_vm9, %v5149_v50, %v3789_v35  ;;  %v1782_v14 = vpop.permute.xlu1 %1781 }
 0x168   : > { %v3791_v30 = vrot.slane %v3789_v35, 4  ;;  %v3682_v8 = vld [vmem:[#allocation2 + $0x48] sm:$0xe]  ;;  %v3683_v20 = vld [vmem:[#allocation2 + $0x4c] sm:$0xf]  ;;  %v1289_v44 = vshll.u32 %v1019_v16, 16  ;;  %1795 = vrot.lane.b32.xlu0 %v1710_v32, %s5639_s8 }
 0x169   : > { %v1293_v24 = vshrl.u32 %v1019_v16, 16  ;;  %v1299_v46 = vshll.u32 %v1020_v2, 16  ;;  %3916 = vst.msk [vmem:[#allocation3 + $0x50] sm:$0xf] %vm269_vm0, %v3790_v41  ;;  %v3684_v1 = vld [vmem:[#allocation2 + $0x50] sm:$0x1]  ;;  %v2999_v51 = vpop.permute.xlu0 %2998 }
 0x16a   : > { %v5150_v7 = vrot.slane %v3682_v8, 9  ;;  %1868 = vst.msk [vmem:[#allocation3 + $0x60] sm:$0xf] %vm1859_vm2, %v1780_v28  ;;  %v7340_v29 = vld [vmem:[#allocation2 + $0x84] sm:$0xf]  ;;  %v3793_v56 = vsel %vm5752_vm9, %v3791_v30, %v3792_v48  ;;  %v3796_v18 = vrot.slane %v3683_v20, 5  ;;  %1797 = vrot.lane.b32.xlu1 %v1713_v3, %s5639_s8 }
 0x16b   : > { %v3799_v63 = vrot.slane %v3684_v1, 5  ;;  %v3685_v39 = vld [vmem:[#allocation2 + $0x54] sm:$0xe]  ;;  %v7356_v59 = vrot.slane %v1280_v31, 4  ;;  %3917 = vst.msk [vmem:[#allocation3 + $0x5c] sm:$0xf] %vm269_vm0, %v3793_v56 }
 0x16c   : > { %v3686_v10 = vld [vmem:[#allocation2 + $0x58] sm:$0xf]  ;;  %v3687_v16 = vld [vmem:[#allocation2 + $0x5c] sm:$0x1]  ;;  %v5151_v62 = vrot.slane %v3685_v39, 9  ;;  %v3797_v17 = vsel %vm5752_vm9, %v5150_v7, %v3796_v18  ;;  %v3798_v12 = vrot.slane %v3796_v18, 4 }
 0x16d   : > { %1869 = vst.msk [vmem:[#allocation3 + $0x6c] sm:$0xf] %vm1859_vm2, %v1782_v14  ;;  %v3803_v5 = vrot.slane %v3686_v10, 5  ;;  %v3806_v21 = vrot.slane %v3687_v16, 5  ;;  %v7363_v50 = vrot.slane %v1283_v26, 5  ;;  %v7365_v55 = vrot.slane %v1289_v44, 5  ;;  %v3001_v26 = vpop.permute.xlu1 %3000  ;;  %v1973_v56 = vpop.permute.xlu0 %1972 }
 0x16e   : > { %v7367_v49 = vrot.slane %v1293_v24, 4  ;;  %v5124_v2 = vrot.slane %v7328_v54, 9  ;;  %3918 = vst.msk [vmem:[#allocation3 + $0x68] sm:$0xf] %vm269_vm0, %v3797_v17  ;;  %v2934_v15 = vld [vmem:[#allocation2 + $0x78] sm:$0xf]  ;;  %v3800_v31 = vsel %vm5752_vm9, %v3798_v12, %v3799_v63 }
 0x16f   : > { %3086 = vst.msk [vmem:[#allocation3 + $0x64] sm:$0xf] %vm1859_vm2, %v2999_v51  ;;  %v7372_v35 = vrot.slane %v1299_v46, 5  ;;  %v7374_v34 = vld [vmem:[#allocation2 + $0x7c] sm:$0xf]  ;;  %v3804_v48 = vsel %vm5752_vm9, %v5151_v62, %v3803_v5  ;;  %v3805_v23 = vrot.slane %v3803_v5, 4  ;;  %3014 = vrot.lane.b32.xlu0 %v2934_v15, %s5639_s8  ;;  %v1286_v51 = vor.u32 %v7363_v50, %v7356_v59 }
 0x170   : > { %v3998_v41 = vld [vmem:[#allocation3 + $0x150] sm:$0xff]  ;;  %v4000_v30 = vld [vmem:[#allocation3 + $0x15c] sm:$0xff]  ;;  %v3375_v20 = vshrl.u32 %v7340_v29, 16  ;;  %v3378_v28 = vshll.u32 %v7340_v29, 16  ;;  %v7383_v44 = vld [vmem:[#allocation2 + $0x80] sm:$0x1] }
 0x171   : > { %v5537_v8 = vld [vmem:[#allocation3 + $0x154] ss:$12 sps:$4 sm:$0xff]   ;;  %3919 = vst.msk [vmem:[#allocation3 + $0x74] sm:$0xf] %vm269_vm0, %v3800_v31  ;;  %3920 = vst.msk [vmem:[#allocation3 + $0x80] sm:$0xf] %vm269_vm0, %v3804_v48  ;;  %v5204_v24 = vcombine.low %v3998_v41, %v4000_v30  ;;  %v3807_v1 = vsel %vm5752_vm9, %v3805_v23, %v3806_v21  ;;  %v1975_v62 = vpop.permute.xlu1 %1974  ;;  %v3559_v15 = vpop.permute.xlu0 %3558 }
 0x172   : > { %3087 = vst.msk [vmem:[#allocation3 + $0x70] sm:$0xf] %vm1859_vm2, %v3001_v26  ;;  %v2935_v46 = vld [vmem:[#allocation2 + $0x7c] sm:$0xf]  ;;  %v938_v7 = vld [vmem:[#allocation2 + $0x54] sm:$0xf]  ;;  %4583 = vmatprep.mubr.bf16.mxu1 %v5537_v8  ;;  %v1296_v8 = vor.u32 %v7367_v49, %v7365_v55  ;;  %v1268_v49 = vsel %vm5809_vm14, %v7249_v61, %v7205_v58 }
 0x173   : > { %v3688_v19 = vld [vmem:[#allocation2 + $0x60] sm:$0xe]  ;;  %v1723_v29 = vrot.slane %v7374_v34, 5  ;;  %3921 = vst.msk [vmem:[#allocation3 + $0x8c] sm:$0xf] %vm269_vm0, %v3807_v1  ;;  %4584 = vmatmul.mubr.bf16.gmra.mxu1 %v5204_v24  ;;  %v3377_v3 = vrot.slane %v3375_v20, 4  ;;  %3016 = vrot.lane.b32.xlu1 %v2935_v46, %s5639_s8  ;;  %v3363_v20 = vsel %vm5809_vm14, %v7295_v40, %v7233_v13 }
 0x174   : > { %970 = vst.msk [vmem:[#allocation3 + $0xa8] sm:$0xf] %vm269_vm0, %v938_v7  ;;  %v3689_v18 = vld [vmem:[#allocation2 + $0x64] sm:$0xf]  ;;  %v3690_v63 = vld [vmem:[#allocation2 + $0x68] sm:$0x1] }
 0x175   : > { %v5152_v39 = vrot.slane %v3688_v19, 9  ;;  %2061 = vst.msk [vmem:[#allocation3 + $0x60] sm:$0xf] %vm2052_vm3, %v1973_v56  ;;  %v1908_v14 = vld [vmem:[#allocation2 + $0x6c] sm:$0xf]  ;;  %v3810_v10 = vrot.slane %v3689_v18, 5  ;;  %v3561_v1 = vpop.permute.xlu1 %3560 }
 0x176   : > { %v3138_v32 = vld [vmem:[#allocation2 + $0x88] sm:$0xf]  ;;  %v3813_v16 = vrot.slane %v3690_v63, 5  ;;  %v3380_v17 = vrot.slane %v3378_v28, 5  ;;  %v7396_v12 = vld [vmem:[#allocation2 + $0x90] sm:$0xf]  ;;  %v3373_v28 = vsel %vm5809_vm14, %v7297_v0, %v7312_v53  ;;  %1988 = vrot.lane.b32.xlu0 %v1908_v14, %s5641_s10  ;;  %v1484_v63 = vpop.permute.xlu0 %1483 }
 0x177   : > { %v939_v5 = vld [vmem:[#allocation2 + $0x58] sm:$0xf]  ;;  %2062 = vst.msk [vmem:[#allocation3 + $0x6c] sm:$0xf] %vm2052_vm3, %v1975_v62  ;;  %v1909_v21 = vld [vmem:[#allocation2 + $0x70] sm:$0xf]  ;;  %v3811_v23 = vsel %vm5752_vm9, %v5152_v39, %v3810_v10 }
 0x178   : > { %v7401_v31 = vld [vmem:[#allocation2 + $0x88] sm:$0xf]  ;;  %v1726_v48 = vrot.slane %v7383_v44, 5  ;;  %v3812_v26 = vrot.slane %v3810_v10, 4  ;;  %971 = vst.msk [vmem:[#allocation3 + $0xb4] sm:$0xf] %vm269_vm0, %v939_v5  ;;  %v3381_v7 = vor.u32 %v3380_v17, %v3377_v3  ;;  %1990 = vrot.lane.b32.xlu1 %v1909_v21, %s5641_s10 }
 0x179   : > { %v3384_v41 = vshll.u32 %v3138_v32, 16  ;;  %v3388_v30 = vshrl.u32 %v3138_v32, 16  ;;  %3922 = vst.msk [vmem:[#allocation3 + $0x98] sm:$0xf] %vm269_vm0, %v3811_v23  ;;  %v3691_v59 = vld [vmem:[#allocation2 + $0x6c] sm:$0xe] }
 0x17a   : > { %v3692_v50 = vld [vmem:[#allocation2 + $0x70] sm:$0xf]  ;;  %3646 = vst.msk [vmem:[#allocation3 + $0x64] sm:$0xf] %vm2052_vm3, %v3559_v15  ;;  %v7424_v24 = vld [vmem:[#allocation2 + $0x84] sm:$0xe]  ;;  %v3814_v46 = vsel %vm5752_vm9, %v3812_v26, %v3813_v16  ;;  %3574 = vrot.lane.b32.xlu0 %v3363_v20, %s5641_s10  ;;  %v2850_v20 = vpop.permute.xlu0 %2849 }
 0x17b   : > { %v2749_v13 = vrot.slane %v7401_v31, 5  ;;  %v7432_v40 = vrot.slane %v1723_v29, 4  ;;  %3923 = vst.msk [vmem:[#allocation3 + $0xa4] sm:$0xf] %vm269_vm0, %v3814_v46  ;;  %v3693_v0 = vld [vmem:[#allocation2 + $0x74] sm:$0x1] }
 0x17c   : > { %v5153_v53 = vrot.slane %v3691_v59, 9  ;;  %3647 = vst.msk [vmem:[#allocation3 + $0x70] sm:$0xf] %vm2052_vm3, %v3561_v1  ;;  %v7436_v58 = vrot.slane %v1286_v51, 4  ;;  %v7438_v61 = vld [vmem:[#allocation2 + $0x94] sm:$0xf]  ;;  %v1486_v51 = vpop.permute.xlu1 %1485  ;;  %3576 = vrot.lane.b32.xlu1 %v3373_v28, %s5641_s10 }
 0x17d   : > { %v3399_v19 = vshrl.u32 %v7396_v12, 16  ;;  %v3817_v56 = vrot.slane %v3692_v50, 5  ;;  %v3820_v18 = vrot.slane %v3693_v0, 5  ;;  %v7442_v39 = vrot.slane %v3384_v41, 5  ;;  %v2106_v16 = vld [vmem:[#allocation2 + $0x60] sm:$0xf] }
 0x17e   : > { %v7444_v14 = vrot.slane %v3388_v30, 4  ;;  %v7446_v32 = vrot.slane %v1296_v8, 4  ;;  %v5140_v10 = vrot.slane %v7424_v24, 9  ;;  %1550 = vst.msk [vmem:[#allocation3 + $0x168] sm:$0xf] %vm1519_vm15, %v1484_v63  ;;  %v3402_v62 = vshll.u32 %v7396_v12, 16  ;;  %1459 = vrot.lane.b32.xlu0 %v1268_v49, %s5640_s9  ;;  %v1824_v57 = vpop.permute.xlu0 %1823 }
 0x17f   : > { %v3818_v3 = vsel %vm5752_vm9, %v5153_v53, %v3817_v56  ;;  %v3819_v17 = vrot.slane %v3817_v56, 4  ;;  %v2107_v5 = vld [vmem:[#allocation2 + $0x64] sm:$0xf]  ;;  %v2302_v21 = vshrl.u32 %v2106_v16, 16  ;;  %v7454_v23 = vrot.slane %v3381_v7, 4 }
 0x180   : > { %v7458_v26 = vrot.slane %v2749_v13, 4  ;;  %3924 = vst.msk [vmem:[#allocation3 + $0xb0] sm:$0xf] %vm269_vm0, %v3818_v3  ;;  %v2305_v15 = vshll.u32 %v2106_v16, 16  ;;  %v2311_v41 = vshll.u32 %v2107_v5, 16  ;;  %v7462_v30 = vrot.slane %v3399_v19, 4  ;;  %v2852_v16 = vpop.permute.xlu1 %2851 }
 0x181   : > { %v2108_v12 = vld [vmem:[#allocation2 + $0x68] sm:$0x1]  ;;  %1551 = vst.msk [vmem:[#allocation3 + $0x174] sm:$0xf] %vm1519_vm15, %v1486_v51  ;;  %v3821_v8 = vsel %vm5752_vm9, %v3819_v17, %v3820_v18  ;;  %v2304_v59 = vrot.slane %v2302_v21, 4  ;;  %v2315_v50 = vshrl.u32 %v2107_v5, 16  ;;  %v1278_v19 = vsel %vm5809_vm14, %v7265_v25, %v7258_v6 }
 0x182   : > { %v3408_v46 = vshll.u32 %v7438_v61, 16  ;;  %v3412_v1 = vshrl.u32 %v7438_v61, 16  ;;  %3925 = vst.msk [vmem:[#allocation3 + $0xbc] sm:$0xf] %vm269_vm0, %v3821_v8  ;;  %v2307_v7 = vrot.slane %v2305_v15, 5  ;;  %v2313_v0 = vrot.slane %v2311_v41, 5  ;;  %1461 = vrot.lane.b32.xlu1 %v1278_v19, %s5640_s9 }
 0x183   : > { %v3694_v53 = vld [vmem:[#allocation2 + $0x78] sm:$0xe]  ;;  %2915 = vst.msk [vmem:[#allocation3 + $0x16c] sm:$0xf] %vm1519_vm15, %v2850_v20  ;;  %v7475_v18 = vrot.slane %v3402_v62, 5  ;;  %v2317_v28 = vrot.slane %v2315_v50, 4  ;;  %v2743_v5 = vsel %vm5752_vm9, %v5139_v4, %v2742_v36  ;;  %v3391_v6 = vor.u32 %v7444_v14, %v7442_v39 }
 0x184   : > { %v3958_v56 = vld [vmem:[#allocation3 + $0x60] sm:$0xff]  ;;  %v2321_v63 = vshll.u32 %v2108_v12, 16  ;;  %v3960_v3 = vld [vmem:[#allocation3 + $0x6c] sm:$0xff]  ;;  %v7484_v21 = vld [vmem:[#allocation2 + $0x8c] sm:$0x1]  ;;  %v2308_v25 = vor.u32 %v2307_v7, %v2304_v59  ;;  %v5154_v51 = vrot.slane %v3694_v53, 9  ;;  %v2746_v4 = vsel %vm5752_vm9, %v7305_v52, %v2745_v9  ;;  %2825 = vrot.lane.b32.xlu0 %v2743_v5, %s5640_s9 }
 0x185   : > { %v5539_v17 = vld [vmem:[#allocation3 + $0x64] ss:$12 sps:$4 sm:$0xff]   ;;  %2916 = vst.msk [vmem:[#allocation3 + $0x178] sm:$0xf] %vm1519_vm15, %v2852_v16  ;;  %v5174_v49 = vcombine.low %v3958_v56, %v3960_v3  ;;  %v2318_v15 = vor.u32 %v2317_v28, %v2313_v0  ;;  %v3696_v12 = vld [vmem:[#allocation2 + $0x80] sm:$0x1]  ;;  %v1826_v56 = vpop.permute.xlu1 %1825  ;;  %v3405_v61 = vor.u32 %v7475_v18, %v7462_v30 }
 0x186   : > { %v3695_v62 = vld [vmem:[#allocation2 + $0x7c] sm:$0xf]  ;;  %v2323_v41 = vrot.slane %v2321_v63, 5  ;;  %v3697_v8 = vld [vmem:[#allocation2 + $0x84] sm:$0xe]  ;;  %4503 = vmatprep.mubr.bf16.mxu0 %v5539_v17  ;;  %v2309_v36 = vrot.slane %v2308_v25, 4  ;;  %2827 = vrot.lane.b32.xlu1 %v2746_v4, %s5640_s9 }
 0x187   : > { %v3824_v27 = vrot.slane %v3695_v62, 5  ;;  %v3827_v14 = vrot.slane %v3696_v12, 5  ;;  %v3698_v59 = vld [vmem:[#allocation2 + $0x88] sm:$0xf]  ;;  %v3699_v50 = vld [vmem:[#allocation2 + $0x8c] sm:$0x1]  ;;  %4504 = vmatmul.mubr.bf16.gmra.mxu0 %v5174_v49 }
 0x188   : > { %1890 = vst.msk [vmem:[#allocation3 + $0x168] sm:$0xf] %vm1859_vm2, %v1824_v57  ;;  %v2319_v20 = vrot.slane %v2318_v15, 4  ;;  %v5155_v19 = vrot.slane %v3697_v8, 9  ;;  %v2314_v52 = vsel %vm5809_vm14, %v2309_v36, %v2313_v0  ;;  %v3831_v9 = vrot.slane %v3698_v59, 5  ;;  %v3043_v0 = vpop.permute.xlu0 %3042  ;;  %1799 = vrot.lane.b32.xlu0 %v1717_v45, %s5639_s8 }
 0x189   : > { %v3825_v7 = vsel %vm5752_vm9, %v5154_v51, %v3824_v27  ;;  %v3826_v53 = vrot.slane %v3824_v27, 4  ;;  %v3834_v28 = vrot.slane %v3699_v50, 5  ;;  %v3700_v63 = vld [vmem:[#allocation2 + $0x90] sm:$0xe]  ;;  %v3701_v16 = vld [vmem:[#allocation2 + $0x94] sm:$0xf]  ;;  %v1720_v51 = vsel %vm5752_vm9, %v7316_v47, %v1719_v60  ;;  %v3045_v8 = vpop.permute.xlu1 %3044 }
 0x18a   : > { %3926 = vst.msk [vmem:[#allocation3 + $0xc8] sm:$0xf] %vm269_vm0, %v3825_v7  ;;  %v7509_v3 = vrot.slane %v3391_v6, 4  ;;  %v3394_v38 = vshll.u32 %v7484_v21, 16  ;;  %2563 = vst.msk [vmem:[#allocation3 + $0xac] sm:$0xf] %vm269_vm0, %v2314_v52  ;;  %v2324_v37 = vsel %vm5809_vm14, %v2319_v20, %v2323_v41  ;;  %v3832_v17 = vsel %vm5752_vm9, %v5155_v19, %v3831_v9  ;;  %1801 = vrot.lane.b32.xlu1 %v1720_v51, %s5639_s8 }
 0x18b   : > { %1891 = vst.msk [vmem:[#allocation3 + $0x174] sm:$0xf] %vm1859_vm2, %v1826_v56  ;;  %v3828_v43 = vsel %vm5752_vm9, %v3826_v53, %v3827_v14  ;;  %v3702_v33 = vld [vmem:[#allocation2 + $0x98] sm:$0x1]  ;;  %v3833_v5 = vrot.slane %v3831_v9, 4  ;;  %v5156_v6 = vrot.slane %v3700_v63, 9 }
 0x18c   : > { %2564 = vst.msk [vmem:[#allocation3 + $0xb8] sm:$0xf] %vm269_vm0, %v2324_v37  ;;  %3927 = vst.msk [vmem:[#allocation3 + $0xd4] sm:$0xf] %vm269_vm0, %v3828_v43  ;;  %v3838_v25 = vrot.slane %v3701_v16, 5  ;;  %v3841_v15 = vrot.slane %v3702_v33, 5  ;;  %v1444_v53 = vpop.permute.xlu0 %1443 }
 0x18d   : > { %v3703_v62 = vld [vmem:[#allocation2 + $0x9c] sm:$0xe]  ;;  %3108 = vst.msk [vmem:[#allocation3 + $0x16c] sm:$0xf] %vm1859_vm2, %v3043_v0  ;;  %v2936_v49 = vld [vmem:[#allocation2 + $0x84] sm:$0xf]  ;;  %v3835_v57 = vsel %vm5752_vm9, %v3833_v5, %v3834_v28  ;;  %v1446_v33 = vpop.permute.xlu1 %1445 }
 0x18e   : > { %3928 = vst.msk [vmem:[#allocation3 + $0xe0] sm:$0xf] %vm269_vm0, %v3832_v17  ;;  %v3704_v41 = vld [vmem:[#allocation2 + $0xa0] sm:$0xf]  ;;  %v3705_v12 = vld [vmem:[#allocation2 + $0xa4] sm:$0x1]  ;;  %v3839_v42 = vsel %vm5752_vm9, %v5156_v6, %v3838_v25  ;;  %3018 = vrot.lane.b32.xlu0 %v2936_v49, %s5639_s8 }
 0x18f   : > { %v5157_v27 = vrot.slane %v3703_v62, 9  ;;  %v3840_v4 = vrot.slane %v3838_v25, 4  ;;  %v3845_v36 = vrot.slane %v3704_v41, 5  ;;  %v940_v14 = vld [vmem:[#allocation2 + $0x60] sm:$0xf]  ;;  %v3848_v59 = vrot.slane %v3705_v12, 5 }
 0x190   : > { %v3706_v60 = vld [vmem:[#allocation2 + $0xa8] sm:$0xe]  ;;  %3109 = vst.msk [vmem:[#allocation3 + $0x178] sm:$0xf] %vm1859_vm2, %v3045_v8  ;;  %v3707_v50 = vld [vmem:[#allocation2 + $0xac] sm:$0xf] }
 0x191   : > { %v2937_v47 = vld [vmem:[#allocation2 + $0x88] sm:$0xf]  ;;  %3929 = vst.msk [vmem:[#allocation3 + $0xec] sm:$0xf] %vm269_vm0, %v3835_v57  ;;  %3930 = vst.msk [vmem:[#allocation3 + $0xf8] sm:$0xf] %vm269_vm0, %v3839_v42  ;;  %v3842_v19 = vsel %vm5752_vm9, %v3840_v4, %v3841_v15  ;;  %v3846_v56 = vsel %vm5752_vm9, %v5157_v27, %v3845_v36  ;;  %v2017_v57 = vpop.permute.xlu0 %2016 }
 0x192   : > { %972 = vst.msk [vmem:[#allocation3 + $0xc0] sm:$0xf] %vm269_vm0, %v940_v14  ;;  %v3708_v20 = vld [vmem:[#allocation2 + $0xb0] sm:$0x1]  ;;  %v5158_v7 = vrot.slane %v3706_v60, 9  ;;  %v3847_v45 = vrot.slane %v3845_v36, 4  ;;  %3020 = vrot.lane.b32.xlu1 %v2937_v47, %s5639_s8 }
 0x193   : > { %v3852_v52 = vrot.slane %v3707_v50, 5  ;;  %v941_v9 = vld [vmem:[#allocation2 + $0x64] sm:$0xf]  ;;  %v3709_v28 = vld [vmem:[#allocation2 + $0xb4] sm:$0xe]  ;;  %v3855_v16 = vrot.slane %v3708_v20, 5  ;;  %v2019_v50 = vpop.permute.xlu1 %2018  ;;  %v3387_v20 = vsel %vm5809_vm14, %v7454_v23, %v7442_v39 }
 0x194   : > { %1530 = vst.msk [vmem:[#allocation3 + $0x78] sm:$0xf] %vm1519_vm15, %v1444_v53  ;;  %v1910_v63 = vld [vmem:[#allocation2 + $0x78] sm:$0xf]  ;;  %v5159_v43 = vrot.slane %v3709_v28, 9  ;;  %v3849_v0 = vsel %vm5752_vm9, %v3847_v45, %v3848_v59  ;;  %v3396_v15 = vrot.slane %v3394_v38, 5 }
 0x195   : > { %3931 = vst.msk [vmem:[#allocation3 + $0x104] sm:$0xf] %vm269_vm0, %v3842_v19  ;;  %3932 = vst.msk [vmem:[#allocation3 + $0x110] sm:$0xf] %vm269_vm0, %v3846_v56  ;;  %v3710_v37 = vld [vmem:[#allocation2 + $0xb8] sm:$0xf]  ;;  %v3853_v17 = vsel %vm5752_vm9, %v5158_v7, %v3852_v52  ;;  %1992 = vrot.lane.b32.xlu0 %v1910_v63, %s5641_s10  ;;  %v2810_v39 = vpop.permute.xlu0 %2809 }
 0x196   : > { %973 = vst.msk [vmem:[#allocation3 + $0xcc] sm:$0xf] %vm269_vm0, %v941_v9  ;;  %v3854_v5 = vrot.slane %v3852_v52, 4  ;;  %v3711_v6 = vld [vmem:[#allocation2 + $0xbc] sm:$0x1]  ;;  %v3859_v25 = vrot.slane %v3710_v37, 5  ;;  %v3397_v23 = vsel %vm5809_vm14, %v7509_v3, %v3396_v15  ;;  %v1292_v3 = vsel %vm5809_vm14, %v7436_v58, %v7365_v55 }
 0x197   : > { %v2109_v62 = vld [vmem:[#allocation2 + $0x6c] sm:$0xf]  ;;  %1531 = vst.msk [vmem:[#allocation3 + $0x84] sm:$0xf] %vm1519_vm15, %v1446_v33  ;;  %v1911_v51 = vld [vmem:[#allocation2 + $0x7c] sm:$0xf]  ;;  %v1302_v55 = vsel %vm5809_vm14, %v7446_v32, %v7372_v35 }
 0x198   : > { %v7555_v41 = vld [vmem:[#allocation2 + $0x8c] sm:$0x1]  ;;  %v7559_v49 = vrot.slane %v3408_v46, 5  ;;  %v3142_v12 = vld [vmem:[#allocation2 + $0x98] sm:$0x1]  ;;  %v3862_v27 = vrot.slane %v3711_v6, 5  ;;  %v3856_v21 = vsel %vm5752_vm9, %v3854_v5, %v3855_v16  ;;  %v3860_v38 = vsel %vm5752_vm9, %v5159_v43, %v3859_v25  ;;  %1994 = vrot.lane.b32.xlu1 %v1911_v51, %s5641_s10 }
 0x199   : > { %3933 = vst.msk [vmem:[#allocation3 + $0x11c] sm:$0xf] %vm269_vm0, %v3849_v0  ;;  %3934 = vst.msk [vmem:[#allocation3 + $0x128] sm:$0xf] %vm269_vm0, %v3853_v17  ;;  %v2326_v8 = vshrl.u32 %v2109_v62, 16  ;;  %v3861_v42 = vrot.slane %v3859_v25, 4  ;;  %v2812_v0 = vpop.permute.xlu1 %2811  ;;  %3578 = vrot.lane.b32.xlu0 %v3387_v20, %s5641_s10 }
 0x19a   : > { %v2110_v4 = vld [vmem:[#allocation2 + $0x70] sm:$0xf]  ;;  %v2329_v46 = vshll.u32 %v2109_v62, 16  ;;  %2083 = vst.msk [vmem:[#allocation3 + $0x168] sm:$0xf] %vm2052_vm3, %v2017_v57  ;;  %v3414_v36 = vrot.slane %v3412_v1, 4 }
 0x19b   : > { %3935 = vst.msk [vmem:[#allocation3 + $0x134] sm:$0xf] %vm269_vm0, %v3856_v21  ;;  %3936 = vst.msk [vmem:[#allocation3 + $0x140] sm:$0xf] %vm269_vm0, %v3860_v38  ;;  %v2328_v14 = vrot.slane %v2326_v8, 4  ;;  %v2335_v60 = vshll.u32 %v2110_v4, 16  ;;  %v3863_v7 = vsel %vm5752_vm9, %v3861_v42, %v3862_v27 }
 0x19c   : > { %v2339_v47 = vshrl.u32 %v2110_v4, 16  ;;  %v2111_v59 = vld [vmem:[#allocation2 + $0x74] sm:$0x1]  ;;  %v7580_v1 = vld [vmem:[#allocation2 + $0x84] sm:$0xf]  ;;  %v2331_v53 = vrot.slane %v2329_v46, 5  ;;  %v3415_v5 = vor.u32 %v3414_v36, %v7559_v49  ;;  %3580 = vrot.lane.b32.xlu1 %v3397_v23, %s5641_s10  ;;  %v1724_v23 = vsel %vm5752_vm9, %v5124_v2, %v1723_v29 }
 0x19d   : > { %2084 = vst.msk [vmem:[#allocation3 + $0x174] sm:$0xf] %vm2052_vm3, %v2019_v50  ;;  %v2337_v19 = vrot.slane %v2335_v60, 5  ;;  %v2345_v45 = vshll.u32 %v2111_v59, 16  ;;  %v3712_v52 = vld [vmem:[#allocation2 + $0xc0] sm:$0xe]  ;;  %v3605_v46 = vpop.permute.xlu1 %3604  ;;  %1463 = vrot.lane.b32.xlu0 %v1292_v3, %s5640_s9  ;;  %v2750_v60 = vsel %vm5752_vm9, %v5140_v10, %v2749_v13  ;;  %v1727_v29 = vsel %vm5752_vm9, %v7432_v40, %v1726_v48 }
 0x19e   : > { %3937 = vst.msk [vmem:[#allocation3 + $0x14c] sm:$0xf] %vm269_vm0, %v3863_v7  ;;  %v2341_v56 = vrot.slane %v2339_v47, 4  ;;  %v2752_v30 = vrot.slane %v7555_v41, 5  ;;  %v3418_v18 = vshll.u32 %v3142_v12, 16  ;;  %v2332_v28 = vor.u32 %v2331_v53, %v2328_v14  ;;  %v3603_v12 = vpop.permute.xlu0 %3602 }
 0x19f   : > { %2895 = vst.msk [vmem:[#allocation3 + $0x7c] sm:$0xf] %vm1519_vm15, %v2810_v39  ;;  %v7592_v9 = vld [vmem:[#allocation2 + $0x88] sm:$0xf]  ;;  %v2347_v16 = vrot.slane %v2345_v45, 5  ;;  %v5160_v33 = vrot.slane %v3712_v52, 9 }
 0x1a0   : > { %v2342_v63 = vor.u32 %v2341_v56, %v2337_v19  ;;  %v3713_v37 = vld [vmem:[#allocation2 + $0xc4] sm:$0xf]  ;;  %v3714_v43 = vld [vmem:[#allocation2 + $0xc8] sm:$0x1]  ;;  %v7599_v17 = vrot.slane %v3405_v61, 4  ;;  %v1304_v6 = vshrl.u32 %v7580_v1, 16  ;;  %1465 = vrot.lane.b32.xlu1 %v1302_v55, %s5640_s9  ;;  %v2753_v31 = vsel %vm5752_vm9, %v7458_v26, %v2752_v30 }
 0x1a1   : > { %2896 = vst.msk [vmem:[#allocation3 + $0x88] sm:$0xf] %vm1519_vm15, %v2812_v0  ;;  %v2333_v25 = vrot.slane %v2332_v28, 4  ;;  %v3866_v51 = vrot.slane %v3713_v37, 5  ;;  %v3869_v15 = vrot.slane %v3714_v43, 5  ;;  %v7609_v58 = vrot.slane %v3418_v18, 5  ;;  %v1786_v39 = vpop.permute.xlu1 %1785  ;;  %2829 = vrot.lane.b32.xlu0 %v2750_v60, %s5640_s9 }
 0x1a2   : > { %v2343_v62 = vrot.slane %v2342_v63, 4  ;;  %v3715_v41 = vld [vmem:[#allocation2 + $0xcc] sm:$0xe]  ;;  %v1307_v27 = vshll.u32 %v7580_v1, 16  ;;  %3668 = vst.msk [vmem:[#allocation3 + $0x16c] sm:$0xf] %vm2052_vm3, %v3603_v12  ;;  %v1784_v1 = vpop.permute.xlu0 %1783 }
 0x1a3   : > { %v2338_v8 = vsel %vm5809_vm14, %v2333_v25, %v2337_v19  ;;  %v3867_v21 = vsel %vm5752_vm9, %v5160_v33, %v3866_v51  ;;  %v3868_v38 = vrot.slane %v3866_v51, 4  ;;  %v3716_v42 = vld [vmem:[#allocation2 + $0xd0] sm:$0xf]  ;;  %v3717_v4 = vld [vmem:[#allocation2 + $0xd4] sm:$0x1]  ;;  %v7620_v35 = vrot.slane %v3415_v5, 4 }
 0x1a4   : > { %v2348_v57 = vsel %vm5809_vm14, %v2343_v62, %v2347_v16  ;;  %v1313_v32 = vshll.u32 %v7592_v9, 16  ;;  %2565 = vst.msk [vmem:[#allocation3 + $0xc4] sm:$0xf] %vm269_vm0, %v2338_v8  ;;  %3938 = vst.msk [vmem:[#allocation3 + $0x158] sm:$0xf] %vm269_vm0, %v3867_v21  ;;  %v5161_v36 = vrot.slane %v3715_v41, 9  ;;  %2831 = vrot.lane.b32.xlu1 %v2753_v31, %s5640_s9 }
 0x1a5   : > { %2566 = vst.msk [vmem:[#allocation3 + $0xd0] sm:$0xf] %vm269_vm0, %v2348_v57  ;;  %v3873_v14 = vrot.slane %v3716_v42, 5  ;;  %vm4390_vm4 = vcmask 261120   ;;  %v7633_v47 = vrot.slane %v1304_v6, 4  ;;  %v3870_v59 = vsel %vm5752_vm9, %v3868_v38, %v3869_v15  ;;  %v3005_v8 = vpop.permute.xlu1 %3004  ;;  %1803 = vrot.lane.b32.xlu0 %v1724_v23, %s5639_s8 }
 0x1a6   : > { %3669 = vst.msk [vmem:[#allocation3 + $0x178] sm:$0xf] %vm2052_vm3, %v3605_v46  ;;  %v3876_v50 = vrot.slane %v3717_v4, 5  ;;  %v942_v20 = vld [vmem:[#allocation2 + $0x6c] sm:$0xf]  ;;  %v7641_v24 = vrot.slane %v1307_v27, 5  ;;  %v3003_v2 = vpop.permute.xlu0 %3002 }
 0x1a7   : > { %v943_v61 = vld [vmem:[#allocation2 + $0x70] sm:$0xf]  ;;  %3939 = vst.msk [vmem:[#allocation3 + $0x164] sm:$0xf] %vm269_vm0, %v3870_v59  ;;  %v3874_v13 = vsel %vm5752_vm9, %v5161_v36, %v3873_v14  ;;  %v3875_v10 = vrot.slane %v3873_v14, 4  ;;  %v1317_v30 = vshrl.u32 %v7592_v9, 16 }
 0x1a8   : > { %974 = vst.msk [vmem:[#allocation3 + $0xd8] sm:$0xf] %vm269_vm0, %v942_v20  ;;  %975 = vst.msk [vmem:[#allocation3 + $0xe4] sm:$0xf] %vm269_vm0, %v943_v61  ;;  %v2112_v7 = vld [vmem:[#allocation2 + $0x78] sm:$0xf]  ;;  %1805 = vrot.lane.b32.xlu1 %v1727_v29, %s5639_s8  ;;  %v1310_v9 = vor.u32 %v7641_v24, %v7633_v47 }
 0x1a9   : > { %v2113_v53 = vld [vmem:[#allocation2 + $0x7c] sm:$0xf]  ;;  %1870 = vst.msk [vmem:[#allocation3 + $0x78] sm:$0xf] %vm1859_vm2, %v1784_v1  ;;  %v2350_v19 = vshrl.u32 %v2112_v7, 16  ;;  %v2353_v26 = vshll.u32 %v2112_v7, 16  ;;  %v3877_v18 = vsel %vm5752_vm9, %v3875_v10, %v3876_v50 }
 0x1aa   : > { %3940 = vst.msk [vmem:[#allocation3 + $0x170] sm:$0xf] %vm269_vm0, %v3874_v13  ;;  %v2359_v56 = vshll.u32 %v2113_v53, 16  ;;  %v2363_v45 = vshrl.u32 %v2113_v53, 16  ;;  %v2114_v52 = vld [vmem:[#allocation2 + $0x80] sm:$0x1]  ;;  %v1977_v60 = vpop.permute.xlu0 %1976  ;;  %v1979_v53 = vpop.permute.xlu1 %1978 }
 0x1ab   : > { %v2369_v28 = vshll.u32 %v2114_v52, 16  ;;  %v944_v63 = vld [vmem:[#allocation2 + $0x78] sm:$0xf]  ;;  %v945_v16 = vld [vmem:[#allocation2 + $0x7c] sm:$0xf]  ;;  %v2352_v37 = vrot.slane %v2350_v19, 4 }
 0x1ac   : > { %1871 = vst.msk [vmem:[#allocation3 + $0x84] sm:$0xf] %vm1859_vm2, %v1786_v39  ;;  %v2355_v43 = vrot.slane %v2353_v26, 5  ;;  %v2361_v34 = vrot.slane %v2359_v56, 5  ;;  %v2365_v33 = vrot.slane %v2363_v45, 4  ;;  %v4002_v0 = vld [vmem:[#allocation3 + $0x168] sm:$0xff] }
 0x1ad   : > { %3941 = vst.msk [vmem:[#allocation3 + $0x17c] sm:$0xf] %vm269_vm0, %v3877_v18  ;;  %976 = vst.msk [vmem:[#allocation3 + $0xf0] sm:$0xf] %vm269_vm0, %v944_v63  ;;  %v2115_v54 = vld [vmem:[#allocation2 + $0x84] sm:$0xf] }
 0x1ae   : > { %977 = vst.msk [vmem:[#allocation3 + $0xfc] sm:$0xf] %vm269_vm0, %v945_v16  ;;  %v5545_v3 = vld [vmem:[#allocation3 + $0x8] ss:$12 sps:$4 sm:$0xff]   ;;  %v2371_v5 = vrot.slane %v2369_v28, 5  ;;  %v2374_v25 = vshrl.u32 %v2115_v54, 16  ;;  %v2356_v15 = vor.u32 %v2355_v43, %v2352_v37  ;;  %v2366_v41 = vor.u32 %v2365_v33, %v2361_v34  ;;  %v3563_v23 = vpop.permute.xlu0 %3562  ;;  %v3565_v29 = vpop.permute.xlu1 %3564 }
 0x1af   : > { %v2116_v6 = vld [vmem:[#allocation2 + $0x88] sm:$0xf]  ;;  %v2377_v62 = vshll.u32 %v2115_v54, 16  ;;  %3088 = vst.msk [vmem:[#allocation3 + $0x7c] sm:$0xf] %vm1859_vm2, %v3003_v2  ;;  %v4004_v44 = vld [vmem:[#allocation3 + $0x174] sm:$0xff] }
 0x1b0   : > { %v2938_v51 = vld [vmem:[#allocation2 + $0x90] sm:$0xf]  ;;  %v2383_v12 = vshll.u32 %v2116_v6, 16  ;;  %v2387_v55 = vshrl.u32 %v2116_v6, 16  ;;  %v2117_v27 = vld [vmem:[#allocation2 + $0x8c] sm:$0x1]  ;;  %v5207_v42 = vcombine.low %v4002_v0, %v4004_v44  ;;  %v3411_v0 = vsel %vm5809_vm14, %v7599_v17, %v7559_v49 }
 0x1b1   : > { %v5541_v57 = vld [vmem:[#allocation3 + $0x16c] ss:$12 sps:$4 sm:$0xff]   ;;  %v7672_v48 = vld [vmem:[#allocation2 + $0x8c] sm:$0x1]  ;;  %v2376_v40 = vrot.slane %v2374_v25, 4  ;;  %v2379_v21 = vrot.slane %v2377_v62, 5  ;;  %3022 = vrot.lane.b32.xlu0 %v2938_v51, %s5639_s8  ;;  %v3421_v49 = vsel %vm5809_vm14, %v7620_v35, %v7609_v58 }
 0x1b2   : > { %v2393_v38 = vshll.u32 %v2117_v27, 16  ;;  %3089 = vst.msk [vmem:[#allocation3 + $0x88] sm:$0xf] %vm1859_vm2, %v3005_v8  ;;  %v2939_v4 = vld [vmem:[#allocation2 + $0x94] sm:$0xf]  ;;  %v7677_v46 = vrot.slane %v1313_v32, 5  ;;  %4591 = vmatprep.mubr.bf16.mxu1 %v5541_v57 }
 0x1b3   : > { %v2357_v36 = vrot.slane %v2356_v15, 4  ;;  %v2367_v14 = vrot.slane %v2366_v41, 4  ;;  %v7680_v59 = vrot.slane %v1317_v30, 4  ;;  %v2380_v50 = vor.u32 %v2379_v21, %v2376_v40  ;;  %2063 = vst.msk [vmem:[#allocation3 + $0x78] sm:$0xf] %vm2052_vm3, %v1977_v60  ;;  %4592 = vmatmul.mubr.bf16.gmra.mxu1 %v5207_v42  ;;  %3024 = vrot.lane.b32.xlu1 %v2939_v4, %s5639_s8  ;;  %v1450_v40 = vpop.permute.xlu1 %1449 }
 0x1b4   : > { %v2385_v20 = vrot.slane %v2383_v12, 5  ;;  %v2389_v61 = vrot.slane %v2387_v55, 4  ;;  %v1912_v1 = vld [vmem:[#allocation2 + $0x84] sm:$0xf]  ;;  %v947_v10 = vld [vmem:[#allocation2 + $0x88] sm:$0xf]  ;;  %5416 = vmatprep.mubr.msk.bf16.mxu1 %vm4390_vm4, %v5545_v3  ;;  %v1448_v12 = vpop.permute.xlu0 %1447 }
 0x1b5   : > { %v2362_v32 = vsel %vm5809_vm14, %v2357_v36, %v2361_v34  ;;  %v2372_v31 = vsel %vm5809_vm14, %v2367_v14, %v2371_v5  ;;  %v946_v13 = vld [vmem:[#allocation2 + $0x84] sm:$0xf]  ;;  %v2118_v7 = vld [vmem:[#allocation2 + $0x90] sm:$0xf]  ;;  %v2381_v19 = vrot.slane %v2380_v50, 4  ;;  %v2395_v24 = vrot.slane %v2393_v38, 5  ;;  %1996 = vrot.lane.b32.xlu0 %v1912_v1, %s5641_s10 }
 0x1b6   : > { %2567 = vst.msk [vmem:[#allocation3 + $0xdc] sm:$0xf] %vm269_vm0, %v2362_v32  ;;  %2568 = vst.msk [vmem:[#allocation3 + $0xe8] sm:$0xf] %vm269_vm0, %v2372_v31  ;;  %v2390_v47 = vor.u32 %v2389_v61, %v2385_v20  ;;  %v2398_v26 = vshrl.u32 %v2118_v7, 16  ;;  %v1323_v56 = vshll.u32 %v7672_v48, 16  ;;  %v1320_v18 = vor.u32 %v7680_v59, %v7677_v46 }
 0x1b7   : > { %978 = vst.msk [vmem:[#allocation3 + $0x108] sm:$0xf] %vm269_vm0, %v946_v13  ;;  %979 = vst.msk [vmem:[#allocation3 + $0x114] sm:$0xf] %vm269_vm0, %v947_v10  ;;  %v2119_v45 = vld [vmem:[#allocation2 + $0x94] sm:$0xf]  ;;  %v2386_v63 = vsel %vm5809_vm14, %v2381_v19, %v2385_v20  ;;  %v2816_v32 = vpop.permute.xlu1 %2815 }
 0x1b8   : > { %2064 = vst.msk [vmem:[#allocation3 + $0x84] sm:$0xf] %vm2052_vm3, %v1979_v53  ;;  %v2401_v52 = vshll.u32 %v2118_v7, 16  ;;  %v2120_v39 = vld [vmem:[#allocation2 + $0x98] sm:$0x1]  ;;  %v2391_v16 = vrot.slane %v2390_v47, 4  ;;  %v2814_v36 = vpop.permute.xlu0 %2813 }
 0x1b9   : > { %v1913_v30 = vld [vmem:[#allocation2 + $0x88] sm:$0xf]  ;;  %v7700_v28 = vld [vmem:[#allocation2 + $0x94] sm:$0xf]  ;;  %v2400_v37 = vrot.slane %v2398_v26, 4  ;;  %v2407_v33 = vshll.u32 %v2119_v45, 16  ;;  %3582 = vrot.lane.b32.xlu0 %v3411_v0, %s5641_s10 }
 0x1ba   : > { %3648 = vst.msk [vmem:[#allocation3 + $0x7c] sm:$0xf] %vm2052_vm3, %v3563_v23  ;;  %v5546_v43 = vld [vmem:[#allocation3 + $0x20] ss:$12 sps:$4 sm:$0xff]   ;;  %v2403_v34 = vrot.slane %v2401_v52, 5  ;;  %v2411_v54 = vshrl.u32 %v2119_v45, 16  ;;  %v2396_v6 = vsel %vm5809_vm14, %v2391_v16, %v2395_v24  ;;  %1998 = vrot.lane.b32.xlu1 %v1913_v30, %s5641_s10 }
 0x1bb   : > { %2569 = vst.msk [vmem:[#allocation3 + $0xf4] sm:$0xf] %vm269_vm0, %v2386_v63  ;;  %v2417_v2 = vshll.u32 %v2120_v39, 16  ;;  %v1311_v3 = vrot.slane %v1310_v9, 4  ;;  %v5549_v5 = vld [vmem:[#allocation3 + $0x38] ss:$12 sps:$4 sm:$0xff]   ;;  %5417 = vmatmul.mubr.msk.bf16.vlgmr.msra.gmra.mxu1 %vm4390_vm4, %v5546_v43  ;;  %v1790_v30 = vpop.permute.xlu1 %1789 }
 0x1bc   : > { %3649 = vst.msk [vmem:[#allocation3 + $0x88] sm:$0xf] %vm2052_vm3, %v3565_v29  ;;  %v2614_v25 = vld [vmem:[#allocation2 + $0x90] sm:$0xe]  ;;  %v2756_v62 = vrot.slane %v7700_v28, 5  ;;  %v2404_v51 = vor.u32 %v2403_v34, %v2400_v37  ;;  %v2409_v15 = vrot.slane %v2407_v33, 5  ;;  %5420 = vmatprep.mubr.msk.bf16.mxu1 %vm4390_vm4, %v5549_v5  ;;  %v1788_v26 = vpop.permute.xlu0 %1787 }
 0x1bd   : > { %2570 = vst.msk [vmem:[#allocation3 + $0x100] sm:$0xf] %vm269_vm0, %v2396_v6  ;;  %v2413_v41 = vrot.slane %v2411_v54, 4  ;;  %v1325_v17 = vrot.slane %v1323_v56, 5  ;;  %v2616_v55 = vld [vmem:[#allocation2 + $0x98] sm:$0x1]  ;;  %v1316_v58 = vsel %vm5809_vm14, %v1311_v3, %v7677_v46 }
 0x1be   : > { %1532 = vst.msk [vmem:[#allocation3 + $0x90] sm:$0xf] %vm1519_vm15, %v1448_v12  ;;  %v1321_v27 = vrot.slane %v1320_v18, 4  ;;  %v1586_v8 = vld [vmem:[#allocation2 + $0x88] sm:$0xf]  ;;  %v2405_v44 = vrot.slane %v2404_v51, 4  ;;  %3584 = vrot.lane.b32.xlu1 %v3421_v49, %s5641_s10  ;;  %1467 = vrot.lane.b32.xlu0 %v1316_v58, %s5640_s9 }
 0x1bf   : > { %v2414_v57 = vor.u32 %v2413_v41, %v2409_v15  ;;  %v2419_v48 = vrot.slane %v2417_v2, 5  ;;  %v5141_v21 = vrot.slane %v2614_v25, 9  ;;  %1533 = vst.msk [vmem:[#allocation3 + $0x9c] sm:$0xf] %vm1519_vm15, %v1450_v40  ;;  %v2758_v35 = vrot.slane %v2756_v62, 4  ;;  %v3009_v54 = vpop.permute.xlu1 %3008 }
 0x1c0   : > { %v1585_v38 = vld [vmem:[#allocation2 + $0x84] sm:$0xe]  ;;  %v2410_v42 = vsel %vm5809_vm14, %v2405_v44, %v2409_v15  ;;  %v2759_v14 = vrot.slane %v2616_v55, 5  ;;  %v1730_v60 = vrot.slane %v1586_v8, 5  ;;  %v1587_v59 = vld [vmem:[#allocation2 + $0x8c] sm:$0x1]  ;;  %v1326_v46 = vsel %vm5809_vm14, %v1321_v27, %v1325_v17  ;;  %v3007_v16 = vpop.permute.xlu0 %3006 }
 0x1c1   : > { %v2415_v4 = vrot.slane %v2414_v57, 4  ;;  %v3143_v50 = vld [vmem:[#allocation2 + $0x9c] sm:$0xf]  ;;  %2571 = vst.msk [vmem:[#allocation3 + $0x10c] sm:$0xf] %vm269_vm0, %v2410_v42  ;;  %v3962_v31 = vld [vmem:[#allocation3 + $0x78] sm:$0xff]  ;;  %v2757_v7 = vsel %vm5752_vm9, %v5141_v21, %v2756_v62 }
 0x1c2   : > { %2897 = vst.msk [vmem:[#allocation3 + $0x94] sm:$0xf] %vm1519_vm15, %v2814_v36  ;;  %v5550_v20 = vld [vmem:[#allocation3 + $0x50] ss:$12 sps:$4 sm:$0xff]   ;;  %v5551_v61 = vld [vmem:[#allocation3 + $0x68] ss:$12 sps:$4 sm:$0xff]   ;;  %1469 = vrot.lane.b32.xlu1 %v1326_v46, %s5640_s9  ;;  %v2760_v56 = vsel %vm5752_vm9, %v2758_v35, %v2759_v14  ;;  %2833 = vrot.lane.b32.xlu0 %v2757_v7, %s5640_s9 }
 0x1c3   : > { %v3144_v1 = vld [vmem:[#allocation2 + $0xa0] sm:$0xf]  ;;  %v2420_v9 = vsel %vm5809_vm14, %v2415_v4, %v2419_v48  ;;  %2898 = vst.msk [vmem:[#allocation3 + $0xa0] sm:$0xf] %vm1519_vm15, %v2816_v32  ;;  %v5125_v19 = vrot.slane %v1585_v38, 9  ;;  %v3423_v47 = vshrl.u32 %v3143_v50, 16  ;;  %5421 = vmatmul.mubr.msk.bf16.gmra.mxu1 %vm4390_vm4, %v5550_v20  ;;  %v1983_v62 = vpop.permute.xlu1 %1982 }
 0x1c4   : > { %v3964_v13 = vld [vmem:[#allocation3 + $0x84] sm:$0xff]  ;;  %2572 = vst.msk [vmem:[#allocation3 + $0x118] sm:$0xf] %vm269_vm0, %v2420_v9  ;;  %v3426_v24 = vshll.u32 %v3143_v50, 16  ;;  %v1732_v45 = vrot.slane %v1730_v60, 4  ;;  %v1733_v52 = vrot.slane %v1587_v59, 5  ;;  %5424 = vmatprep.mubr.msk.bf16.mxu1 %vm4390_vm4, %v5551_v61  ;;  %v1981_v5 = vpop.permute.xlu0 %1980 }
 0x1c5   : > { %v5547_v10 = vld [vmem:[#allocation3 + $0x7c] ss:$12 sps:$4 sm:$0xff]   ;;  %v5177_v53 = vcombine.low %v3962_v31, %v3964_v13  ;;  %1872 = vst.msk [vmem:[#allocation3 + $0x90] sm:$0xf] %vm1859_vm2, %v1788_v26  ;;  %v3432_v39 = vshll.u32 %v3144_v1, 16  ;;  %v3436_v23 = vshrl.u32 %v3144_v1, 16  ;;  %v1731_v18 = vsel %vm5752_vm9, %v5125_v19, %v1730_v60  ;;  %v5370_v1 = vpop.f32.mrf.mxu1 }
 0x1c6   : > { %4511 = vmatprep.mubr.bf16.mxu0 %v5547_v10  ;;  %1873 = vst.msk [vmem:[#allocation3 + $0x9c] sm:$0xf] %vm1859_vm2, %v1790_v30  ;;  %v3425_v28 = vrot.slane %v3423_v47, 4  ;;  %v3428_v63 = vrot.slane %v3426_v24, 5  ;;  %2835 = vrot.lane.b32.xlu1 %v2760_v56, %s5640_s9  ;;  %3090 = vst.msk [vmem:[#allocation3 + $0x94] sm:$0xf] %vm1859_vm2, %v3007_v16  ;;  %v1734_v37 = vsel %vm5752_vm9, %v1732_v45, %v1733_v52  ;;  %s7870_s9 = scalar_lea.vmem %s8134_s4, %s5248_s29 }
 0x1c7   : > { %4512 = vmatmul.mubr.bf16.gmra.mxu0 %v5177_v53  ;;  %v5552_v43 = vld [vmem:[#allocation3 + $0x80] ss:$12 sps:$4 sm:$0xff]   ;;  %v3434_v34 = vrot.slane %v3432_v39, 5  ;;  %v3438_v33 = vrot.slane %v3436_v23, 4  ;;  %1807 = vrot.lane.b32.xlu0 %v1731_v18, %s5639_s8  ;;  %v5553_v2 = vld [vmem:[#allocation3 + $0x98] ss:$12 sps:$4 sm:$0xff]   ;;  %v3569_v27 = vpop.permute.xlu1 %3568  ;;  %v5371_v32 = vpop.f32.mrf.mxu1 }
 0x1c8   : > { %v3145_v29 = vld [vmem:[#allocation2 + $0xa4] sm:$0x1]  ;;  %3091 = vst.msk [vmem:[#allocation3 + $0xa0] sm:$0xf] %vm1859_vm2, %v3009_v54  ;;  %v2940_v0 = vld [vmem:[#allocation2 + $0x9c] sm:$0xf]  ;;  %v3429_v3 = vor.u32 %v3428_v63, %v3425_v28  ;;  %v3567_v41 = vpop.permute.xlu0 %3566  ;;  %v7792_v31 = vadd.f32 %v5371_v32, %v5370_v1 }
 0x1c9   : > { %2065 = vst.msk [vmem:[#allocation3 + $0x90] sm:$0xf] %vm2052_vm3, %v1981_v5  ;;  %v2941_v11 = vld [vmem:[#allocation2 + $0xa0] sm:$0xf]  ;;  %v3439_v6 = vor.u32 %v3438_v33, %v3434_v34  ;;  %v3442_v25 = vshll.u32 %v3145_v29, 16  ;;  %v5373_v10 = vpop.f32.mrf.mxu1  ;;  %s5077_s29 = sshll.u32 %s223_s28, 1 }
 0x1ca   : > { %1809 = vrot.lane.b32.xlu1 %v1734_v37, %s5639_s8  ;;  %2066 = vst.msk [vmem:[#allocation3 + $0x9c] sm:$0xf] %vm2052_vm3, %v1983_v62  ;;  %v1914_v51 = vld [vmem:[#allocation2 + $0x90] sm:$0xf]  ;;  %v3430_v15 = vrot.slane %v3429_v3, 4  ;;  %s225_s11 = scalar_lea.vmem [#allocation4], %s5077_s29 }
 0x1cb   : > { %5425 = vmatmul.mubr.msk.bf16.gmra.mxu1 %vm4390_vm4, %v5552_v43  ;;  %3026 = vrot.lane.b32.xlu0 %v2940_v0, %s5639_s8  ;;  %3650 = vst.msk [vmem:[#allocation3 + $0x94] sm:$0xf] %vm2052_vm3, %v3567_v41  ;;  %v1915_v12 = vld [vmem:[#allocation2 + $0x94] sm:$0xf]  ;;  %v3440_v17 = vrot.slane %v3439_v6, 4  ;;  %v3444_v55 = vrot.slane %v3442_v25, 5  ;;  %v1454_v40 = vpop.permute.xlu1 %1453  ;;  %v5374_v47 = vpop.f32.mrf.mxu1 }
 0x1cc   : > { %5428 = vmatprep.mubr.msk.bf16.mxu1 %vm4390_vm4, %v5553_v2  ;;  %v5554_v49 = vld [vmem:[#allocation3 + $0xb0] ss:$12 sps:$4 sm:$0xff]   ;;  %v5557_v8 = vld [vmem:[#allocation3 + $0xc8] ss:$12 sps:$4 sm:$0xff]   ;;  %3651 = vst.msk [vmem:[#allocation3 + $0xa0] sm:$0xf] %vm2052_vm3, %v3569_v27  ;;  %v3435_v44 = vsel %vm5809_vm14, %v3430_v15, %v3434_v34  ;;  %v1452_v57 = vpop.permute.xlu0 %1451  ;;  %v7796_v24 = vadd.f32 %v5374_v47, %v5373_v10 }
 0x1cd   : > { %1534 = vst.msk [vmem:[#allocation3 + $0xa8] sm:$0xf] %vm1519_vm15, %v1452_v57  ;;  %v3445_v48 = vsel %vm5809_vm14, %v3440_v17, %v3444_v55  ;;  %1535 = vst.msk [vmem:[#allocation3 + $0xb4] sm:$0xf] %vm1519_vm15, %v1454_v40  ;;  %v5558_v58 = vld [vmem:[#allocation3 + $0xe0] ss:$12 sps:$4 sm:$0xff]  }
 0x1ce   : > { %3028 = vrot.lane.b32.xlu1 %v2941_v11, %s5639_s8  ;;  %v5559_v35 = vld [vmem:[#allocation3 + $0xf8] ss:$12 sps:$4 sm:$0xff]   ;;  %v5560_v50 = vld [vmem:[#allocation3 + $0x110] ss:$12 sps:$4 sm:$0xff]   ;;  %v5561_v20 = vld [vmem:[#allocation3 + $0x128] ss:$12 sps:$4 sm:$0xff]  }
 0x1cf   : > { %2000 = vrot.lane.b32.xlu0 %v1914_v51, %s5641_s10  ;;  %v2820_v38 = vpop.permute.xlu1 %2819  ;;  %v5562_v7 = vld [vmem:[#allocation3 + $0x140] ss:$12 sps:$4 sm:$0xff]   ;;  %v5565_v19 = vld [vmem:[#allocation3 + $0x158] ss:$12 sps:$4 sm:$0xff]   ;;  %v5566_v52 = vld [vmem:[#allocation3 + $0x170] ss:$12 sps:$4 sm:$0xff]  }
 0x1d0   : > { %v2818_v21 = vpop.permute.xlu0 %2817  ;;  %2900 = vst.msk [vmem:[#allocation3 + $0xb8] sm:$0xf] %vm1519_vm15, %v2820_v38  ;;  %s4989_s12 = sshll.u32 %s225_s11, 4  ;;  %s4990_s12 = int_to_ptr.vmem [resolvable:$true] %s4989_s12 }
 0x1d1   : > { %2899 = vst.msk [vmem:[#allocation3 + $0xac] sm:$0xf] %vm1519_vm15, %v2818_v21  ;;  %s5576_s17 = scalar_lea.vmem %s4990_s12, 32 }
 0x1d2   : > { %2002 = vrot.lane.b32.xlu1 %v1915_v12, %s5641_s10  ;;  %v3966_v42 = vld [vmem:[#allocation3 + $0x90] sm:$0xff]  ;;  %p5577_p11 = scmp.ne.s32.totalorder %s4990_s12, %s5576_s17 }
 0x1d3   : > { %5429 = vmatmul.mubr.msk.bf16.gmra.mxu1 %vm4390_vm4, %v5554_v49  ;;  %3586 = vrot.lane.b32.xlu0 %v3435_v44, %s5641_s10  ;;  %v3968_v4 = vld [vmem:[#allocation3 + $0x9c] sm:$0xff]  ;;  %v1794_v60 = vpop.permute.xlu1 %1793 }
 0x1d4   : > { %5432 = vmatprep.mubr.msk.bf16.mxu1 %vm4390_vm4, %v5557_v8  ;;  %v5555_v36 = vld [vmem:[#allocation3 + $0x94] ss:$12 sps:$4 sm:$0xff]   ;;  %v5180_v22 = vcombine.low %v3966_v42, %v3968_v4  ;;  %v1792_v14 = vpop.permute.xlu0 %1791  ;;  %1875 = vst.msk [vmem:[#allocation3 + $0xb4] sm:$0xf] %vm1859_vm2, %v1794_v60  ;;  %p5578_p12 = pnand %p5577_p11, %p5711_p5 }
 0x1d5   : > { %4519 = vmatprep.mubr.bf16.mxu0 %v5555_v36  ;;  %1874 = vst.msk [vmem:[#allocation3 + $0xa8] sm:$0xf] %vm1859_vm2, %v1792_v14 }
 0x1d6   : > { %3588 = vrot.lane.b32.xlu1 %v3445_v48, %s5641_s10  ;;  %4520 = vmatmul.mubr.bf16.gmra.mxu0 %v5180_v22  ;;  %s5245_s10 = sshll.u32 %s5694_s2, 5  ;;  %p5579_p13 = pneg %p5578_p12 }
 0x1d7   : > { %v3013_v46 = vpop.permute.xlu1 %3012  ;;  %s4987_s15 = scalar_lea.hbm %s8135_s5, %s5245_s10  ;;  %s5642_s2 = smov [#allocation4]  }
 0x1d8   : > { %v3011_v59 = vpop.permute.xlu0 %3010  ;;  %3093 = vst.msk [vmem:[#allocation3 + $0xb8] sm:$0xf] %vm1859_vm2, %v3013_v46  ;;  %s5580_s21 = sshll.u32 %s5642_s2, 4  ;;  %s5581_s21 = int_to_ptr.vmem [resolvable:$false] %s5580_s21 }
 0x1d9   : > { %3092 = vst.msk [vmem:[#allocation3 + $0xac] sm:$0xf] %vm1859_vm2, %v3011_v59  ;;  %s5582_s23 = scalar_lea.vmem %s5581_s21, 64  ;;  %p5583_p0 = scmp.lt.s32.totalorder %s4990_s12, %s5581_s21 }
 0x1da   : > { %p5584_p1 = scmp.lt.s32.totalorder %s5582_s23, %s5576_s17 }
 0x1db   : > { %5433 = vmatmul.mubr.msk.bf16.gmra.mxu1 %vm4390_vm4, %v5558_v58  ;;  %v1987_v9 = vpop.permute.xlu1 %1986 }
 0x1dc   : > { %5436 = vmatprep.mubr.msk.bf16.mxu1 %vm4390_vm4, %v5559_v35  ;;  %v1985_v61 = vpop.permute.xlu0 %1984  ;;  %2068 = vst.msk [vmem:[#allocation3 + $0xb4] sm:$0xf] %vm2052_vm3, %v1987_v9  ;;  %p5585_p2 = por %p5584_p1, %p5583_p0 }
 0x1dd   : > { %2067 = vst.msk [vmem:[#allocation3 + $0xa8] sm:$0xf] %vm2052_vm3, %v1985_v61 }
 0x1de   : > { %p5586_p3 = pnand %p5585_p2, %p5579_p13 }
 0x1df   : > { %v3573_v53 = vpop.permute.xlu1 %3572 }
 0x1e0   : > { %v3571_v13 = vpop.permute.xlu0 %3570  ;;  %3653 = vst.msk [vmem:[#allocation3 + $0xb8] sm:$0xf] %vm2052_vm3, %v3573_v53 }
 0x1e1   : > { %3652 = vst.msk [vmem:[#allocation3 + $0xac] sm:$0xf] %vm2052_vm3, %v3571_v13 }
 0x1e3   : > { %5437 = vmatmul.mubr.msk.bf16.gmra.mxu1 %vm4390_vm4, %v5560_v50  ;;  %v1458_v56 = vpop.permute.xlu1 %1457 }
 0x1e4   : > { %5440 = vmatprep.mubr.msk.bf16.mxu1 %vm4390_vm4, %v5561_v20  ;;  %v1456_v26 = vpop.permute.xlu0 %1455  ;;  %1537 = vst.msk [vmem:[#allocation3 + $0xcc] sm:$0xf] %vm1519_vm15, %v1458_v56 }
 0x1e5   : > { %1536 = vst.msk [vmem:[#allocation3 + $0xc0] sm:$0xf] %vm1519_vm15, %v1456_v26 }
 0x1e7   : > { %v2824_v39 = vpop.permute.xlu1 %2823  ;;  %v3972_v30 = vld [vmem:[#allocation3 + $0xb4] sm:$0xff] }
 0x1e8   : > { %v2822_v45 = vpop.permute.xlu0 %2821  ;;  %v3970_v23 = vld [vmem:[#allocation3 + $0xa8] sm:$0xff]  ;;  %2902 = vst.msk [vmem:[#allocation3 + $0xd0] sm:$0xf] %vm1519_vm15, %v2824_v39 }
 0x1e9   : > { %2901 = vst.msk [vmem:[#allocation3 + $0xc4] sm:$0xf] %vm1519_vm15, %v2822_v45  ;;  %v5563_v18 = vld [vmem:[#allocation3 + $0xac] ss:$12 sps:$4 sm:$0xff]   ;;  %v5183_v28 = vcombine.low %v3970_v23, %v3972_v30 }
 0x1ea   : > { %4527 = vmatprep.mubr.bf16.mxu0 %v5563_v18 }
 0x1eb   : > { %5441 = vmatmul.mubr.msk.bf16.gmra.mxu1 %vm4390_vm4, %v5562_v7  ;;  %4528 = vmatmul.mubr.bf16.gmra.mxu0 %v5183_v28  ;;  %v1798_v16 = vpop.permute.xlu1 %1797 }
 0x1ec   : > { %5444 = vmatprep.mubr.msk.bf16.mxu1 %vm4390_vm4, %v5565_v19  ;;  %v1796_v63 = vpop.permute.xlu0 %1795  ;;  %1877 = vst.msk [vmem:[#allocation3 + $0xcc] sm:$0xf] %vm1859_vm2, %v1798_v16 }
 0x1ed   : > { %1876 = vst.msk [vmem:[#allocation3 + $0xc0] sm:$0xf] %vm1859_vm2, %v1796_v63 }
 0x1ef   : > { %v3017_v43 = vpop.permute.xlu1 %3016 }
 0x1f0   : > { %v3015_v37 = vpop.permute.xlu0 %3014  ;;  %3095 = vst.msk [vmem:[#allocation3 + $0xd0] sm:$0xf] %vm1859_vm2, %v3017_v43 }
 0x1f1   : > { %3094 = vst.msk [vmem:[#allocation3 + $0xc4] sm:$0xf] %vm1859_vm2, %v3015_v37 }
 0x1f3   : > { %5445 = vmatmul.mubr.msk.bf16.gmra.mxu1 %vm4390_vm4, %v5566_v52  ;;  %v1991_v33 = vpop.permute.xlu1 %1990  ;;  %v5298_v52 = vpop.f32.mrf.mxu0 }
 0x1f4   : > { %v1989_v34 = vpop.permute.xlu0 %1988  ;;  %2070 = vst.msk [vmem:[#allocation3 + $0xcc] sm:$0xf] %vm2052_vm3, %v1991_v33 }
 0x1f5   : > { %2069 = vst.msk [vmem:[#allocation3 + $0xc0] sm:$0xf] %vm2052_vm3, %v1989_v34  ;;  %v5299_v30 = vpop.f32.mrf.mxu0 }
 0x1f7   : > { %v3577_v2 = vpop.permute.xlu1 %3576  ;;  %v5376_v17 = vpop.f32.mrf.mxu1 }
 0x1f8   : > { %v3575_v54 = vpop.permute.xlu0 %3574  ;;  %3655 = vst.msk [vmem:[#allocation3 + $0xd0] sm:$0xf] %vm2052_vm3, %v3577_v2  ;;  %v5301_v16 = vpop.f32.mrf.mxu0 }
 0x1f9   : > { %3654 = vst.msk [vmem:[#allocation3 + $0xc4] sm:$0xf] %vm2052_vm3, %v3575_v54  ;;  %v5377_v27 = vpop.f32.mrf.mxu1 }
 0x1fa   : > { %v7823_v8 = vadd.f32 %v5377_v27, %v5376_v17  ;;  %v5302_v2 = vpop.f32.mrf.mxu0 }
 0x1fb   : > { %v1462_v0 = vpop.permute.xlu1 %1461  ;;  %v5379_v57 = vpop.f32.mrf.mxu1 }
 0x1fc   : > { %v1460_v29 = vpop.permute.xlu0 %1459  ;;  %1539 = vst.msk [vmem:[#allocation3 + $0xe4] sm:$0xf] %vm1519_vm15, %v1462_v0 }
 0x1fd   : > { %1538 = vst.msk [vmem:[#allocation3 + $0xd8] sm:$0xf] %vm1519_vm15, %v1460_v29  ;;  %v5380_v40 = vpop.f32.mrf.mxu1 }
 0x1fe   : > { %v7827_v21 = vadd.f32 %v5380_v40, %v5379_v57 }
 0x1ff   : > { %v2828_v5 = vpop.permute.xlu1 %2827  ;;  %v3976_v6 = vld [vmem:[#allocation3 + $0xcc] sm:$0xff] }
 0x200   : > { %v2826_v3 = vpop.permute.xlu0 %2825  ;;  %v3974_v11 = vld [vmem:[#allocation3 + $0xc0] sm:$0xff]  ;;  %2904 = vst.msk [vmem:[#allocation3 + $0xe8] sm:$0xf] %vm1519_vm15, %v2828_v5 }
 0x201   : > { %2903 = vst.msk [vmem:[#allocation3 + $0xdc] sm:$0xf] %vm1519_vm15, %v2826_v3  ;;  %v5567_v25 = vld [vmem:[#allocation3 + $0xc4] ss:$12 sps:$4 sm:$0xff]   ;;  %v5186_v62 = vcombine.low %v3974_v11, %v3976_v6  ;;  %v5304_v3 = vpop.f32.mrf.mxu0 }
 0x202   : > { %4535 = vmatprep.mubr.bf16.mxu0 %v5567_v25 }
 0x203   : > { %4536 = vmatmul.mubr.bf16.gmra.mxu0 %v5186_v62  ;;  %v1802_v15 = vpop.permute.xlu1 %1801  ;;  %v5305_v5 = vpop.f32.mrf.mxu0 }
 0x204   : > { %v1800_v51 = vpop.permute.xlu0 %1799  ;;  %1879 = vst.msk [vmem:[#allocation3 + $0xe4] sm:$0xf] %vm1859_vm2, %v1802_v15 }
 0x205   : > { %1878 = vst.msk [vmem:[#allocation3 + $0xd8] sm:$0xf] %vm1859_vm2, %v1800_v51  ;;  %v5307_v25 = vpop.f32.mrf.mxu0 }
 0x207   : > { %v3021_v12 = vpop.permute.xlu1 %3020  ;;  %v5308_v62 = vpop.f32.mrf.mxu0 }
 0x208   : > { %v3019_v41 = vpop.permute.xlu0 %3018  ;;  %3097 = vst.msk [vmem:[#allocation3 + $0xe8] sm:$0xf] %vm1859_vm2, %v3021_v12 }
 0x209   : > { %3096 = vst.msk [vmem:[#allocation3 + $0xdc] sm:$0xf] %vm1859_vm2, %v3019_v41  ;;  %v5310_v51 = vpop.f32.mrf.mxu0 }
 0x20b   : > { %v1995_v55 = vpop.permute.xlu1 %1994  ;;  %v5311_v15 = vpop.f32.mrf.mxu0 }
 0x20c   : > { %v1993_v49 = vpop.permute.xlu0 %1992  ;;  %2072 = vst.msk [vmem:[#allocation3 + $0xe4] sm:$0xf] %vm2052_vm3, %v1995_v55 }
 0x20d   : > { %2071 = vst.msk [vmem:[#allocation3 + $0xd8] sm:$0xf] %vm2052_vm3, %v1993_v49  ;;  %v5313_v41 = vpop.f32.mrf.mxu0 }
 0x20f   : > { %v3581_v48 = vpop.permute.xlu1 %3580  ;;  %v5314_v12 = vpop.f32.mrf.mxu0 }
 0x210   : > { %v3579_v44 = vpop.permute.xlu0 %3578  ;;  %3657 = vst.msk [vmem:[#allocation3 + $0xe8] sm:$0xf] %vm2052_vm3, %v3581_v48 }
 0x211   : > { %3656 = vst.msk [vmem:[#allocation3 + $0xdc] sm:$0xf] %vm2052_vm3, %v3579_v44  ;;  %v5316_v49 = vpop.f32.mrf.mxu0 }
 0x213   : > { %v1466_v35 = vpop.permute.xlu1 %1465  ;;  %v5317_v17 = vpop.f32.mrf.mxu0 }
 0x214   : > { %v1464_v58 = vpop.permute.xlu0 %1463  ;;  %1541 = vst.msk [vmem:[#allocation3 + $0xfc] sm:$0xf] %vm1519_vm15, %v1466_v35 }
 0x215   : > { %1540 = vst.msk [vmem:[#allocation3 + $0xf0] sm:$0xf] %vm1519_vm15, %v1464_v58  ;;  %v5319_v55 = vpop.f32.mrf.mxu0 }
 0x217   : > { %v2832_v42 = vpop.permute.xlu1 %2831  ;;  %v3980_v36 = vld [vmem:[#allocation3 + $0xe4] sm:$0xff]  ;;  %v5320_v27 = vpop.f32.mrf.mxu0 }
 0x218   : > { %v2830_v38 = vpop.permute.xlu0 %2829  ;;  %v3978_v4 = vld [vmem:[#allocation3 + $0xd8] sm:$0xff]  ;;  %2906 = vst.msk [vmem:[#allocation3 + $0x100] sm:$0xf] %vm1519_vm15, %v2832_v42 }
 0x219   : > { %2905 = vst.msk [vmem:[#allocation3 + $0xf4] sm:$0xf] %vm1519_vm15, %v2830_v38  ;;  %v5569_v22 = vld [vmem:[#allocation3 + $0xdc] ss:$12 sps:$4 sm:$0xff]   ;;  %v5189_v14 = vcombine.low %v3978_v4, %v3980_v36  ;;  %v5306_v38 = vadd.f32 %v5305_v5, %v5304_v3  ;;  %v5300_v4 = vadd.f32 %v5299_v30, %v5298_v52  ;;  %v5321_v52 = vadd.f32 %v5320_v27, %v5319_v55 }
 0x21a   : > { %4543 = vmatprep.mubr.bf16.mxu0 %v5569_v22 }
 0x21b   : > { %4544 = vmatmul.mubr.bf16.gmra.mxu0 %v5189_v14  ;;  %v1806_v59 = vpop.permute.xlu1 %1805 }
 0x21c   : > { %v1804_v60 = vpop.permute.xlu0 %1803  ;;  %1881 = vst.msk [vmem:[#allocation3 + $0xfc] sm:$0xf] %vm1859_vm2, %v1806_v59 }
 0x21d   : > { %1880 = vst.msk [vmem:[#allocation3 + $0xf0] sm:$0xf] %vm1859_vm2, %v1804_v60  ;;  %v5309_v60 = vadd.f32 %v5308_v62, %v5307_v25 }
 0x223   : > { %v3023_v50 = vpop.permute.xlu0 %3022 }
 0x224   : > { %3098 = vst.msk [vmem:[#allocation3 + $0xf4] sm:$0xf] %vm1859_vm2, %v3023_v50 }
 0x225   : > { %v3025_v46 = vpop.permute.xlu1 %3024 }
 0x226   : > { %3099 = vst.msk [vmem:[#allocation3 + $0x100] sm:$0xf] %vm1859_vm2, %v3025_v46  ;;  %v5303_v46 = vadd.f32 %v5302_v2, %v5301_v16 }
 0x227   : > { %v1997_v20 = vpop.permute.xlu0 %1996 }
 0x228   : > { %2073 = vst.msk [vmem:[#allocation3 + $0xf0] sm:$0xf] %vm2052_vm3, %v1997_v20 }
 0x22b   : > { %v3583_v1 = vpop.permute.xlu0 %3582 }
 0x22c   : > { %v1999_v61 = vpop.permute.xlu1 %1998  ;;  %3658 = vst.msk [vmem:[#allocation3 + $0xf4] sm:$0xf] %vm2052_vm3, %v3583_v1 }
 0x22d   : > { %2074 = vst.msk [vmem:[#allocation3 + $0xfc] sm:$0xf] %vm2052_vm3, %v1999_v61 }
 0x230   : > { %v3585_v9 = vpop.permute.xlu1 %3584  ;;  %v1468_v32 = vpop.permute.xlu0 %1467 }
 0x231   : > { %3659 = vst.msk [vmem:[#allocation3 + $0x100] sm:$0xf] %vm2052_vm3, %v3585_v9  ;;  %v5318_v9 = vadd.f32 %v5317_v17, %v5316_v49 }
 0x232   : > { %1542 = vst.msk [vmem:[#allocation3 + $0x108] sm:$0xf] %vm1519_vm15, %v1468_v32 }
 0x233   : > { %v3982_v53 = vld [vmem:[#allocation3 + $0xf0] sm:$0xff]  ;;  %v5382_v28 = vpop.f32.mrf.mxu1 }
 0x234   : > { %v1470_v13 = vpop.permute.xlu1 %1469  ;;  %v2834_v10 = vpop.permute.xlu0 %2833 }
 0x235   : > { %1543 = vst.msk [vmem:[#allocation3 + $0x114] sm:$0xf] %vm1519_vm15, %v1470_v13  ;;  %2907 = vst.msk [vmem:[#allocation3 + $0x10c] sm:$0xf] %vm1519_vm15, %v2834_v10  ;;  %v5383_v37 = vpop.f32.mrf.mxu1 }
 0x236   : > { %v7851_v43 = vadd.f32 %v5383_v37, %v5382_v28 }
 0x237   : > { %v5385_v33 = vpop.f32.mrf.mxu1 }
 0x238   : > { %v2836_v7 = vpop.permute.xlu1 %2835  ;;  %v3984_v19 = vld [vmem:[#allocation3 + $0xfc] sm:$0xff] }
 0x239   : > { %v5571_v47 = vld [vmem:[#allocation3 + $0xf4] ss:$12 sps:$4 sm:$0xff]   ;;  %2908 = vst.msk [vmem:[#allocation3 + $0x118] sm:$0xf] %vm1519_vm15, %v2836_v7  ;;  %v5192_v26 = vcombine.low %v3982_v53, %v3984_v19  ;;  %v1808_v56 = vpop.permute.xlu0 %1807  ;;  %v5386_v29 = vpop.f32.mrf.mxu1 }
 0x23a   : > { %4551 = vmatprep.mubr.bf16.mxu0 %v5571_v47  ;;  %1882 = vst.msk [vmem:[#allocation3 + $0x108] sm:$0xf] %vm1859_vm2, %v1808_v56  ;;  %v7855_v0 = vadd.f32 %v5386_v29, %v5385_v33  ;;  %v5315_v29 = vadd.f32 %v5314_v12, %v5313_v41 }
 0x23b   : > { %4552 = vmatmul.mubr.bf16.gmra.mxu0 %v5192_v26 }
 0x23c   : > { %v1810_v45 = vpop.permute.xlu1 %1809 }
 0x23d   : > { %1883 = vst.msk [vmem:[#allocation3 + $0x114] sm:$0xf] %vm1859_vm2, %v1810_v45  ;;  %v3027_v39 = vpop.permute.xlu0 %3026  ;;  %v5312_v45 = vadd.f32 %v5311_v15, %v5310_v51 }
 0x23e   : > { %3100 = vst.msk [vmem:[#allocation3 + $0x10c] sm:$0xf] %vm1859_vm2, %v3027_v39 }
 0x240   : > { %v3029_v23 = vpop.permute.xlu1 %3028 }
 0x241   : > { %3101 = vst.msk [vmem:[#allocation3 + $0x118] sm:$0xf] %vm1859_vm2, %v3029_v23  ;;  %v2001_v18 = vpop.permute.xlu0 %2000 }
 0x242   : > { %2075 = vst.msk [vmem:[#allocation3 + $0x108] sm:$0xf] %vm2052_vm3, %v2001_v18 }
 0x244   : > { %v2003_v63 = vpop.permute.xlu1 %2002 }
 0x245   : > { %2076 = vst.msk [vmem:[#allocation3 + $0x114] sm:$0xf] %vm2052_vm3, %v2003_v63  ;;  %v3587_v34 = vpop.permute.xlu0 %3586 }
 0x246   : > { %3660 = vst.msk [vmem:[#allocation3 + $0x10c] sm:$0xf] %vm2052_vm3, %v3587_v34 }
 0x247   : > { %v5322_v57 = vpop.f32.mrf.mxu0 }
 0x248   : > { %v3589_v54 = vpop.permute.xlu1 %3588 }
 0x249   : > { %3661 = vst.msk [vmem:[#allocation3 + $0x118] sm:$0xf] %vm2052_vm3, %v3589_v54  ;;  %v5323_v58 = vpop.f32.mrf.mxu0 }
 0x24a   : > { %v5324_v12 = vadd.f32 %v5323_v58, %v5322_v57 }
 0x24b   : > { %v7872_v22 = vpop.f32.mrf.mxu0 }
 0x24c   : > { %v5575_v6 = vld [vmem:[#allocation3 + $0x108] ss:$12 sps:$4 sm:$0xff]  }
 0x24d   : > { %v7878_v61 = vpop.f32.mrf.mxu0 }
 0x250   : > { %v5573_v11 = vld [vmem:[#allocation3 + $0x10c] ss:$12 sps:$4 sm:$0xff]  }
 0x251   : > { %4559 = vmatprep.mubr.bf16.mxu0 %v5573_v11 }
 0x252   : > { %4560 = vmatmul.mubr.bf16.gmra.mxu0 %v5575_v6 }
 0x273   : > { %v7857_v44 = vpop.f32.mrf.mxu1 }
 0x275   : > { %v7859_v48 = vpop.f32.mrf.mxu1 }
 0x277   : > { %v7861_v40 = vpop.f32.mrf.mxu1 }
 0x279   : > { %v7863_v35 = vpop.f32.mrf.mxu1 }
 0x27b   : > { %v5418_v42 = vpop.f32.mrf.mxu1 }
 0x27c   : > { %v4643_v36 = vadd.f32 %v5418_v42, %v5306_v38 }
 0x27d   : > { %v4634_v14 = vpop.f32.mrf.mxu1 }
 0x27e   : > { %4763 = vst.msk [vmem:[%s7870_s9 + $0x10] sm:$0xff] %vm4390_vm4, %v4643_v36  ;;  %v4635_v59 = vadd.f32 %v5300_v4, %v4634_v14  ;;  %v4865_v10 = vmul.f32 %v4643_v36, %v4643_v36  ;;  %v4796_v18 = vsel %vm4390_vm4, %v4643_v36, 0.0 }
 0x27f   : > { %v5419_v50 = vpop.f32.mrf.mxu1 }
 0x280   : > { %4761 = vst.msk [vmem:[%s7870_s9] sm:$0xff] %vm4390_vm4, %v4635_v59  ;;  %v4646_v20 = vadd.f32 %v5419_v50, %v5309_v60  ;;  %v4863_v32 = vmul.f32 %v4635_v59, %v4635_v59  ;;  %v4793_v19 = vsel %vm4390_vm4, %v4635_v59, 0.0  ;;  %v4898_v3 = vsel %vm4390_vm4, %v4865_v10, 0.0 }
 0x281   : > { %v4637_v1 = vpop.f32.mrf.mxu1 }
 0x282   : > { %4764 = vst.msk [vmem:[%s7870_s9 + $0x18] sm:$0xff] %vm4390_vm4, %v4646_v20  ;;  %v4638_v13 = vadd.f32 %v5303_v46, %v4637_v1  ;;  %v4895_v28 = vsel %vm4390_vm4, %v4863_v32, 0.0  ;;  %v4866_v63 = vmul.f32 %v4646_v20, %v4646_v20  ;;  %v4798_v5 = vsel %vm4390_vm4, %v4646_v20, 0.0 }
 0x283   : > { %v5422_v53 = vpop.f32.mrf.mxu1 }
 0x284   : > { %4762 = vst.msk [vmem:[%s7870_s9 + $0x8] sm:$0xff] %vm4390_vm4, %v4638_v13  ;;  %v4794_v47 = vsel %vm4390_vm4, %v4638_v13, 0.0  ;;  %v4864_v26 = vmul.f32 %v4638_v13, %v4638_v13  ;;  %v4659_v56 = vadd.f32 %v5422_v53, %v5318_v9  ;;  %v4900_v15 = vsel %vm4390_vm4, %v4866_v63, 0.0 }
 0x285   : > { %v4795_v39 = vadd.f32 %v4794_v47, %v4793_v19  ;;  %v4650_v30 = vpop.f32.mrf.mxu1  ;;  %v5327_v13 = vadd.f32 %v7878_v61, %v7872_v22 }
 0x286   : > { %v4896_v16 = vsel %vm4390_vm4, %v4864_v26, 0.0  ;;  %4767 = vst.msk [vmem:[%s7870_s9 + $0x30] sm:$0xff] %vm4390_vm4, %v4659_v56  ;;  %v4651_v33 = vadd.f32 %v5312_v45, %v4650_v30  ;;  %v4869_v55 = vmul.f32 %v4659_v56, %v4659_v56  ;;  %v4804_v50 = vsel %vm4390_vm4, %v4659_v56, 0.0 }
 0x287   : > { %v5328_v7 = vpop.f32.mrf.mxu0  ;;  %v4797_v37 = vadd.f32 %v4796_v18, %v4795_v39  ;;  %v4897_v34 = vadd.f32 %v4896_v16, %v4895_v28  ;;  %v5423_v2 = vpop.f32.mrf.mxu1 }
 0x288   : > { %v4662_v11 = vadd.f32 %v5423_v2, %v5321_v52  ;;  %4765 = vst.msk [vmem:[%s7870_s9 + $0x20] sm:$0xff] %vm4390_vm4, %v4651_v33  ;;  %v4867_v62 = vmul.f32 %v4651_v33, %v4651_v33  ;;  %v4800_v17 = vsel %vm4390_vm4, %v4651_v33, 0.0  ;;  %v4906_v19 = vsel %vm4390_vm4, %v4869_v55, 0.0 }
 0x289   : > { %v5329_v23 = vpop.f32.mrf.mxu0  ;;  %v4899_v6 = vadd.f32 %v4898_v3, %v4897_v34  ;;  %v4799_v25 = vadd.f32 %v4798_v5, %v4797_v37  ;;  %v4653_v51 = vpop.f32.mrf.mxu1 }
 0x28a   : > { %v5330_v49 = vadd.f32 %v5329_v23, %v5328_v7  ;;  %4768 = vst.msk [vmem:[%s7870_s9 + $0x38] sm:$0xff] %vm4390_vm4, %v4662_v11  ;;  %v4654_v41 = vadd.f32 %v5315_v29, %v4653_v51  ;;  %v4902_v36 = vsel %vm4390_vm4, %v4867_v62, 0.0  ;;  %v4870_v58 = vmul.f32 %v4662_v11, %v4662_v11 }
 0x28b   : > { %v5331_v54 = vpop.f32.mrf.mxu0  ;;  %v4801_v27 = vadd.f32 %v4800_v17, %v4799_v25  ;;  %v4901_v38 = vadd.f32 %v4900_v15, %v4899_v6  ;;  %v5426_v4 = vpop.f32.mrf.mxu1  ;;  %v4806_v47 = vsel %vm4390_vm4, %v4662_v11, 0.0 }
 0x28c   : > { %4766 = vst.msk [vmem:[%s7870_s9 + $0x28] sm:$0xff] %vm4390_vm4, %v4654_v41  ;;  %v4802_v14 = vsel %vm4390_vm4, %v4654_v41, 0.0  ;;  %v4868_v60 = vmul.f32 %v4654_v41, %v4654_v41  ;;  %v4675_v59 = vadd.f32 %v5426_v4, %v5330_v49  ;;  %v4908_v23 = vsel %vm4390_vm4, %v4870_v58, 0.0 }
 0x28d   : > { %v5332_v42 = vpop.f32.mrf.mxu0  ;;  %v4903_v46 = vadd.f32 %v4902_v36, %v4901_v38  ;;  %v4803_v20 = vadd.f32 %v4802_v14, %v4801_v27  ;;  %v4666_v57 = vpop.f32.mrf.mxu1 }
 0x28e   : > { %v5333_v1 = vadd.f32 %v5332_v42, %v5331_v54  ;;  %v4904_v9 = vsel %vm4390_vm4, %v4868_v60, 0.0  ;;  %4771 = vst.msk [vmem:[%s7870_s9 + $0x50] sm:$0xff] %vm4390_vm4, %v4675_v59  ;;  %v4667_v32 = vadd.f32 %v5324_v12, %v4666_v57  ;;  %v4873_v63 = vmul.f32 %v4675_v59, %v4675_v59 }
 0x28f   : > { %v4805_v10 = vadd.f32 %v4804_v50, %v4803_v20  ;;  %v4905_v7 = vadd.f32 %v4904_v9, %v4903_v46  ;;  %v5427_v53 = vpop.f32.mrf.mxu1  ;;  %v4812_v29 = vsel %vm4390_vm4, %v4675_v59, 0.0 }
 0x290   : > { %4769 = vst.msk [vmem:[%s7870_s9 + $0x40] sm:$0xff] %vm4390_vm4, %v4667_v32  ;;  %v4871_v26 = vmul.f32 %v4667_v32, %v4667_v32  ;;  %v4678_v56 = vadd.f32 %v5427_v53, %v5333_v1  ;;  %v4808_v30 = vsel %vm4390_vm4, %v4667_v32, 0.0  ;;  %v4914_v62 = vsel %vm4390_vm4, %v4873_v63, 0.0 }
 0x291   : > { %v4907_v45 = vadd.f32 %v4906_v19, %v4905_v7  ;;  %v4807_v52 = vadd.f32 %v4806_v47, %v4805_v10  ;;  %v4669_v39 = vpop.f32.mrf.mxu1 }
 0x292   : > { %4772 = vst.msk [vmem:[%s7870_s9 + $0x58] sm:$0xff] %vm4390_vm4, %v4678_v56  ;;  %v4670_v22 = vadd.f32 %v5327_v13, %v4669_v39  ;;  %v4910_v16 = vsel %vm4390_vm4, %v4871_v26, 0.0  ;;  %v4874_v3 = vmul.f32 %v4678_v56, %v4678_v56  ;;  %v4814_v51 = vsel %vm4390_vm4, %v4678_v56, 0.0 }
 0x293   : > { %v4809_v61 = vadd.f32 %v4808_v30, %v4807_v52  ;;  %v4909_v18 = vadd.f32 %v4908_v23, %v4907_v45  ;;  %v7917_v28 = vpop.f32.mrf.mxu1 }
 0x294   : > { %4770 = vst.msk [vmem:[%s7870_s9 + $0x48] sm:$0xff] %vm4390_vm4, %v4670_v22  ;;  %v4810_v37 = vsel %vm4390_vm4, %v4670_v22, 0.0  ;;  %v4872_v34 = vmul.f32 %v4670_v22, %v4670_v22  ;;  %v4916_v41 = vsel %vm4390_vm4, %v4874_v3, 0.0 }
 0x295   : > { %v4911_v33 = vadd.f32 %v4910_v16, %v4909_v18  ;;  %v4811_v54 = vadd.f32 %v4810_v37, %v4809_v61  ;;  %v4682_v2 = vpop.f32.mrf.mxu1 }
 0x296   : > { %v4912_v5 = vsel %vm4390_vm4, %v4872_v34, 0.0  ;;  %v5334_v12 = vpop.f32.mrf.mxu0 }
 0x297   : > { %v4813_v11 = vadd.f32 %v4812_v29, %v4811_v54  ;;  %v4913_v6 = vadd.f32 %v4912_v5, %v4911_v33  ;;  %v7925_v25 = vpop.f32.mrf.mxu1 }
 0x298   : > { %v5335_v38 = vpop.f32.mrf.mxu0 }
 0x299   : > { %v4915_v15 = vadd.f32 %v4914_v62, %v4913_v6  ;;  %v4685_v49 = vpop.f32.mrf.mxu1  ;;  %v4815_v17 = vadd.f32 %v4814_v51, %v4813_v11  ;;  %v5336_v4 = vadd.f32 %v5335_v38, %v5334_v12 }
 0x29a   : > { %v5337_v36 = vpop.f32.mrf.mxu0 }
 0x29b   : > { %v7930_v55 = vpop.f32.mrf.mxu1  ;;  %v4917_v27 = vadd.f32 %v4916_v41, %v4915_v15  ;;  %v4683_v60 = vadd.f32 %v5336_v4, %v4682_v2 }
 0x29c   : > { %v5338_v59 = vpop.f32.mrf.mxu0 }
 0x29d   : > { %v7932_v42 = vpop.f32.mrf.mxu1  ;;  %4773 = vst.msk [vmem:[%s7870_s9 + $0x60] sm:$0xff] %vm4390_vm4, %v4683_v60  ;;  %v4816_v46 = vsel %vm4390_vm4, %v4683_v60, 0.0  ;;  %v4875_v20 = vmul.f32 %v4683_v60, %v4683_v60  ;;  %v5339_v57 = vadd.f32 %v5338_v59, %v5337_v36 }
 0x29e   : > { %v4817_v58 = vadd.f32 %v4816_v46, %v4815_v17 }
 0x29f   : > { %v7934_v14 = vpop.f32.mrf.mxu1  ;;  %v4918_v9 = vsel %vm4390_vm4, %v4875_v20, 0.0  ;;  %v4686_v32 = vadd.f32 %v5339_v57, %v4685_v49 }
 0x2a0   : > { %v4919_v13 = vadd.f32 %v4918_v9, %v4917_v27 }
 0x2a1   : > { %v7936_v50 = vpop.f32.mrf.mxu1  ;;  %4774 = vst.msk [vmem:[%s7870_s9 + $0x68] sm:$0xff] %vm4390_vm4, %v4686_v32  ;;  %v4818_v7 = vsel %vm4390_vm4, %v4686_v32, 0.0  ;;  %v4876_v53 = vmul.f32 %v4686_v32, %v4686_v32 }
 0x2a2   : > { %v4819_v19 = vadd.f32 %v4818_v7, %v4817_v58 }
 0x2a3   : > { %v7941_v1 = vpop.f32.mrf.mxu1  ;;  %v4920_v26 = vsel %vm4390_vm4, %v4876_v53, 0.0 }
 0x2a4   : > { %v4921_v56 = vadd.f32 %v4920_v26, %v4919_v13 }
 0x2a5   : > { %v7944_v10 = vpop.f32.mrf.mxu1 }
 0x2a7   : > { %v7949_v47 = vpop.f32.mrf.mxu1 }
 0x2a9   : > { %v7952_v45 = vpop.f32.mrf.mxu1 }
 0x2ab   : > { %v5442_v52 = vpop.f32.mrf.mxu1 }
 0x2ac   : > { %v7955_v39 = vadd.f32 %v5442_v52, %v7823_v8  ;;  %v5390_v8 = vadd.f32 %v7859_v48, %v7857_v44  ;;  %v5393_v44 = vadd.f32 %v7863_v35, %v7861_v40 }
 0x2ad   : > { %v4730_v23 = vpop.f32.mrf.mxu1 }
 0x2ae   : > { %4787 = vst.msk [vmem:[%s7870_s9 + $0xd0] sm:$0xff] %vm4390_vm4, %v7955_v39  ;;  %v7961_v30 = vadd.f32 %v7792_v31, %v4730_v23  ;;  %v5340_v31 = vpop.f32.mrf.mxu0 }
 0x2af   : > { %v5443_v22 = vpop.f32.mrf.mxu1 }
 0x2b0   : > { %4785 = vst.msk [vmem:[%s7870_s9 + $0xc0] sm:$0xff] %vm4390_vm4, %v7961_v30  ;;  %v7967_v61 = vadd.f32 %v5443_v22, %v7827_v21  ;;  %v5341_v21 = vpop.f32.mrf.mxu0 }
 0x2b1   : > { %v4733_v18 = vpop.f32.mrf.mxu1  ;;  %v5342_v48 = vadd.f32 %v5341_v21, %v5340_v31 }
 0x2b2   : > { %4788 = vst.msk [vmem:[%s7870_s9 + $0xd8] sm:$0xff] %vm4390_vm4, %v7967_v61  ;;  %v7975_v63 = vadd.f32 %v7796_v24, %v4733_v18  ;;  %v5343_v33 = vpop.f32.mrf.mxu0 }
 0x2b3   : > { %v5446_v16 = vpop.f32.mrf.mxu1  ;;  %v4691_v2 = vadd.f32 %v7917_v28, %v5342_v48 }
 0x2b4   : > { %4786 = vst.msk [vmem:[%s7870_s9 + $0xc8] sm:$0xff] %vm4390_vm4, %v7975_v63  ;;  %v7980_v37 = vadd.f32 %v5446_v16, %v5390_v8  ;;  %v5344_v3 = vpop.f32.mrf.mxu0 }
 0x2b5   : > { %v4746_v34 = vpop.f32.mrf.mxu1  ;;  %4775 = vst.msk [vmem:[%s7870_s9 + $0x70] sm:$0xff] %vm4390_vm4, %v4691_v2  ;;  %v4820_v35 = vsel %vm4390_vm4, %v4691_v2, 0.0  ;;  %v4877_v5 = vmul.f32 %v4691_v2, %v4691_v2  ;;  %v5345_v11 = vadd.f32 %v5344_v3, %v5343_v33 }
 0x2b6   : > { %4791 = vst.msk [vmem:[%s7870_s9 + $0xf0] sm:$0xff] %vm4390_vm4, %v7980_v37  ;;  %v7988_v24 = vadd.f32 %v7851_v43, %v4746_v34  ;;  %v4821_v43 = vadd.f32 %v4820_v35, %v4819_v19 }
 0x2b7   : > { %v5447_v54 = vpop.f32.mrf.mxu1  ;;  %v4922_v6 = vsel %vm4390_vm4, %v4877_v5, 0.0  ;;  %v4694_v51 = vadd.f32 %v7925_v25, %v5345_v11 }
 0x2b8   : > { %v7991_v29 = vadd.f32 %v5447_v54, %v5393_v44  ;;  %4789 = vst.msk [vmem:[%s7870_s9 + $0xe0] sm:$0xff] %vm4390_vm4, %v7988_v24  ;;  %v4923_v62 = vadd.f32 %v4922_v6, %v4921_v56 }
 0x2b9   : > { %v4749_v40 = vpop.f32.mrf.mxu1  ;;  %4776 = vst.msk [vmem:[%s7870_s9 + $0x78] sm:$0xff] %vm4390_vm4, %v4694_v51  ;;  %v4822_v15 = vsel %vm4390_vm4, %v4694_v51, 0.0  ;;  %v4878_v49 = vmul.f32 %v4694_v51, %v4694_v51 }
 0x2ba   : > { %4792 = vst.msk [vmem:[%s7870_s9 + $0xf8] sm:$0xff] %vm4390_vm4, %v7991_v29  ;;  %v8003_v28 = vadd.f32 %v7855_v0, %v4749_v40  ;;  %v4823_v17 = vadd.f32 %v4822_v15, %v4821_v43 }
 0x2bb   : > { %v4924_v41 = vsel %vm4390_vm4, %v4878_v49, 0.0 }
 0x2bc   : > { %4790 = vst.msk [vmem:[%s7870_s9 + $0xe8] sm:$0xff] %vm4390_vm4, %v8003_v28  ;;  %v4925_v0 = vadd.f32 %v4924_v41, %v4923_v62 }
 0x2c3   : > { %v5346_v12 = vpop.f32.mrf.mxu0 }
 0x2c5   : > { %v5347_v27 = vpop.f32.mrf.mxu0 }
 0x2c6   : > { %v5348_v38 = vadd.f32 %v5347_v27, %v5346_v12 }
 0x2c7   : > { %v5349_v4 = vpop.f32.mrf.mxu0 }
 0x2c8   : > { %v4699_v25 = vadd.f32 %v5348_v38, %v7932_v42 }
 0x2c9   : > { %v5350_v36 = vpop.f32.mrf.mxu0 }
 0x2ca   : > { %4777 = vst.msk [vmem:[%s7870_s9 + $0x80] sm:$0xff] %vm4390_vm4, %v4699_v25  ;;  %v5351_v60 = vadd.f32 %v5350_v36, %v5349_v4  ;;  %v4879_v23 = vmul.f32 %v4699_v25, %v4699_v25  ;;  %v4824_v22 = vsel %vm4390_vm4, %v4699_v25, 0.0 }
 0x2cb   : > { %v4825_v16 = vadd.f32 %v4824_v22, %v4823_v17  ;;  %v4890_v22 = vmul.f32 %v7967_v61, %v7967_v61 }
 0x2cc   : > { %v4702_v59 = vadd.f32 %v5351_v60, %v7936_v50  ;;  %v4926_v18 = vsel %vm4390_vm4, %v4879_v23, 0.0 }
 0x2cd   : > { %v4927_v44 = vadd.f32 %v4926_v18, %v4925_v0 }
 0x2ce   : > { %4778 = vst.msk [vmem:[%s7870_s9 + $0x88] sm:$0xff] %vm4390_vm4, %v4702_v59  ;;  %v4826_v8 = vsel %vm4390_vm4, %v4702_v59, 0.0 }
 0x2cf   : > { %v4827_v48 = vadd.f32 %v4826_v8, %v4825_v16  ;;  %v4846_v16 = vsel %vm4390_vm4, %v7967_v61, 0.0 }
 0x2db   : > { %v5352_v46 = vpop.f32.mrf.mxu0 }
 0x2dd   : > { %v5353_v20 = vpop.f32.mrf.mxu0 }
 0x2de   : > { %v5354_v57 = vadd.f32 %v5353_v20, %v5352_v46 }
 0x2df   : > { %v5355_v58 = vpop.f32.mrf.mxu0 }
 0x2e0   : > { %v4707_v9 = vadd.f32 %v7930_v55, %v5354_v57 }
 0x2e1   : > { %v5356_v32 = vpop.f32.mrf.mxu0 }
 0x2e2   : > { %4779 = vst.msk [vmem:[%s7870_s9 + $0x90] sm:$0xff] %vm4390_vm4, %v4707_v9  ;;  %v5357_v42 = vadd.f32 %v5356_v32, %v5355_v58  ;;  %v4881_v31 = vmul.f32 %v4707_v9, %v4707_v9  ;;  %v4828_v21 = vsel %vm4390_vm4, %v4707_v9, 0.0  ;;  %v4887_v58 = vmul.f32 %v7961_v30, %v7961_v30 }
 0x2e3   : > { %v4829_v40 = vadd.f32 %v4828_v21, %v4827_v48 }
 0x2e4   : > { %v4710_v13 = vadd.f32 %v7934_v14, %v5357_v42  ;;  %v4880_v14 = vmul.f32 %v4702_v59, %v4702_v59  ;;  %v4930_v33 = vsel %vm4390_vm4, %v4881_v31, 0.0 }
 0x2e6   : > { %4780 = vst.msk [vmem:[%s7870_s9 + $0x98] sm:$0xff] %vm4390_vm4, %v4710_v13  ;;  %v4882_v34 = vmul.f32 %v4710_v13, %v4710_v13  ;;  %v4830_v54 = vsel %vm4390_vm4, %v4710_v13, 0.0 }
 0x2e7   : > { %v4831_v51 = vadd.f32 %v4830_v54, %v4829_v40  ;;  %v4850_v54 = vsel %vm4390_vm4, %v8003_v28, 0.0  ;;  %v4852_v40 = vsel %vm4390_vm4, %v7980_v37, 0.0 }
 0x2e8   : > { %v4932_v5 = vsel %vm4390_vm4, %v4882_v34, 0.0  ;;  %v4948_v34 = vsel %vm4390_vm4, %v4890_v22, 0.0 }
 0x2fb   : > { %v5358_v7 = vpop.f32.mrf.mxu0 }
 0x2fd   : > { %v5359_v50 = vpop.f32.mrf.mxu0 }
 0x2fe   : > { %v5360_v53 = vadd.f32 %v5359_v50, %v5358_v7  ;;  %v4840_v7 = vsel %vm4390_vm4, %v7961_v30, 0.0  ;;  %v4888_v50 = vmul.f32 %v7975_v63, %v7975_v63  ;;  %v4844_v30 = vsel %vm4390_vm4, %v7955_v39, 0.0 }
 0x2ff   : > { %v5361_v19 = vpop.f32.mrf.mxu0 }
 0x300   : > { %v4715_v26 = vadd.f32 %v5360_v53, %v7944_v10  ;;  %v4928_v10 = vsel %vm4390_vm4, %v4880_v14, 0.0  ;;  %v4944_v14 = vsel %vm4390_vm4, %v4888_v50, 0.0 }
 0x301   : > { %v5362_v56 = vpop.f32.mrf.mxu0  ;;  %v4929_v3 = vadd.f32 %v4928_v10, %v4927_v44  ;;  %v4892_v44 = vmul.f32 %v8003_v28, %v8003_v28 }
 0x302   : > { %4781 = vst.msk [vmem:[%s7870_s9 + $0xa0] sm:$0xff] %vm4390_vm4, %v4715_v26  ;;  %v5363_v52 = vadd.f32 %v5362_v56, %v5361_v19  ;;  %v4883_v2 = vmul.f32 %v4715_v26, %v4715_v26  ;;  %v4832_v43 = vsel %vm4390_vm4, %v4715_v26, 0.0  ;;  %v4889_v26 = vmul.f32 %v7955_v39, %v7955_v39 }
 0x303   : > { %v4931_v62 = vadd.f32 %v4930_v33, %v4929_v3  ;;  %v4833_v12 = vadd.f32 %v4832_v43, %v4831_v51  ;;  %v4942_v56 = vsel %vm4390_vm4, %v4887_v58, 0.0  ;;  %v4848_v39 = vsel %vm4390_vm4, %v7988_v24, 0.0 }
 0x304   : > { %v4718_v55 = vadd.f32 %v5363_v52, %v7952_v45  ;;  %v4934_v49 = vsel %vm4390_vm4, %v4883_v2, 0.0  ;;  %v4842_v52 = vsel %vm4390_vm4, %v7975_v63, 0.0  ;;  %v4946_v31 = vsel %vm4390_vm4, %v4889_v26, 0.0 }
 0x305   : > { %v4933_v0 = vadd.f32 %v4932_v5, %v4931_v62  ;;  %v4891_v63 = vmul.f32 %v7988_v24, %v7988_v24  ;;  %v4893_v33 = vmul.f32 %v7980_v37, %v7980_v37  ;;  %v4894_v24 = vmul.f32 %v7991_v29, %v7991_v29 }
 0x306   : > { %4782 = vst.msk [vmem:[%s7870_s9 + $0xa8] sm:$0xff] %vm4390_vm4, %v4718_v55  ;;  %v4884_v11 = vmul.f32 %v4718_v55, %v4718_v55  ;;  %v4834_v17 = vsel %vm4390_vm4, %v4718_v55, 0.0 }
 0x307   : > { %v4935_v60 = vadd.f32 %v4934_v49, %v4933_v0  ;;  %v4835_v59 = vadd.f32 %v4834_v17, %v4833_v12  ;;  %v4950_v61 = vsel %vm4390_vm4, %v4891_v63, 0.0  ;;  %v4956_v51 = vsel %vm4390_vm4, %v4894_v24, 0.0 }
 0x308   : > { %v4936_v38 = vsel %vm4390_vm4, %v4884_v11, 0.0  ;;  %v4954_v11 = vsel %vm4390_vm4, %v4893_v33, 0.0 }
 0x309   : > { %v4937_v57 = vadd.f32 %v4936_v38, %v4935_v60 }
 0x312   : > { %v5364_v45 = vpop.f32.mrf.mxu0 }
 0x314   : > { %v5365_v35 = vpop.f32.mrf.mxu0 }
 0x315   : > { %v5366_v6 = vadd.f32 %v5365_v35, %v5364_v45  ;;  %v4952_v35 = vsel %vm4390_vm4, %v4892_v44, 0.0 }
 0x316   : > { %v5367_v15 = vpop.f32.mrf.mxu0 }
 0x317   : > { %v4723_v41 = vadd.f32 %v7941_v1, %v5366_v6  ;;  %v4854_v6 = vsel %vm4390_vm4, %v7991_v29, 0.0 }
 0x318   : > { %v5368_v27 = vpop.f32.mrf.mxu0 }
 0x319   : > { %4783 = vst.msk [vmem:[%s7870_s9 + $0xb0] sm:$0xff] %vm4390_vm4, %v4723_v41  ;;  %v4836_v4 = vsel %vm4390_vm4, %v4723_v41, 0.0  ;;  %v4885_v25 = vmul.f32 %v4723_v41, %v4723_v41  ;;  %v5369_v36 = vadd.f32 %v5368_v27, %v5367_v15 }
 0x31a   : > { %v4837_v1 = vadd.f32 %v4836_v4, %v4835_v59 }
 0x31b   : > { %v4938_v46 = vsel %vm4390_vm4, %v4885_v25, 0.0  ;;  %v4726_v20 = vadd.f32 %v7949_v47, %v5369_v36 }
 0x31c   : > { %v4939_v42 = vadd.f32 %v4938_v46, %v4937_v57 }
 0x31d   : > { %4784 = vst.msk [vmem:[%s7870_s9 + $0xb8] sm:$0xff] %vm4390_vm4, %v4726_v20  ;;  %v4838_v9 = vsel %vm4390_vm4, %v4726_v20, 0.0  ;;  %v4886_v32 = vmul.f32 %v4726_v20, %v4726_v20 }
 0x31e   : > { %v4839_v13 = vadd.f32 %v4838_v9, %v4837_v1 }
 0x31f   : > { %v4940_v47 = vsel %vm4390_vm4, %v4886_v32, 0.0 }
 0x320   : > { %v4841_v53 = vadd.f32 %v4840_v7, %v4839_v13  ;;  %v4941_v19 = vadd.f32 %v4940_v47, %v4939_v42 }
 0x322   : > { %v4843_v55 = vadd.f32 %v4842_v52, %v4841_v53  ;;  %v4943_v23 = vadd.f32 %v4942_v56, %v4941_v19 }
 0x324   : > { %v4845_v18 = vadd.f32 %v4844_v30, %v4843_v55  ;;  %v4945_v8 = vadd.f32 %v4944_v14, %v4943_v23 }
 0x326   : > { %v4847_v10 = vadd.f32 %v4846_v16, %v4845_v18  ;;  %v4947_v21 = vadd.f32 %v4946_v31, %v4945_v8 }
 0x328   : > { %v4849_v48 = vadd.f32 %v4848_v39, %v4847_v10  ;;  %v4949_v45 = vadd.f32 %v4948_v34, %v4947_v21 }
 0x32a   : > { %v4851_v2 = vadd.f32 %v4850_v54, %v4849_v48  ;;  %v4951_v3 = vadd.f32 %v4950_v61, %v4949_v45 }
 0x32c   : > { %v4853_v5 = vadd.f32 %v4852_v40, %v4851_v2  ;;  %v4953_v43 = vadd.f32 %v4952_v35, %v4951_v3 }
 0x32e   : > { %v4855_v62 = vadd.f32 %v4854_v6, %v4853_v5  ;;  %v4955_v28 = vadd.f32 %v4954_v11, %v4953_v43 }
 0x330   : > { %v4856_v15 = vrot.slane %v4855_v62, 4  ;;  %v4957_v37 = vadd.f32 %v4956_v51, %v4955_v28 }
 0x332   : > { %v4857_v49 = vadd.f32 %v4856_v15, %v4855_v62  ;;  %v4958_v17 = vrot.slane %v4957_v37, 4 }
 0x334   : > { %v4858_v41 = vrot.slane %v4857_v49, 2  ;;  %v4959_v0 = vadd.f32 %v4958_v17, %v4957_v37 }
 0x336   : > { %v4859_v12 = vadd.f32 %v4858_v41, %v4857_v49  ;;  %v4960_v27 = vrot.slane %v4959_v0, 2 }
 0x338   : > { %v4860_v38 = vrot.slane %v4859_v12, 1  ;;  %v4961_v4 = vadd.f32 %v4960_v27, %v4959_v0 }
 0x33a   : > { %v4861_v29 = vadd.f32 %v4860_v38, %v4859_v12  ;;  %v4962_v25 = vrot.slane %v4961_v4, 1 }
 0x33c   : > { %v4963_v36 = vadd.f32 %v4962_v25, %v4961_v4  ;;  %4965 = vst.msk [vmem:[%s225_s11] sm:$0x1] %vm272_vm1, %v4861_v29 }
 0x33e   : > { %4966 = vst.msk [vmem:[%s225_s11 + $0x1] sm:$0x1] %vm272_vm1, %v4963_v36 }
 0x33f   : > { %5589 = shalt.err (!%p5586_p3)
}
 0x340   : > { %s5590_s24 = scalar_lea.hbm %s4987_s15, 32  ;;  %s5594_s7 = scalar_lea.hbm %s8135_s5, 64 }
 0x341   : > { %p5591_p4 = scmp.ne.s32.totalorder %s4987_s15, %s5590_s24  ;;  %p5595_p9 = scmp.lt.s32.totalorder %s4987_s15, %s8135_s5 }
 0x342   : > { %p5596_p10 = scmp.lt.s32.totalorder %s5594_s7, %s5590_s24 }
 0x343   : > { %p5592_p7 = pnand %p5591_p4, %p5711_p5 }
 0x344   : > { %p5597_p11 = por %p5596_p10, %p5595_p9 }
 0x345   : > { %p5593_p8 = pneg %p5592_p7 }
 0x347   : > { %p5598_p12 = pnand %p5597_p11, %p5593_p8 }
 0x349   : > { %5601 = shalt.err (!%p5598_p12)
}
 0x34a   : > { %5464 = dma.vmem_to_hbm [thread:$0]  (%p5711_p5), %s4990_s12, 32, %s4987_s15, %s4973_s16  }
 0x34b PF: > { %p5470_p13 = scmp.ge.s32.totalorder %s5636_s1, 2  ;;  %s5009_s28 = sand.u32 1, %s5624_s18  }
 0x34c   : > { %s5010_s29 = scalar_lea.sflag [#allocation5], %s5009_s28 }
 0x34d   : > { %p5467_p0 = pnand %p5470_p13, %p5715_p6 }
 0x34f   : > { %p5468_p1 = pneg %p5467_p0 }
 0x351   : > { %5619 = dma.done.wait (%p5468_p1), %s5010_s29, 32  }
 0x352   : > { %5621 = vsyncadd (%p5468_p1), %s5010_s29, 4294967264  ;;  %p16_p2 = scmp.ge.s32.totalorder %s5698_s22, 4   ;;  %s8150_s18 = smov %s5628_s19 }
 0x353   : > { %s8151_s19 = smov %s5632_s20  ;;  %s8152_s20 = smov %s5709_s25 }
 0x354   : > { %s8153_s1 = smov %s5698_s22  ;;  %18 = sbr.rel (!%p16_p2) target bundleno = 3 (0x3), region = 86 }
 0x359   :  { %5015 = vsyncpa [#allocation5], 1 }
 0x35a   :  { %5017 = vsyncpa [#allocation5 + $0x1], 1 }

</bundles_post_ra>
